<compile_context>
chip_gen: v7x
topology: tpu7x:2x2x1
jax: 0.10.0
libtpu: 0.0.40
codegen_flags: <defaults>
</compile_context>

<pallas_src>
import math

import jax
import jax.numpy as jnp
from jax.experimental import pallas as pl
from jax.experimental.pallas import tpu as pltpu

LRELU_SLOPE = 0.01      # F.leaky_relu default negative_slope
PIXNORM_EPS = 1e-8      # feature_vector_normalization eps
_BASE = 4               # the 4x4 head resolution
_BASE_S = _BASE * _BASE


# ---------------------------------------------------------------------------
# In-kernel helpers (traced inside the fused kernel), (C, B*S) layout.
# ---------------------------------------------------------------------------
def _pixnorm_lrelu(h):
    """feature_vector_normalization (over channels) followed by leaky ReLU."""
    mean_sq = jnp.mean(h * h, axis=0, keepdims=True)      # channels on sublanes
    h = h * jax.lax.rsqrt(mean_sq + PIXNORM_EPS)
    return jnp.where(h >= 0.0, h, LRELU_SLOPE * h)


def _conv3x3(x, wmat, bias, masks, ww):
    """3x3 same-padded conv in (Cin, B*S) layout, S = hh*ww per image.

    x     : (Cin, B*S)    per-image column blocks, spatial on lanes
    wmat  : (Cout, 9*Cin) column block t*Cin:(t+1)*Cin is tap t=(dy+1)*3+(dx+1)
    bias  : (Cout, 1)
    masks : (9, B*S)      host-precomputed 0/1 halo masks (periodic per image)

    Shifts use pltpu.roll (XLU); lanes that wrapped around or bled across an
    image boundary always land on mask==0 positions, so the result is exact.
    All 9 taps collapse into ONE K=9*Cin matmul.
    """
    n = x.shape[1]
    pats = []
    t = 0
    for dy in (-1, 0, 1):
        for dx in (-1, 0, 1):
            off = dy * ww + dx
            shifted = x if off == 0 else pltpu.roll(x, (-off) % n, 1)
            pats.append(shifted * masks[t:t + 1, :])
            t += 1
    pat = jnp.concatenate(pats, axis=0)                    # (9*Cin, B*S)
    return jnp.dot(wmat, pat, preferred_element_type=jnp.float32) + bias


# ---------------------------------------------------------------------------
# Fused forward kernel (structure is static per stage; refs parsed positionally)
# ---------------------------------------------------------------------------
def _build_fused_kernel(batch, nz, ngf, n_blocks, even):
    def kernel(*refs):
        it = iter(refs)
        z_ref = next(it)                                   # SMEM (B, nz)
        alpha_ref = None if even else next(it)             # SMEM (1,)
        w0t_ref = next(it)                                 # (nz, ngf, 16)
        b0_ref = next(it)                                  # (ngf, 1)
        c1w_ref = next(it)                                 # (ngf, 9*ngf)
        c1b_ref = next(it)                                 # (ngf, 1)
        m_base_ref = next(it)                              # (9, B*16)
        blocks = []
        for _ in range(n_blocks):                          # U, w0, b0, w1, b1, mask
            blocks.append((next(it), next(it), next(it), next(it), next(it), next(it)))
        if even:
            wr_ref, br_ref = next(it), next(it)
        else:
            wp_ref, bp_ref, wc_ref, bc_ref = next(it), next(it), next(it), next(it)
        o_ref = next(it)                                   # (3, B*S_final)

        # ---- 4x4 head: c0 (4x4 conv, pad 3, on a 1x1 latent) --------------
        # TODO(synk): this could be one MXU matmul z @ W0, but that needs a
        # lane->sublane reshape of the (1, ngf*16) result; at nz=8 these
        # broadcast MACs are negligible, so keep them reshape-free.
        hs = []
        for b in range(batch):
            acc = jnp.zeros((ngf, _BASE_S), jnp.float32)
            for ci in range(nz):
                acc = acc + z_ref[b, ci] * w0t_ref[ci]     # SMEM scalar * tile
            hs.append(acc)
        h = jnp.concatenate(hs, axis=1) + b0_ref[...]      # (ngf, B*16)
        h = _pixnorm_lrelu(h)
        # ---- c1 (3x3) ------------------------------------------------------
        h = _conv3x3(h, c1w_ref[...], c1b_ref[...], m_base_ref[...], _BASE)
        h = _pixnorm_lrelu(h)

        # ---- GenUpBlocks ----------------------------------------------------
        hh = ww = _BASE
        h_lo = None
        for bi, (u_ref, w0_ref, bb0_ref, w1_ref, bb1_ref, m_ref) in enumerate(blocks):
            if (not even) and bi == n_blocks - 1:
                h_lo = h                                   # kept for the blend
            # nearest 2x upsample = one MXU matmul against a constant 0/1 matrix
            h = jnp.dot(h, u_ref[...], preferred_element_type=jnp.float32)
            hh, ww = 2 * hh, 2 * ww
            h = _pixnorm_lrelu(_conv3x3(h, w0_ref[...], bb0_ref[...], m_ref[...], ww))
            h = _pixnorm_lrelu(_conv3x3(h, w1_ref[...], bb1_ref[...], m_ref[...], ww))

        # ---- to RGB / alpha blend ------------------------------------------
        if even:
            x = jnp.dot(wr_ref[...], h, preferred_element_type=jnp.float32) + br_ref[...]
        else:
            a = alpha_ref[0]
            # 1x1 conv at LOW resolution, then upsample the 3-channel result
            # (nearest upsample commutes exactly with a 1x1 conv).
            rgb_lo = (jnp.dot(wp_ref[...], h_lo, preferred_element_type=jnp.float32)
                      + bp_ref[...])
            x0 = jnp.dot(rgb_lo, blocks[-1][0][...], preferred_element_type=jnp.float32)
            x1 = (jnp.dot(wc_ref[...], h, preferred_element_type=jnp.float32)
                  + bc_ref[...])
            x = (1.0 - a) * x0 + a * x1

        o_ref[...] = x                                     # one lane-dense store
    return kernel


# ---------------------------------------------------------------------------
# Host-side weight / constant preparation (tiny tensors).
# EqualizedConv2d scales the input by inv_c before the conv == scaling the
# weight (not the bias).
# ---------------------------------------------------------------------------
def _conv3x3_weights(p):
    k, _, cin, cout = p["w"].shape
    wmat = (p["w"] * p["inv_c"]).reshape(k * k * cin, cout).T.astype(jnp.float32)
    bias = p["b"].reshape(cout, 1).astype(jnp.float32)
    return wmat, bias


def _conv1x1_weights(p):
    cout = p["w"].shape[-1]
    wmat = (p["w"][0, 0] * p["inv_c"]).T.astype(jnp.float32)   # (cout, cin)
    bias = p["b"].reshape(cout, 1).astype(jnp.float32)
    return wmat, bias


def _head_taps(p0, nz, ngf):
    # c0 on a 1x1 input: out[co, y, x] = sum_ci z[ci] * w[3-y, 3-x, ci, co]
    w0f = p0["w"][::-1, ::-1, :, :] * p0["inv_c"]               # (4,4,nz,ngf)
    taps = jnp.transpose(w0f, (2, 3, 0, 1)).reshape(nz, ngf, _BASE_S)
    b0 = p0["b"].reshape(ngf, 1).astype(jnp.float32)
    return taps.astype(jnp.float32), b0


def _upsample_matrix(hh, ww, batch):
    """Block-diagonal (B*S, B*4S) nearest-2x selection matrix (host constant)."""
    s, w2 = hh * ww, 2 * ww
    tgt = jnp.arange(4 * s)
    src = (tgt // w2 // 2) * ww + (tgt % w2) // 2
    u = (jnp.arange(s)[:, None] == src[None, :]).astype(jnp.float32)   # (S, 4S)
    return jnp.kron(jnp.eye(batch, dtype=jnp.float32), u)


def _halo_masks(hh, ww, batch):
    """(9, B*S) 0/1 masks for the 9 conv taps (host constant, periodic per image)."""
    s = hh * ww
    pos = jnp.arange(s)
    row, col = pos // ww, pos % ww
    rows = []
    for dy in (-1, 0, 1):
        rv = (row + dy >= 0) & (row + dy < hh)
        for dx in (-1, 0, 1):
            cv = (col + dx >= 0) & (col + dx < ww)
            rows.append((rv & cv).astype(jnp.float32))
    return jnp.tile(jnp.stack(rows, 0), (1, batch))


# ---------------------------------------------------------------------------
# Deterministic parameter init (same shapes as the PyTorch module; HWIO weights)
# ---------------------------------------------------------------------------
def _init_eq_conv(key, in_ch, out_ch, ksize):
    kw, kb = jax.random.split(key)
    w = jax.random.normal(kw, (ksize, ksize, in_ch, out_ch), jnp.float32)
    bound = 1.0 / math.sqrt(in_ch * ksize * ksize)
    b = jax.random.uniform(kb, (out_ch,), jnp.float32, -bound, bound)
    inv_c = jnp.float32(math.sqrt(2.0 / (in_ch * ksize ** 2)))
    return {"w": w, "b": b, "inv_c": inv_c}


def init_generator_params(key, nz, ngf):
    keys = iter(jax.random.split(key, 32))
    p = {}
    p["c0"] = _init_eq_conv(next(keys), nz, ngf, 4)
    p["c1"] = _init_eq_conv(next(keys), ngf, ngf, 3)
    p["out0"] = _init_eq_conv(next(keys), ngf, 3, 1)
    block_channels = [(ngf, ngf)] * 5 + [(ngf, ngf // 2)]
    for i, (ic, oc) in enumerate(block_channels, start=1):
        p["b%d" % i] = {
            "c0": _init_eq_conv(next(keys), ic, oc, 3),
            "c1": _init_eq_conv(next(keys), oc, oc, 3),
        }
        p["out%d" % i] = _init_eq_conv(next(keys), oc, 3, 1)
    return p


# ---------------------------------------------------------------------------
# Generator forward (progressive growing).  Returns NCHW (B, 3, H, W).
# One fused pallas_call for the whole forward pass.
# ---------------------------------------------------------------------------
def generator_forward(params, z, stage, *, nz, ngf, max_stage=12):
    stage = min(float(stage), float(max_stage))
    alpha = stage - math.floor(stage)
    stage = int(math.floor(stage))
    staged2 = stage // 2
    staged2p1 = staged2 + 1
    even = (stage % 2 == 0)
    n_blocks = staged2 if even else staged2p1

    batch = z.shape[0]
    z = z.reshape(batch, nz).astype(jnp.float32)

    smem = pl.BlockSpec(memory_space=pltpu.MemorySpace.SMEM)
    vmem = pl.BlockSpec(memory_space=pltpu.MemorySpace.VMEM)

    operands, specs = [z], [smem]
    if not even:
        operands.append(jnp.full((1,), alpha, jnp.float32))
        specs.append(smem)

    taps, b0 = _head_taps(params["c0"], nz, ngf)
    c1w, c1b = _conv3x3_weights(params["c1"])
    operands += [taps, b0, c1w, c1b, _halo_masks(_BASE, _BASE, batch)]
    specs += [vmem] * 5

    hh = ww = _BASE
    for i in range(1, n_blocks + 1):
        blk = params["b%d" % i]
        w0, bb0 = _conv3x3_weights(blk["c0"])
        w1, bb1 = _conv3x3_weights(blk["c1"])
        operands += [_upsample_matrix(hh, ww, batch), w0, bb0, w1, bb1,
                     _halo_masks(2 * hh, 2 * ww, batch)]
        specs += [vmem] * 6
        hh, ww = 2 * hh, 2 * ww

    if even:
        wr, br = _conv1x1_weights(params["out%d" % staged2])
        operands += [wr, br]
        specs += [vmem] * 2
    else:
        wp, bprev = _conv1x1_weights(params["out%d" % staged2])
        wc, bcurr = _conv1x1_weights(params["out%d" % staged2p1])
        operands += [wp, bprev, wc, bcurr]
        specs += [vmem] * 4

    s_final = hh * ww
    out = pl.pallas_call(
        _build_fused_kernel(batch, nz, ngf, n_blocks, even),
        out_shape=jax.ShapeDtypeStruct((3, batch * s_final), jnp.float32),
        in_specs=specs,
        out_specs=vmem,
    )(*operands)

    # (3, B*S) with per-image column blocks -> (B, 3, H, W)
    return out.reshape(3, batch, hh, ww).transpose(1, 0, 2, 3)


# ---------------------------------------------------------------------------
if __name__ == "__main__":
    nz, ngf, B = 8, 8, 2
    key = jax.random.PRNGKey(0)
    pkey, zkey = jax.random.split(key)

    params = init_generator_params(pkey, nz, ngf)

    # matches Generator.sample_latent: normal latent, divided by its global 2-norm
    z = jax.random.normal(zkey, (B, nz), jnp.float32)
    z = z / (jnp.linalg.norm(z) + 1e-8)

    # stage=3.5 -> floor is odd: exercises b1, b2, out1, out2 and the alpha
    # blend path, producing a 16x16 output.
    stage = 3.5
    x = generator_forward(params, z, stage, nz=nz, ngf=ngf)
    x = jax.block_until_ready(x)

    assert x.shape == (B, 3, 16, 16), x.shape
    assert bool(jnp.all(jnp.isfinite(x)))

    # also smoke-test an even stage (no blend), which uses the other code path
    x_even = generator_forward(params, z, 2.0, nz=nz, ngf=ngf)
    x_even = jax.block_until_ready(x_even)
    assert x_even.shape == (B, 3, 8, 8), x_even.shape
    assert bool(jnp.all(jnp.isfinite(x_even)))

    print("KERNEL_OK")
</pallas_src>

<mosaic_0001>
module attributes {stable_mosaic.version = 11 : i64} {
  func.func @kernel(%arg0: memref<2x8xf32, #tpu.memory_space<smem>>, %arg1: memref<1xf32, #tpu.memory_space<smem>>, %arg2: memref<8x8x16xf32, #tpu.memory_space<vmem>>, %arg3: memref<8x1xf32, #tpu.memory_space<vmem>>, %arg4: memref<8x72xf32, #tpu.memory_space<vmem>>, %arg5: memref<8x1xf32, #tpu.memory_space<vmem>>, %arg6: memref<9x32xf32, #tpu.memory_space<vmem>>, %arg7: memref<32x128xf32, #tpu.memory_space<vmem>>, %arg8: memref<8x72xf32, #tpu.memory_space<vmem>>, %arg9: memref<8x1xf32, #tpu.memory_space<vmem>>, %arg10: memref<8x72xf32, #tpu.memory_space<vmem>>, %arg11: memref<8x1xf32, #tpu.memory_space<vmem>>, %arg12: memref<9x128xf32, #tpu.memory_space<vmem>>, %arg13: memref<128x512xf32, #tpu.memory_space<vmem>>, %arg14: memref<8x72xf32, #tpu.memory_space<vmem>>, %arg15: memref<8x1xf32, #tpu.memory_space<vmem>>, %arg16: memref<8x72xf32, #tpu.memory_space<vmem>>, %arg17: memref<8x1xf32, #tpu.memory_space<vmem>>, %arg18: memref<9x512xf32, #tpu.memory_space<vmem>>, %arg19: memref<3x8xf32, #tpu.memory_space<vmem>>, %arg20: memref<3x1xf32, #tpu.memory_space<vmem>>, %arg21: memref<3x8xf32, #tpu.memory_space<vmem>>, %arg22: memref<3x1xf32, #tpu.memory_space<vmem>>, %arg23: memref<3x512xf32, #tpu.memory_space<vmem>>) attributes {dimension_semantics = [], scalar_prefetch = 0 : i64, scratch_operands = 0 : i64, tpu.core_type = #tpu.core_type<tc>} {
    %cst = arith.constant 0.000000e+00 : f32
    %0 = vector.broadcast %cst : f32 to vector<8x16xf32>
    %c0 = arith.constant 0 : index
    %c0_0 = arith.constant 0 : index
    %1 = memref.load %arg0[%c0, %c0_0] : memref<2x8xf32, #tpu.memory_space<smem>>
    %c0_1 = arith.constant 0 : index
    %c0_2 = arith.constant 0 : index
    %c0_3 = arith.constant 0 : index
    %2 = vector.load %arg2[%c0_1, %c0_2, %c0_3] : memref<8x8x16xf32, #tpu.memory_space<vmem>>, vector<1x8x16xf32>
    %3 = vector.shape_cast %2 : vector<1x8x16xf32> to vector<8x16xf32>
    %4 = vector.broadcast %1 : f32 to vector<8x16xf32>
    %5 = arith.mulf %4, %3 : vector<8x16xf32>
    %6 = arith.addf %0, %5 : vector<8x16xf32>
    %c0_4 = arith.constant 0 : index
    %c1 = arith.constant 1 : index
    %7 = memref.load %arg0[%c0_4, %c1] : memref<2x8xf32, #tpu.memory_space<smem>>
    %c1_5 = arith.constant 1 : index
    %c0_6 = arith.constant 0 : index
    %c0_7 = arith.constant 0 : index
    %8 = vector.load %arg2[%c1_5, %c0_6, %c0_7] : memref<8x8x16xf32, #tpu.memory_space<vmem>>, vector<1x8x16xf32>
    %9 = vector.shape_cast %8 : vector<1x8x16xf32> to vector<8x16xf32>
    %10 = vector.broadcast %7 : f32 to vector<8x16xf32>
    %11 = arith.mulf %10, %9 : vector<8x16xf32>
    %12 = arith.addf %6, %11 : vector<8x16xf32>
    %c0_8 = arith.constant 0 : index
    %c2 = arith.constant 2 : index
    %13 = memref.load %arg0[%c0_8, %c2] : memref<2x8xf32, #tpu.memory_space<smem>>
    %c2_9 = arith.constant 2 : index
    %c0_10 = arith.constant 0 : index
    %c0_11 = arith.constant 0 : index
    %14 = vector.load %arg2[%c2_9, %c0_10, %c0_11] : memref<8x8x16xf32, #tpu.memory_space<vmem>>, vector<1x8x16xf32>
    %15 = vector.shape_cast %14 : vector<1x8x16xf32> to vector<8x16xf32>
    %16 = vector.broadcast %13 : f32 to vector<8x16xf32>
    %17 = arith.mulf %16, %15 : vector<8x16xf32>
    %18 = arith.addf %12, %17 : vector<8x16xf32>
    %c0_12 = arith.constant 0 : index
    %c3 = arith.constant 3 : index
    %19 = memref.load %arg0[%c0_12, %c3] : memref<2x8xf32, #tpu.memory_space<smem>>
    %c3_13 = arith.constant 3 : index
    %c0_14 = arith.constant 0 : index
    %c0_15 = arith.constant 0 : index
    %20 = vector.load %arg2[%c3_13, %c0_14, %c0_15] : memref<8x8x16xf32, #tpu.memory_space<vmem>>, vector<1x8x16xf32>
    %21 = vector.shape_cast %20 : vector<1x8x16xf32> to vector<8x16xf32>
    %22 = vector.broadcast %19 : f32 to vector<8x16xf32>
    %23 = arith.mulf %22, %21 : vector<8x16xf32>
    %24 = arith.addf %18, %23 : vector<8x16xf32>
    %c0_16 = arith.constant 0 : index
    %c4 = arith.constant 4 : index
    %25 = memref.load %arg0[%c0_16, %c4] : memref<2x8xf32, #tpu.memory_space<smem>>
    %c4_17 = arith.constant 4 : index
    %c0_18 = arith.constant 0 : index
    %c0_19 = arith.constant 0 : index
    %26 = vector.load %arg2[%c4_17, %c0_18, %c0_19] : memref<8x8x16xf32, #tpu.memory_space<vmem>>, vector<1x8x16xf32>
    %27 = vector.shape_cast %26 : vector<1x8x16xf32> to vector<8x16xf32>
    %28 = vector.broadcast %25 : f32 to vector<8x16xf32>
    %29 = arith.mulf %28, %27 : vector<8x16xf32>
    %30 = arith.addf %24, %29 : vector<8x16xf32>
    %c0_20 = arith.constant 0 : index
    %c5 = arith.constant 5 : index
    %31 = memref.load %arg0[%c0_20, %c5] : memref<2x8xf32, #tpu.memory_space<smem>>
    %c5_21 = arith.constant 5 : index
    %c0_22 = arith.constant 0 : index
    %c0_23 = arith.constant 0 : index
    %32 = vector.load %arg2[%c5_21, %c0_22, %c0_23] : memref<8x8x16xf32, #tpu.memory_space<vmem>>, vector<1x8x16xf32>
    %33 = vector.shape_cast %32 : vector<1x8x16xf32> to vector<8x16xf32>
    %34 = vector.broadcast %31 : f32 to vector<8x16xf32>
    %35 = arith.mulf %34, %33 : vector<8x16xf32>
    %36 = arith.addf %30, %35 : vector<8x16xf32>
    %c0_24 = arith.constant 0 : index
    %c6 = arith.constant 6 : index
    %37 = memref.load %arg0[%c0_24, %c6] : memref<2x8xf32, #tpu.memory_space<smem>>
    %c6_25 = arith.constant 6 : index
    %c0_26 = arith.constant 0 : index
    %c0_27 = arith.constant 0 : index
    %38 = vector.load %arg2[%c6_25, %c0_26, %c0_27] : memref<8x8x16xf32, #tpu.memory_space<vmem>>, vector<1x8x16xf32>
    %39 = vector.shape_cast %38 : vector<1x8x16xf32> to vector<8x16xf32>
    %40 = vector.broadcast %37 : f32 to vector<8x16xf32>
    %41 = arith.mulf %40, %39 : vector<8x16xf32>
    %42 = arith.addf %36, %41 : vector<8x16xf32>
    %c0_28 = arith.constant 0 : index
    %c7 = arith.constant 7 : index
    %43 = memref.load %arg0[%c0_28, %c7] : memref<2x8xf32, #tpu.memory_space<smem>>
    %c7_29 = arith.constant 7 : index
    %c0_30 = arith.constant 0 : index
    %c0_31 = arith.constant 0 : index
    %44 = vector.load %arg2[%c7_29, %c0_30, %c0_31] : memref<8x8x16xf32, #tpu.memory_space<vmem>>, vector<1x8x16xf32>
    %45 = vector.shape_cast %44 : vector<1x8x16xf32> to vector<8x16xf32>
    %46 = vector.broadcast %43 : f32 to vector<8x16xf32>
    %47 = arith.mulf %46, %45 : vector<8x16xf32>
    %48 = arith.addf %42, %47 : vector<8x16xf32>
    %cst_32 = arith.constant 0.000000e+00 : f32
    %49 = vector.broadcast %cst_32 : f32 to vector<8x16xf32>
    %c1_33 = arith.constant 1 : index
    %c0_34 = arith.constant 0 : index
    %50 = memref.load %arg0[%c1_33, %c0_34] : memref<2x8xf32, #tpu.memory_space<smem>>
    %c0_35 = arith.constant 0 : index
    %c0_36 = arith.constant 0 : index
    %c0_37 = arith.constant 0 : index
    %51 = vector.load %arg2[%c0_35, %c0_36, %c0_37] : memref<8x8x16xf32, #tpu.memory_space<vmem>>, vector<1x8x16xf32>
    %52 = vector.shape_cast %51 : vector<1x8x16xf32> to vector<8x16xf32>
    %53 = vector.broadcast %50 : f32 to vector<8x16xf32>
    %54 = arith.mulf %53, %52 : vector<8x16xf32>
    %55 = arith.addf %49, %54 : vector<8x16xf32>
    %c1_38 = arith.constant 1 : index
    %c1_39 = arith.constant 1 : index
    %56 = memref.load %arg0[%c1_38, %c1_39] : memref<2x8xf32, #tpu.memory_space<smem>>
    %c1_40 = arith.constant 1 : index
    %c0_41 = arith.constant 0 : index
    %c0_42 = arith.constant 0 : index
    %57 = vector.load %arg2[%c1_40, %c0_41, %c0_42] : memref<8x8x16xf32, #tpu.memory_space<vmem>>, vector<1x8x16xf32>
    %58 = vector.shape_cast %57 : vector<1x8x16xf32> to vector<8x16xf32>
    %59 = vector.broadcast %56 : f32 to vector<8x16xf32>
    %60 = arith.mulf %59, %58 : vector<8x16xf32>
    %61 = arith.addf %55, %60 : vector<8x16xf32>
    %c1_43 = arith.constant 1 : index
    %c2_44 = arith.constant 2 : index
    %62 = memref.load %arg0[%c1_43, %c2_44] : memref<2x8xf32, #tpu.memory_space<smem>>
    %c2_45 = arith.constant 2 : index
    %c0_46 = arith.constant 0 : index
    %c0_47 = arith.constant 0 : index
    %63 = vector.load %arg2[%c2_45, %c0_46, %c0_47] : memref<8x8x16xf32, #tpu.memory_space<vmem>>, vector<1x8x16xf32>
    %64 = vector.shape_cast %63 : vector<1x8x16xf32> to vector<8x16xf32>
    %65 = vector.broadcast %62 : f32 to vector<8x16xf32>
    %66 = arith.mulf %65, %64 : vector<8x16xf32>
    %67 = arith.addf %61, %66 : vector<8x16xf32>
    %c1_48 = arith.constant 1 : index
    %c3_49 = arith.constant 3 : index
    %68 = memref.load %arg0[%c1_48, %c3_49] : memref<2x8xf32, #tpu.memory_space<smem>>
    %c3_50 = arith.constant 3 : index
    %c0_51 = arith.constant 0 : index
    %c0_52 = arith.constant 0 : index
    %69 = vector.load %arg2[%c3_50, %c0_51, %c0_52] : memref<8x8x16xf32, #tpu.memory_space<vmem>>, vector<1x8x16xf32>
    %70 = vector.shape_cast %69 : vector<1x8x16xf32> to vector<8x16xf32>
    %71 = vector.broadcast %68 : f32 to vector<8x16xf32>
    %72 = arith.mulf %71, %70 : vector<8x16xf32>
    %73 = arith.addf %67, %72 : vector<8x16xf32>
    %c1_53 = arith.constant 1 : index
    %c4_54 = arith.constant 4 : index
    %74 = memref.load %arg0[%c1_53, %c4_54] : memref<2x8xf32, #tpu.memory_space<smem>>
    %c4_55 = arith.constant 4 : index
    %c0_56 = arith.constant 0 : index
    %c0_57 = arith.constant 0 : index
    %75 = vector.load %arg2[%c4_55, %c0_56, %c0_57] : memref<8x8x16xf32, #tpu.memory_space<vmem>>, vector<1x8x16xf32>
    %76 = vector.shape_cast %75 : vector<1x8x16xf32> to vector<8x16xf32>
    %77 = vector.broadcast %74 : f32 to vector<8x16xf32>
    %78 = arith.mulf %77, %76 : vector<8x16xf32>
    %79 = arith.addf %73, %78 : vector<8x16xf32>
    %c1_58 = arith.constant 1 : index
    %c5_59 = arith.constant 5 : index
    %80 = memref.load %arg0[%c1_58, %c5_59] : memref<2x8xf32, #tpu.memory_space<smem>>
    %c5_60 = arith.constant 5 : index
    %c0_61 = arith.constant 0 : index
    %c0_62 = arith.constant 0 : index
    %81 = vector.load %arg2[%c5_60, %c0_61, %c0_62] : memref<8x8x16xf32, #tpu.memory_space<vmem>>, vector<1x8x16xf32>
    %82 = vector.shape_cast %81 : vector<1x8x16xf32> to vector<8x16xf32>
    %83 = vector.broadcast %80 : f32 to vector<8x16xf32>
    %84 = arith.mulf %83, %82 : vector<8x16xf32>
    %85 = arith.addf %79, %84 : vector<8x16xf32>
    %c1_63 = arith.constant 1 : index
    %c6_64 = arith.constant 6 : index
    %86 = memref.load %arg0[%c1_63, %c6_64] : memref<2x8xf32, #tpu.memory_space<smem>>
    %c6_65 = arith.constant 6 : index
    %c0_66 = arith.constant 0 : index
    %c0_67 = arith.constant 0 : index
    %87 = vector.load %arg2[%c6_65, %c0_66, %c0_67] : memref<8x8x16xf32, #tpu.memory_space<vmem>>, vector<1x8x16xf32>
    %88 = vector.shape_cast %87 : vector<1x8x16xf32> to vector<8x16xf32>
    %89 = vector.broadcast %86 : f32 to vector<8x16xf32>
    %90 = arith.mulf %89, %88 : vector<8x16xf32>
    %91 = arith.addf %85, %90 : vector<8x16xf32>
    %c1_68 = arith.constant 1 : index
    %c7_69 = arith.constant 7 : index
    %92 = memref.load %arg0[%c1_68, %c7_69] : memref<2x8xf32, #tpu.memory_space<smem>>
    %c7_70 = arith.constant 7 : index
    %c0_71 = arith.constant 0 : index
    %c0_72 = arith.constant 0 : index
    %93 = vector.load %arg2[%c7_70, %c0_71, %c0_72] : memref<8x8x16xf32, #tpu.memory_space<vmem>>, vector<1x8x16xf32>
    %94 = vector.shape_cast %93 : vector<1x8x16xf32> to vector<8x16xf32>
    %95 = vector.broadcast %92 : f32 to vector<8x16xf32>
    %96 = arith.mulf %95, %94 : vector<8x16xf32>
    %97 = arith.addf %91, %96 : vector<8x16xf32>
    %98 = tpu.concatenate %48, %97 in 1 : vector<8x16xf32>, vector<8x16xf32> -> vector<8x32xf32>
    %c0_73 = arith.constant 0 : index
    %c0_74 = arith.constant 0 : index
    %99 = vector.load %arg3[%c0_73, %c0_74] : memref<8x1xf32, #tpu.memory_space<vmem>>, vector<8x1xf32>
    %100 = vector.broadcast %99 : vector<8x1xf32> to vector<8x32xf32>
    %101 = arith.addf %98, %100 : vector<8x32xf32>
    %102 = arith.mulf %101, %101 : vector<8x32xf32>
    %cst_75 = arith.constant dense<0.000000e+00> : vector<32xf32>
    %103 = vector.multi_reduction <add>, %102, %cst_75 [0] : vector<8x32xf32> to vector<32xf32>
    %104 = vector.shape_cast %103 : vector<32xf32> to vector<1x32xf32>
    %cst_76 = arith.constant 8.000000e+00 : f32
    %105 = vector.broadcast %cst_76 : f32 to vector<1x32xf32>
    %106 = arith.divf %104, %105 : vector<1x32xf32>
    %cst_77 = arith.constant 9.99999993E-9 : f32
    %107 = vector.broadcast %cst_77 : f32 to vector<1x32xf32>
    %108 = arith.addf %106, %107 : vector<1x32xf32>
    %109 = math.rsqrt %108 : vector<1x32xf32>
    %110 = vector.broadcast %109 : vector<1x32xf32> to vector<8x32xf32>
    %111 = arith.mulf %101, %110 : vector<8x32xf32>
    %cst_78 = arith.constant 0.000000e+00 : f32
    %112 = vector.broadcast %cst_78 : f32 to vector<8x32xf32>
    %113 = arith.cmpf oge, %111, %112 : vector<8x32xf32>
    %cst_79 = arith.constant 0.00999999977 : f32
    %114 = vector.broadcast %cst_79 : f32 to vector<8x32xf32>
    %115 = arith.mulf %114, %111 : vector<8x32xf32>
    %116 = arith.select %113, %111, %115 : vector<8x32xi1>, vector<8x32xf32>
    %c0_80 = arith.constant 0 : index
    %c0_81 = arith.constant 0 : index
    %117 = vector.load %arg4[%c0_80, %c0_81] : memref<8x72xf32, #tpu.memory_space<vmem>>, vector<8x72xf32>
    %c0_82 = arith.constant 0 : index
    %c0_83 = arith.constant 0 : index
    %118 = vector.load %arg5[%c0_82, %c0_83] : memref<8x1xf32, #tpu.memory_space<vmem>>, vector<8x1xf32>
    %c0_84 = arith.constant 0 : index
    %c0_85 = arith.constant 0 : index
    %119 = vector.load %arg6[%c0_84, %c0_85] : memref<9x32xf32, #tpu.memory_space<vmem>>, vector<9x32xf32>
    %c5_i32 = arith.constant 5 : i32
    %120 = tpu.dynamic_rotate %116 by %c5_i32 dim 1 : vector<8x32xf32>, i32 -> vector<8x32xf32>
    %121 = vector.extract_strided_slice %119 {offsets = [0, 0], sizes = [1, 32], strides = [1, 1]} : vector<9x32xf32> to vector<1x32xf32>
    %122 = vector.broadcast %121 : vector<1x32xf32> to vector<8x32xf32>
    %123 = arith.mulf %120, %122 : vector<8x32xf32>
    %c4_i32 = arith.constant 4 : i32
    %124 = tpu.dynamic_rotate %116 by %c4_i32 dim 1 : vector<8x32xf32>, i32 -> vector<8x32xf32>
    %125 = vector.extract_strided_slice %119 {offsets = [1, 0], sizes = [1, 32], strides = [1, 1]} : vector<9x32xf32> to vector<1x32xf32>
    %126 = vector.broadcast %125 : vector<1x32xf32> to vector<8x32xf32>
    %127 = arith.mulf %124, %126 : vector<8x32xf32>
    %c3_i32 = arith.constant 3 : i32
    %128 = tpu.dynamic_rotate %116 by %c3_i32 dim 1 : vector<8x32xf32>, i32 -> vector<8x32xf32>
    %129 = vector.extract_strided_slice %119 {offsets = [2, 0], sizes = [1, 32], strides = [1, 1]} : vector<9x32xf32> to vector<1x32xf32>
    %130 = vector.broadcast %129 : vector<1x32xf32> to vector<8x32xf32>
    %131 = arith.mulf %128, %130 : vector<8x32xf32>
    %c1_i32 = arith.constant 1 : i32
    %132 = tpu.dynamic_rotate %116 by %c1_i32 dim 1 : vector<8x32xf32>, i32 -> vector<8x32xf32>
    %133 = vector.extract_strided_slice %119 {offsets = [3, 0], sizes = [1, 32], strides = [1, 1]} : vector<9x32xf32> to vector<1x32xf32>
    %134 = vector.broadcast %133 : vector<1x32xf32> to vector<8x32xf32>
    %135 = arith.mulf %132, %134 : vector<8x32xf32>
    %136 = vector.extract_strided_slice %119 {offsets = [4, 0], sizes = [1, 32], strides = [1, 1]} : vector<9x32xf32> to vector<1x32xf32>
    %137 = vector.broadcast %136 : vector<1x32xf32> to vector<8x32xf32>
    %138 = arith.mulf %116, %137 : vector<8x32xf32>
    %c31_i32 = arith.constant 31 : i32
    %139 = tpu.dynamic_rotate %116 by %c31_i32 dim 1 : vector<8x32xf32>, i32 -> vector<8x32xf32>
    %140 = vector.extract_strided_slice %119 {offsets = [5, 0], sizes = [1, 32], strides = [1, 1]} : vector<9x32xf32> to vector<1x32xf32>
    %141 = vector.broadcast %140 : vector<1x32xf32> to vector<8x32xf32>
    %142 = arith.mulf %139, %141 : vector<8x32xf32>
    %c29_i32 = arith.constant 29 : i32
    %143 = tpu.dynamic_rotate %116 by %c29_i32 dim 1 : vector<8x32xf32>, i32 -> vector<8x32xf32>
    %144 = vector.extract_strided_slice %119 {offsets = [6, 0], sizes = [1, 32], strides = [1, 1]} : vector<9x32xf32> to vector<1x32xf32>
    %145 = vector.broadcast %144 : vector<1x32xf32> to vector<8x32xf32>
    %146 = arith.mulf %143, %145 : vector<8x32xf32>
    %c28_i32 = arith.constant 28 : i32
    %147 = tpu.dynamic_rotate %116 by %c28_i32 dim 1 : vector<8x32xf32>, i32 -> vector<8x32xf32>
    %148 = vector.extract_strided_slice %119 {offsets = [7, 0], sizes = [1, 32], strides = [1, 1]} : vector<9x32xf32> to vector<1x32xf32>
    %149 = vector.broadcast %148 : vector<1x32xf32> to vector<8x32xf32>
    %150 = arith.mulf %147, %149 : vector<8x32xf32>
    %c27_i32 = arith.constant 27 : i32
    %151 = tpu.dynamic_rotate %116 by %c27_i32 dim 1 : vector<8x32xf32>, i32 -> vector<8x32xf32>
    %152 = vector.extract_strided_slice %119 {offsets = [8, 0], sizes = [1, 32], strides = [1, 1]} : vector<9x32xf32> to vector<1x32xf32>
    %153 = vector.broadcast %152 : vector<1x32xf32> to vector<8x32xf32>
    %154 = arith.mulf %151, %153 : vector<8x32xf32>
    %155 = tpu.concatenate %123, %127, %131, %135, %138, %142, %146, %150, %154 in 0 : vector<8x32xf32>, vector<8x32xf32>, vector<8x32xf32>, vector<8x32xf32>, vector<8x32xf32>, vector<8x32xf32>, vector<8x32xf32>, vector<8x32xf32>, vector<8x32xf32> -> vector<72x32xf32>
    %cst_86 = arith.constant dense<0.000000e+00> : vector<8x32xf32>
    %156 = tpu.matmul %117, %155, %cst_86 {dimension_numbers = #tpu.dot_dimension_numbers<[1], [0], [0], [1], [0, 0, 1, 1], [], []>} : vector<8x72xf32>, vector<72x32xf32>, vector<8x32xf32> -> vector<8x32xf32>
    %157 = vector.broadcast %118 : vector<8x1xf32> to vector<8x32xf32>
    %158 = arith.addf %156, %157 : vector<8x32xf32>
    %159 = arith.mulf %158, %158 : vector<8x32xf32>
    %cst_87 = arith.constant dense<0.000000e+00> : vector<32xf32>
    %160 = vector.multi_reduction <add>, %159, %cst_87 [0] : vector<8x32xf32> to vector<32xf32>
    %161 = vector.shape_cast %160 : vector<32xf32> to vector<1x32xf32>
    %cst_88 = arith.constant 8.000000e+00 : f32
    %162 = vector.broadcast %cst_88 : f32 to vector<1x32xf32>
    %163 = arith.divf %161, %162 : vector<1x32xf32>
    %cst_89 = arith.constant 9.99999993E-9 : f32
    %164 = vector.broadcast %cst_89 : f32 to vector<1x32xf32>
    %165 = arith.addf %163, %164 : vector<1x32xf32>
    %166 = math.rsqrt %165 : vector<1x32xf32>
    %167 = vector.broadcast %166 : vector<1x32xf32> to vector<8x32xf32>
    %168 = arith.mulf %158, %167 : vector<8x32xf32>
    %cst_90 = arith.constant 0.000000e+00 : f32
    %169 = vector.broadcast %cst_90 : f32 to vector<8x32xf32>
    %170 = arith.cmpf oge, %168, %169 : vector<8x32xf32>
    %cst_91 = arith.constant 0.00999999977 : f32
    %171 = vector.broadcast %cst_91 : f32 to vector<8x32xf32>
    %172 = arith.mulf %171, %168 : vector<8x32xf32>
    %173 = arith.select %170, %168, %172 : vector<8x32xi1>, vector<8x32xf32>
    %c0_92 = arith.constant 0 : index
    %c0_93 = arith.constant 0 : index
    %174 = vector.load %arg7[%c0_92, %c0_93] : memref<32x128xf32, #tpu.memory_space<vmem>>, vector<32x128xf32>
    %cst_94 = arith.constant dense<0.000000e+00> : vector<8x128xf32>
    %175 = tpu.matmul %173, %174, %cst_94 {dimension_numbers = #tpu.dot_dimension_numbers<[1], [0], [0], [1], [0, 0, 1, 1], [], []>} : vector<8x32xf32>, vector<32x128xf32>, vector<8x128xf32> -> vector<8x128xf32>
    %c0_95 = arith.constant 0 : index
    %c0_96 = arith.constant 0 : index
    %176 = vector.load %arg8[%c0_95, %c0_96] : memref<8x72xf32, #tpu.memory_space<vmem>>, vector<8x72xf32>
    %c0_97 = arith.constant 0 : index
    %c0_98 = arith.constant 0 : index
    %177 = vector.load %arg9[%c0_97, %c0_98] : memref<8x1xf32, #tpu.memory_space<vmem>>, vector<8x1xf32>
    %c0_99 = arith.constant 0 : index
    %c0_100 = arith.constant 0 : index
    %178 = vector.load %arg12[%c0_99, %c0_100] : memref<9x128xf32, #tpu.memory_space<vmem>>, vector<9x128xf32>
    %c9_i32 = arith.constant 9 : i32
    %179 = tpu.dynamic_rotate %175 by %c9_i32 dim 1 : vector<8x128xf32>, i32 -> vector<8x128xf32>
    %180 = vector.extract_strided_slice %178 {offsets = [0, 0], sizes = [1, 128], strides = [1, 1]} : vector<9x128xf32> to vector<1x128xf32>
    %181 = vector.broadcast %180 : vector<1x128xf32> to vector<8x128xf32>
    %182 = arith.mulf %179, %181 : vector<8x128xf32>
    %c8_i32 = arith.constant 8 : i32
    %183 = tpu.dynamic_rotate %175 by %c8_i32 dim 1 : vector<8x128xf32>, i32 -> vector<8x128xf32>
    %184 = vector.extract_strided_slice %178 {offsets = [1, 0], sizes = [1, 128], strides = [1, 1]} : vector<9x128xf32> to vector<1x128xf32>
    %185 = vector.broadcast %184 : vector<1x128xf32> to vector<8x128xf32>
    %186 = arith.mulf %183, %185 : vector<8x128xf32>
    %c7_i32 = arith.constant 7 : i32
    %187 = tpu.dynamic_rotate %175 by %c7_i32 dim 1 : vector<8x128xf32>, i32 -> vector<8x128xf32>
    %188 = vector.extract_strided_slice %178 {offsets = [2, 0], sizes = [1, 128], strides = [1, 1]} : vector<9x128xf32> to vector<1x128xf32>
    %189 = vector.broadcast %188 : vector<1x128xf32> to vector<8x128xf32>
    %190 = arith.mulf %187, %189 : vector<8x128xf32>
    %c1_i32_101 = arith.constant 1 : i32
    %191 = tpu.dynamic_rotate %175 by %c1_i32_101 dim 1 : vector<8x128xf32>, i32 -> vector<8x128xf32>
    %192 = vector.extract_strided_slice %178 {offsets = [3, 0], sizes = [1, 128], strides = [1, 1]} : vector<9x128xf32> to vector<1x128xf32>
    %193 = vector.broadcast %192 : vector<1x128xf32> to vector<8x128xf32>
    %194 = arith.mulf %191, %193 : vector<8x128xf32>
    %195 = vector.extract_strided_slice %178 {offsets = [4, 0], sizes = [1, 128], strides = [1, 1]} : vector<9x128xf32> to vector<1x128xf32>
    %196 = vector.broadcast %195 : vector<1x128xf32> to vector<8x128xf32>
    %197 = arith.mulf %175, %196 : vector<8x128xf32>
    %c127_i32 = arith.constant 127 : i32
    %198 = tpu.dynamic_rotate %175 by %c127_i32 dim 1 : vector<8x128xf32>, i32 -> vector<8x128xf32>
    %199 = vector.extract_strided_slice %178 {offsets = [5, 0], sizes = [1, 128], strides = [1, 1]} : vector<9x128xf32> to vector<1x128xf32>
    %200 = vector.broadcast %199 : vector<1x128xf32> to vector<8x128xf32>
    %201 = arith.mulf %198, %200 : vector<8x128xf32>
    %c121_i32 = arith.constant 121 : i32
    %202 = tpu.dynamic_rotate %175 by %c121_i32 dim 1 : vector<8x128xf32>, i32 -> vector<8x128xf32>
    %203 = vector.extract_strided_slice %178 {offsets = [6, 0], sizes = [1, 128], strides = [1, 1]} : vector<9x128xf32> to vector<1x128xf32>
    %204 = vector.broadcast %203 : vector<1x128xf32> to vector<8x128xf32>
    %205 = arith.mulf %202, %204 : vector<8x128xf32>
    %c120_i32 = arith.constant 120 : i32
    %206 = tpu.dynamic_rotate %175 by %c120_i32 dim 1 : vector<8x128xf32>, i32 -> vector<8x128xf32>
    %207 = vector.extract_strided_slice %178 {offsets = [7, 0], sizes = [1, 128], strides = [1, 1]} : vector<9x128xf32> to vector<1x128xf32>
    %208 = vector.broadcast %207 : vector<1x128xf32> to vector<8x128xf32>
    %209 = arith.mulf %206, %208 : vector<8x128xf32>
    %c119_i32 = arith.constant 119 : i32
    %210 = tpu.dynamic_rotate %175 by %c119_i32 dim 1 : vector<8x128xf32>, i32 -> vector<8x128xf32>
    %211 = vector.extract_strided_slice %178 {offsets = [8, 0], sizes = [1, 128], strides = [1, 1]} : vector<9x128xf32> to vector<1x128xf32>
    %212 = vector.broadcast %211 : vector<1x128xf32> to vector<8x128xf32>
    %213 = arith.mulf %210, %212 : vector<8x128xf32>
    %214 = tpu.concatenate %182, %186, %190, %194, %197, %201, %205, %209, %213 in 0 : vector<8x128xf32>, vector<8x128xf32>, vector<8x128xf32>, vector<8x128xf32>, vector<8x128xf32>, vector<8x128xf32>, vector<8x128xf32>, vector<8x128xf32>, vector<8x128xf32> -> vector<72x128xf32>
    %cst_102 = arith.constant dense<0.000000e+00> : vector<8x128xf32>
    %215 = tpu.matmul %176, %214, %cst_102 {dimension_numbers = #tpu.dot_dimension_numbers<[1], [0], [0], [1], [0, 0, 1, 1], [], []>} : vector<8x72xf32>, vector<72x128xf32>, vector<8x128xf32> -> vector<8x128xf32>
    %216 = vector.broadcast %177 : vector<8x1xf32> to vector<8x128xf32>
    %217 = arith.addf %215, %216 : vector<8x128xf32>
    %218 = arith.mulf %217, %217 : vector<8x128xf32>
    %cst_103 = arith.constant dense<0.000000e+00> : vector<128xf32>
    %219 = vector.multi_reduction <add>, %218, %cst_103 [0] : vector<8x128xf32> to vector<128xf32>
    %220 = vector.shape_cast %219 : vector<128xf32> to vector<1x128xf32>
    %cst_104 = arith.constant 8.000000e+00 : f32
    %221 = vector.broadcast %cst_104 : f32 to vector<1x128xf32>
    %222 = arith.divf %220, %221 : vector<1x128xf32>
    %cst_105 = arith.constant 9.99999993E-9 : f32
    %223 = vector.broadcast %cst_105 : f32 to vector<1x128xf32>
    %224 = arith.addf %222, %223 : vector<1x128xf32>
    %225 = math.rsqrt %224 : vector<1x128xf32>
    %226 = vector.broadcast %225 : vector<1x128xf32> to vector<8x128xf32>
    %227 = arith.mulf %217, %226 : vector<8x128xf32>
    %cst_106 = arith.constant 0.000000e+00 : f32
    %228 = vector.broadcast %cst_106 : f32 to vector<8x128xf32>
    %229 = arith.cmpf oge, %227, %228 : vector<8x128xf32>
    %cst_107 = arith.constant 0.00999999977 : f32
    %230 = vector.broadcast %cst_107 : f32 to vector<8x128xf32>
    %231 = arith.mulf %230, %227 : vector<8x128xf32>
    %232 = arith.select %229, %227, %231 : vector<8x128xi1>, vector<8x128xf32>
    %c0_108 = arith.constant 0 : index
    %c0_109 = arith.constant 0 : index
    %233 = vector.load %arg10[%c0_108, %c0_109] : memref<8x72xf32, #tpu.memory_space<vmem>>, vector<8x72xf32>
    %c0_110 = arith.constant 0 : index
    %c0_111 = arith.constant 0 : index
    %234 = vector.load %arg11[%c0_110, %c0_111] : memref<8x1xf32, #tpu.memory_space<vmem>>, vector<8x1xf32>
    %c0_112 = arith.constant 0 : index
    %c0_113 = arith.constant 0 : index
    %235 = vector.load %arg12[%c0_112, %c0_113] : memref<9x128xf32, #tpu.memory_space<vmem>>, vector<9x128xf32>
    %c9_i32_114 = arith.constant 9 : i32
    %236 = tpu.dynamic_rotate %232 by %c9_i32_114 dim 1 : vector<8x128xf32>, i32 -> vector<8x128xf32>
    %237 = vector.extract_strided_slice %235 {offsets = [0, 0], sizes = [1, 128], strides = [1, 1]} : vector<9x128xf32> to vector<1x128xf32>
    %238 = vector.broadcast %237 : vector<1x128xf32> to vector<8x128xf32>
    %239 = arith.mulf %236, %238 : vector<8x128xf32>
    %c8_i32_115 = arith.constant 8 : i32
    %240 = tpu.dynamic_rotate %232 by %c8_i32_115 dim 1 : vector<8x128xf32>, i32 -> vector<8x128xf32>
    %241 = vector.extract_strided_slice %235 {offsets = [1, 0], sizes = [1, 128], strides = [1, 1]} : vector<9x128xf32> to vector<1x128xf32>
    %242 = vector.broadcast %241 : vector<1x128xf32> to vector<8x128xf32>
    %243 = arith.mulf %240, %242 : vector<8x128xf32>
    %c7_i32_116 = arith.constant 7 : i32
    %244 = tpu.dynamic_rotate %232 by %c7_i32_116 dim 1 : vector<8x128xf32>, i32 -> vector<8x128xf32>
    %245 = vector.extract_strided_slice %235 {offsets = [2, 0], sizes = [1, 128], strides = [1, 1]} : vector<9x128xf32> to vector<1x128xf32>
    %246 = vector.broadcast %245 : vector<1x128xf32> to vector<8x128xf32>
    %247 = arith.mulf %244, %246 : vector<8x128xf32>
    %c1_i32_117 = arith.constant 1 : i32
    %248 = tpu.dynamic_rotate %232 by %c1_i32_117 dim 1 : vector<8x128xf32>, i32 -> vector<8x128xf32>
    %249 = vector.extract_strided_slice %235 {offsets = [3, 0], sizes = [1, 128], strides = [1, 1]} : vector<9x128xf32> to vector<1x128xf32>
    %250 = vector.broadcast %249 : vector<1x128xf32> to vector<8x128xf32>
    %251 = arith.mulf %248, %250 : vector<8x128xf32>
    %252 = vector.extract_strided_slice %235 {offsets = [4, 0], sizes = [1, 128], strides = [1, 1]} : vector<9x128xf32> to vector<1x128xf32>
    %253 = vector.broadcast %252 : vector<1x128xf32> to vector<8x128xf32>
    %254 = arith.mulf %232, %253 : vector<8x128xf32>
    %c127_i32_118 = arith.constant 127 : i32
    %255 = tpu.dynamic_rotate %232 by %c127_i32_118 dim 1 : vector<8x128xf32>, i32 -> vector<8x128xf32>
    %256 = vector.extract_strided_slice %235 {offsets = [5, 0], sizes = [1, 128], strides = [1, 1]} : vector<9x128xf32> to vector<1x128xf32>
    %257 = vector.broadcast %256 : vector<1x128xf32> to vector<8x128xf32>
    %258 = arith.mulf %255, %257 : vector<8x128xf32>
    %c121_i32_119 = arith.constant 121 : i32
    %259 = tpu.dynamic_rotate %232 by %c121_i32_119 dim 1 : vector<8x128xf32>, i32 -> vector<8x128xf32>
    %260 = vector.extract_strided_slice %235 {offsets = [6, 0], sizes = [1, 128], strides = [1, 1]} : vector<9x128xf32> to vector<1x128xf32>
    %261 = vector.broadcast %260 : vector<1x128xf32> to vector<8x128xf32>
    %262 = arith.mulf %259, %261 : vector<8x128xf32>
    %c120_i32_120 = arith.constant 120 : i32
    %263 = tpu.dynamic_rotate %232 by %c120_i32_120 dim 1 : vector<8x128xf32>, i32 -> vector<8x128xf32>
    %264 = vector.extract_strided_slice %235 {offsets = [7, 0], sizes = [1, 128], strides = [1, 1]} : vector<9x128xf32> to vector<1x128xf32>
    %265 = vector.broadcast %264 : vector<1x128xf32> to vector<8x128xf32>
    %266 = arith.mulf %263, %265 : vector<8x128xf32>
    %c119_i32_121 = arith.constant 119 : i32
    %267 = tpu.dynamic_rotate %232 by %c119_i32_121 dim 1 : vector<8x128xf32>, i32 -> vector<8x128xf32>
    %268 = vector.extract_strided_slice %235 {offsets = [8, 0], sizes = [1, 128], strides = [1, 1]} : vector<9x128xf32> to vector<1x128xf32>
    %269 = vector.broadcast %268 : vector<1x128xf32> to vector<8x128xf32>
    %270 = arith.mulf %267, %269 : vector<8x128xf32>
    %271 = tpu.concatenate %239, %243, %247, %251, %254, %258, %262, %266, %270 in 0 : vector<8x128xf32>, vector<8x128xf32>, vector<8x128xf32>, vector<8x128xf32>, vector<8x128xf32>, vector<8x128xf32>, vector<8x128xf32>, vector<8x128xf32>, vector<8x128xf32> -> vector<72x128xf32>
    %cst_122 = arith.constant dense<0.000000e+00> : vector<8x128xf32>
    %272 = tpu.matmul %233, %271, %cst_122 {dimension_numbers = #tpu.dot_dimension_numbers<[1], [0], [0], [1], [0, 0, 1, 1], [], []>} : vector<8x72xf32>, vector<72x128xf32>, vector<8x128xf32> -> vector<8x128xf32>
    %273 = vector.broadcast %234 : vector<8x1xf32> to vector<8x128xf32>
    %274 = arith.addf %272, %273 : vector<8x128xf32>
    %275 = arith.mulf %274, %274 : vector<8x128xf32>
    %cst_123 = arith.constant dense<0.000000e+00> : vector<128xf32>
    %276 = vector.multi_reduction <add>, %275, %cst_123 [0] : vector<8x128xf32> to vector<128xf32>
    %277 = vector.shape_cast %276 : vector<128xf32> to vector<1x128xf32>
    %cst_124 = arith.constant 8.000000e+00 : f32
    %278 = vector.broadcast %cst_124 : f32 to vector<1x128xf32>
    %279 = arith.divf %277, %278 : vector<1x128xf32>
    %cst_125 = arith.constant 9.99999993E-9 : f32
    %280 = vector.broadcast %cst_125 : f32 to vector<1x128xf32>
    %281 = arith.addf %279, %280 : vector<1x128xf32>
    %282 = math.rsqrt %281 : vector<1x128xf32>
    %283 = vector.broadcast %282 : vector<1x128xf32> to vector<8x128xf32>
    %284 = arith.mulf %274, %283 : vector<8x128xf32>
    %cst_126 = arith.constant 0.000000e+00 : f32
    %285 = vector.broadcast %cst_126 : f32 to vector<8x128xf32>
    %286 = arith.cmpf oge, %284, %285 : vector<8x128xf32>
    %cst_127 = arith.constant 0.00999999977 : f32
    %287 = vector.broadcast %cst_127 : f32 to vector<8x128xf32>
    %288 = arith.mulf %287, %284 : vector<8x128xf32>
    %289 = arith.select %286, %284, %288 : vector<8x128xi1>, vector<8x128xf32>
    %c0_128 = arith.constant 0 : index
    %c0_129 = arith.constant 0 : index
    %290 = vector.load %arg13[%c0_128, %c0_129] : memref<128x512xf32, #tpu.memory_space<vmem>>, vector<128x512xf32>
    %cst_130 = arith.constant dense<0.000000e+00> : vector<8x512xf32>
    %291 = tpu.matmul %289, %290, %cst_130 {dimension_numbers = #tpu.dot_dimension_numbers<[1], [0], [0], [1], [0, 0, 1, 1], [], []>} : vector<8x128xf32>, vector<128x512xf32>, vector<8x512xf32> -> vector<8x512xf32>
    %c0_131 = arith.constant 0 : index
    %c0_132 = arith.constant 0 : index
    %292 = vector.load %arg14[%c0_131, %c0_132] : memref<8x72xf32, #tpu.memory_space<vmem>>, vector<8x72xf32>
    %c0_133 = arith.constant 0 : index
    %c0_134 = arith.constant 0 : index
    %293 = vector.load %arg15[%c0_133, %c0_134] : memref<8x1xf32, #tpu.memory_space<vmem>>, vector<8x1xf32>
    %c0_135 = arith.constant 0 : index
    %c0_136 = arith.constant 0 : index
    %294 = vector.load %arg18[%c0_135, %c0_136] : memref<9x512xf32, #tpu.memory_space<vmem>>, vector<9x512xf32>
    %c17_i32 = arith.constant 17 : i32
    %295 = tpu.dynamic_rotate %291 by %c17_i32 dim 1 : vector<8x512xf32>, i32 -> vector<8x512xf32>
    %296 = vector.extract_strided_slice %294 {offsets = [0, 0], sizes = [1, 512], strides = [1, 1]} : vector<9x512xf32> to vector<1x512xf32>
    %297 = vector.broadcast %296 : vector<1x512xf32> to vector<8x512xf32>
    %298 = arith.mulf %295, %297 : vector<8x512xf32>
    %c16_i32 = arith.constant 16 : i32
    %299 = tpu.dynamic_rotate %291 by %c16_i32 dim 1 : vector<8x512xf32>, i32 -> vector<8x512xf32>
    %300 = vector.extract_strided_slice %294 {offsets = [1, 0], sizes = [1, 512], strides = [1, 1]} : vector<9x512xf32> to vector<1x512xf32>
    %301 = vector.broadcast %300 : vector<1x512xf32> to vector<8x512xf32>
    %302 = arith.mulf %299, %301 : vector<8x512xf32>
    %c15_i32 = arith.constant 15 : i32
    %303 = tpu.dynamic_rotate %291 by %c15_i32 dim 1 : vector<8x512xf32>, i32 -> vector<8x512xf32>
    %304 = vector.extract_strided_slice %294 {offsets = [2, 0], sizes = [1, 512], strides = [1, 1]} : vector<9x512xf32> to vector<1x512xf32>
    %305 = vector.broadcast %304 : vector<1x512xf32> to vector<8x512xf32>
    %306 = arith.mulf %303, %305 : vector<8x512xf32>
    %c1_i32_137 = arith.constant 1 : i32
    %307 = tpu.dynamic_rotate %291 by %c1_i32_137 dim 1 : vector<8x512xf32>, i32 -> vector<8x512xf32>
    %308 = vector.extract_strided_slice %294 {offsets = [3, 0], sizes = [1, 512], strides = [1, 1]} : vector<9x512xf32> to vector<1x512xf32>
    %309 = vector.broadcast %308 : vector<1x512xf32> to vector<8x512xf32>
    %310 = arith.mulf %307, %309 : vector<8x512xf32>
    %311 = vector.extract_strided_slice %294 {offsets = [4, 0], sizes = [1, 512], strides = [1, 1]} : vector<9x512xf32> to vector<1x512xf32>
    %312 = vector.broadcast %311 : vector<1x512xf32> to vector<8x512xf32>
    %313 = arith.mulf %291, %312 : vector<8x512xf32>
    %c511_i32 = arith.constant 511 : i32
    %314 = tpu.dynamic_rotate %291 by %c511_i32 dim 1 : vector<8x512xf32>, i32 -> vector<8x512xf32>
    %315 = vector.extract_strided_slice %294 {offsets = [5, 0], sizes = [1, 512], strides = [1, 1]} : vector<9x512xf32> to vector<1x512xf32>
    %316 = vector.broadcast %315 : vector<1x512xf32> to vector<8x512xf32>
    %317 = arith.mulf %314, %316 : vector<8x512xf32>
    %c497_i32 = arith.constant 497 : i32
    %318 = tpu.dynamic_rotate %291 by %c497_i32 dim 1 : vector<8x512xf32>, i32 -> vector<8x512xf32>
    %319 = vector.extract_strided_slice %294 {offsets = [6, 0], sizes = [1, 512], strides = [1, 1]} : vector<9x512xf32> to vector<1x512xf32>
    %320 = vector.broadcast %319 : vector<1x512xf32> to vector<8x512xf32>
    %321 = arith.mulf %318, %320 : vector<8x512xf32>
    %c496_i32 = arith.constant 496 : i32
    %322 = tpu.dynamic_rotate %291 by %c496_i32 dim 1 : vector<8x512xf32>, i32 -> vector<8x512xf32>
    %323 = vector.extract_strided_slice %294 {offsets = [7, 0], sizes = [1, 512], strides = [1, 1]} : vector<9x512xf32> to vector<1x512xf32>
    %324 = vector.broadcast %323 : vector<1x512xf32> to vector<8x512xf32>
    %325 = arith.mulf %322, %324 : vector<8x512xf32>
    %c495_i32 = arith.constant 495 : i32
    %326 = tpu.dynamic_rotate %291 by %c495_i32 dim 1 : vector<8x512xf32>, i32 -> vector<8x512xf32>
    %327 = vector.extract_strided_slice %294 {offsets = [8, 0], sizes = [1, 512], strides = [1, 1]} : vector<9x512xf32> to vector<1x512xf32>
    %328 = vector.broadcast %327 : vector<1x512xf32> to vector<8x512xf32>
    %329 = arith.mulf %326, %328 : vector<8x512xf32>
    %330 = tpu.concatenate %298, %302, %306, %310, %313, %317, %321, %325, %329 in 0 : vector<8x512xf32>, vector<8x512xf32>, vector<8x512xf32>, vector<8x512xf32>, vector<8x512xf32>, vector<8x512xf32>, vector<8x512xf32>, vector<8x512xf32>, vector<8x512xf32> -> vector<72x512xf32>
    %cst_138 = arith.constant dense<0.000000e+00> : vector<8x512xf32>
    %331 = tpu.matmul %292, %330, %cst_138 {dimension_numbers = #tpu.dot_dimension_numbers<[1], [0], [0], [1], [0, 0, 1, 1], [], []>} : vector<8x72xf32>, vector<72x512xf32>, vector<8x512xf32> -> vector<8x512xf32>
    %332 = vector.broadcast %293 : vector<8x1xf32> to vector<8x512xf32>
    %333 = arith.addf %331, %332 : vector<8x512xf32>
    %334 = arith.mulf %333, %333 : vector<8x512xf32>
    %cst_139 = arith.constant dense<0.000000e+00> : vector<512xf32>
    %335 = vector.multi_reduction <add>, %334, %cst_139 [0] : vector<8x512xf32> to vector<512xf32>
    %336 = vector.shape_cast %335 : vector<512xf32> to vector<1x512xf32>
    %cst_140 = arith.constant 8.000000e+00 : f32
    %337 = vector.broadcast %cst_140 : f32 to vector<1x512xf32>
    %338 = arith.divf %336, %337 : vector<1x512xf32>
    %cst_141 = arith.constant 9.99999993E-9 : f32
    %339 = vector.broadcast %cst_141 : f32 to vector<1x512xf32>
    %340 = arith.addf %338, %339 : vector<1x512xf32>
    %341 = math.rsqrt %340 : vector<1x512xf32>
    %342 = vector.broadcast %341 : vector<1x512xf32> to vector<8x512xf32>
    %343 = arith.mulf %333, %342 : vector<8x512xf32>
    %cst_142 = arith.constant 0.000000e+00 : f32
    %344 = vector.broadcast %cst_142 : f32 to vector<8x512xf32>
    %345 = arith.cmpf oge, %343, %344 : vector<8x512xf32>
    %cst_143 = arith.constant 0.00999999977 : f32
    %346 = vector.broadcast %cst_143 : f32 to vector<8x512xf32>
    %347 = arith.mulf %346, %343 : vector<8x512xf32>
    %348 = arith.select %345, %343, %347 : vector<8x512xi1>, vector<8x512xf32>
    %c0_144 = arith.constant 0 : index
    %c0_145 = arith.constant 0 : index
    %349 = vector.load %arg16[%c0_144, %c0_145] : memref<8x72xf32, #tpu.memory_space<vmem>>, vector<8x72xf32>
    %c0_146 = arith.constant 0 : index
    %c0_147 = arith.constant 0 : index
    %350 = vector.load %arg17[%c0_146, %c0_147] : memref<8x1xf32, #tpu.memory_space<vmem>>, vector<8x1xf32>
    %c0_148 = arith.constant 0 : index
    %c0_149 = arith.constant 0 : index
    %351 = vector.load %arg18[%c0_148, %c0_149] : memref<9x512xf32, #tpu.memory_space<vmem>>, vector<9x512xf32>
    %c17_i32_150 = arith.constant 17 : i32
    %352 = tpu.dynamic_rotate %348 by %c17_i32_150 dim 1 : vector<8x512xf32>, i32 -> vector<8x512xf32>
    %353 = vector.extract_strided_slice %351 {offsets = [0, 0], sizes = [1, 512], strides = [1, 1]} : vector<9x512xf32> to vector<1x512xf32>
    %354 = vector.broadcast %353 : vector<1x512xf32> to vector<8x512xf32>
    %355 = arith.mulf %352, %354 : vector<8x512xf32>
    %c16_i32_151 = arith.constant 16 : i32
    %356 = tpu.dynamic_rotate %348 by %c16_i32_151 dim 1 : vector<8x512xf32>, i32 -> vector<8x512xf32>
    %357 = vector.extract_strided_slice %351 {offsets = [1, 0], sizes = [1, 512], strides = [1, 1]} : vector<9x512xf32> to vector<1x512xf32>
    %358 = vector.broadcast %357 : vector<1x512xf32> to vector<8x512xf32>
    %359 = arith.mulf %356, %358 : vector<8x512xf32>
    %c15_i32_152 = arith.constant 15 : i32
    %360 = tpu.dynamic_rotate %348 by %c15_i32_152 dim 1 : vector<8x512xf32>, i32 -> vector<8x512xf32>
    %361 = vector.extract_strided_slice %351 {offsets = [2, 0], sizes = [1, 512], strides = [1, 1]} : vector<9x512xf32> to vector<1x512xf32>
    %362 = vector.broadcast %361 : vector<1x512xf32> to vector<8x512xf32>
    %363 = arith.mulf %360, %362 : vector<8x512xf32>
    %c1_i32_153 = arith.constant 1 : i32
    %364 = tpu.dynamic_rotate %348 by %c1_i32_153 dim 1 : vector<8x512xf32>, i32 -> vector<8x512xf32>
    %365 = vector.extract_strided_slice %351 {offsets = [3, 0], sizes = [1, 512], strides = [1, 1]} : vector<9x512xf32> to vector<1x512xf32>
    %366 = vector.broadcast %365 : vector<1x512xf32> to vector<8x512xf32>
    %367 = arith.mulf %364, %366 : vector<8x512xf32>
    %368 = vector.extract_strided_slice %351 {offsets = [4, 0], sizes = [1, 512], strides = [1, 1]} : vector<9x512xf32> to vector<1x512xf32>
    %369 = vector.broadcast %368 : vector<1x512xf32> to vector<8x512xf32>
    %370 = arith.mulf %348, %369 : vector<8x512xf32>
    %c511_i32_154 = arith.constant 511 : i32
    %371 = tpu.dynamic_rotate %348 by %c511_i32_154 dim 1 : vector<8x512xf32>, i32 -> vector<8x512xf32>
    %372 = vector.extract_strided_slice %351 {offsets = [5, 0], sizes = [1, 512], strides = [1, 1]} : vector<9x512xf32> to vector<1x512xf32>
    %373 = vector.broadcast %372 : vector<1x512xf32> to vector<8x512xf32>
    %374 = arith.mulf %371, %373 : vector<8x512xf32>
    %c497_i32_155 = arith.constant 497 : i32
    %375 = tpu.dynamic_rotate %348 by %c497_i32_155 dim 1 : vector<8x512xf32>, i32 -> vector<8x512xf32>
    %376 = vector.extract_strided_slice %351 {offsets = [6, 0], sizes = [1, 512], strides = [1, 1]} : vector<9x512xf32> to vector<1x512xf32>
    %377 = vector.broadcast %376 : vector<1x512xf32> to vector<8x512xf32>
    %378 = arith.mulf %375, %377 : vector<8x512xf32>
    %c496_i32_156 = arith.constant 496 : i32
    %379 = tpu.dynamic_rotate %348 by %c496_i32_156 dim 1 : vector<8x512xf32>, i32 -> vector<8x512xf32>
    %380 = vector.extract_strided_slice %351 {offsets = [7, 0], sizes = [1, 512], strides = [1, 1]} : vector<9x512xf32> to vector<1x512xf32>
    %381 = vector.broadcast %380 : vector<1x512xf32> to vector<8x512xf32>
    %382 = arith.mulf %379, %381 : vector<8x512xf32>
    %c495_i32_157 = arith.constant 495 : i32
    %383 = tpu.dynamic_rotate %348 by %c495_i32_157 dim 1 : vector<8x512xf32>, i32 -> vector<8x512xf32>
    %384 = vector.extract_strided_slice %351 {offsets = [8, 0], sizes = [1, 512], strides = [1, 1]} : vector<9x512xf32> to vector<1x512xf32>
    %385 = vector.broadcast %384 : vector<1x512xf32> to vector<8x512xf32>
    %386 = arith.mulf %383, %385 : vector<8x512xf32>
    %387 = tpu.concatenate %355, %359, %363, %367, %370, %374, %378, %382, %386 in 0 : vector<8x512xf32>, vector<8x512xf32>, vector<8x512xf32>, vector<8x512xf32>, vector<8x512xf32>, vector<8x512xf32>, vector<8x512xf32>, vector<8x512xf32>, vector<8x512xf32> -> vector<72x512xf32>
    %cst_158 = arith.constant dense<0.000000e+00> : vector<8x512xf32>
    %388 = tpu.matmul %349, %387, %cst_158 {dimension_numbers = #tpu.dot_dimension_numbers<[1], [0], [0], [1], [0, 0, 1, 1], [], []>} : vector<8x72xf32>, vector<72x512xf32>, vector<8x512xf32> -> vector<8x512xf32>
    %389 = vector.broadcast %350 : vector<8x1xf32> to vector<8x512xf32>
    %390 = arith.addf %388, %389 : vector<8x512xf32>
    %391 = arith.mulf %390, %390 : vector<8x512xf32>
    %cst_159 = arith.constant dense<0.000000e+00> : vector<512xf32>
    %392 = vector.multi_reduction <add>, %391, %cst_159 [0] : vector<8x512xf32> to vector<512xf32>
    %393 = vector.shape_cast %392 : vector<512xf32> to vector<1x512xf32>
    %cst_160 = arith.constant 8.000000e+00 : f32
    %394 = vector.broadcast %cst_160 : f32 to vector<1x512xf32>
    %395 = arith.divf %393, %394 : vector<1x512xf32>
    %cst_161 = arith.constant 9.99999993E-9 : f32
    %396 = vector.broadcast %cst_161 : f32 to vector<1x512xf32>
    %397 = arith.addf %395, %396 : vector<1x512xf32>
    %398 = math.rsqrt %397 : vector<1x512xf32>
    %399 = vector.broadcast %398 : vector<1x512xf32> to vector<8x512xf32>
    %400 = arith.mulf %390, %399 : vector<8x512xf32>
    %cst_162 = arith.constant 0.000000e+00 : f32
    %401 = vector.broadcast %cst_162 : f32 to vector<8x512xf32>
    %402 = arith.cmpf oge, %400, %401 : vector<8x512xf32>
    %cst_163 = arith.constant 0.00999999977 : f32
    %403 = vector.broadcast %cst_163 : f32 to vector<8x512xf32>
    %404 = arith.mulf %403, %400 : vector<8x512xf32>
    %405 = arith.select %402, %400, %404 : vector<8x512xi1>, vector<8x512xf32>
    %c0_164 = arith.constant 0 : index
    %406 = memref.load %arg1[%c0_164] : memref<1xf32, #tpu.memory_space<smem>>
    %c0_165 = arith.constant 0 : index
    %c0_166 = arith.constant 0 : index
    %407 = vector.load %arg19[%c0_165, %c0_166] : memref<3x8xf32, #tpu.memory_space<vmem>>, vector<3x8xf32>
    %cst_167 = arith.constant dense<0.000000e+00> : vector<3x128xf32>
    %408 = tpu.matmul %407, %289, %cst_167 {dimension_numbers = #tpu.dot_dimension_numbers<[1], [0], [0], [1], [0, 0, 1, 1], [], []>} : vector<3x8xf32>, vector<8x128xf32>, vector<3x128xf32> -> vector<3x128xf32>
    %c0_168 = arith.constant 0 : index
    %c0_169 = arith.constant 0 : index
    %409 = vector.load %arg20[%c0_168, %c0_169] : memref<3x1xf32, #tpu.memory_space<vmem>>, vector<3x1xf32>
    %410 = vector.broadcast %409 : vector<3x1xf32> to vector<3x128xf32>
    %411 = arith.addf %408, %410 : vector<3x128xf32>
    %c0_170 = arith.constant 0 : index
    %c0_171 = arith.constant 0 : index
    %412 = vector.load %arg13[%c0_170, %c0_171] : memref<128x512xf32, #tpu.memory_space<vmem>>, vector<128x512xf32>
    %cst_172 = arith.constant dense<0.000000e+00> : vector<3x512xf32>
    %413 = tpu.matmul %411, %412, %cst_172 {dimension_numbers = #tpu.dot_dimension_numbers<[1], [0], [0], [1], [0, 0, 1, 1], [], []>} : vector<3x128xf32>, vector<128x512xf32>, vector<3x512xf32> -> vector<3x512xf32>
    %c0_173 = arith.constant 0 : index
    %c0_174 = arith.constant 0 : index
    %414 = vector.load %arg21[%c0_173, %c0_174] : memref<3x8xf32, #tpu.memory_space<vmem>>, vector<3x8xf32>
    %cst_175 = arith.constant dense<0.000000e+00> : vector<3x512xf32>
    %415 = tpu.matmul %414, %405, %cst_175 {dimension_numbers = #tpu.dot_dimension_numbers<[1], [0], [0], [1], [0, 0, 1, 1], [], []>} : vector<3x8xf32>, vector<8x512xf32>, vector<3x512xf32> -> vector<3x512xf32>
    %c0_176 = arith.constant 0 : index
    %c0_177 = arith.constant 0 : index
    %416 = vector.load %arg22[%c0_176, %c0_177] : memref<3x1xf32, #tpu.memory_space<vmem>>, vector<3x1xf32>
    %417 = vector.broadcast %416 : vector<3x1xf32> to vector<3x512xf32>
    %418 = arith.addf %415, %417 : vector<3x512xf32>
    %cst_178 = arith.constant 1.000000e+00 : f32
    %419 = arith.subf %cst_178, %406 : f32
    %420 = vector.broadcast %419 : f32 to vector<3x512xf32>
    %421 = arith.mulf %420, %413 : vector<3x512xf32>
    %422 = vector.broadcast %406 : f32 to vector<3x512xf32>
    %423 = arith.mulf %422, %418 : vector<3x512xf32>
    %424 = arith.addf %421, %423 : vector<3x512xf32>
    %c0_179 = arith.constant 0 : index
    %c0_180 = arith.constant 0 : index
    %425 = vector.load %arg23[%c0_179, %c0_180] : memref<3x512xf32, #tpu.memory_space<vmem>>, vector<3x512xf32>
    tpu.vector_store %arg23[%c0_179, %c0_180], %424 {strides = array<i32>} : memref<3x512xf32, #tpu.memory_space<vmem>>, vector<3x512xf32>,
    return
  }
}

</mosaic_0001>

<bundles_post_ra>
// kernel: tpu_custom_call.1
= control target key start
LH: loop header
LB: loop body
LE: loop exit
PB: predicated region body
PF: predicated region fallthrough
CT: control target
= control target key end

     0   :  { %s4367_s0 = inlined_call_operand.hbm [shape: f32[2,8], index: 0, kind: input, shape index: {}]   ;;  %s4368_s1 = inlined_call_operand.<no memory space> [shape: f32[1], index: 1, kind: input, shape index: {}]   ;;  %s4369_s2 = inlined_call_operand.vmem [shape: f32[8,8,16], index: 2, kind: input, shape index: {}]   ;;  %s4370_s3 = inlined_call_operand.vmem [shape: f32[8,1], index: 3, kind: input, shape index: {}]   ;;  %s4371_s4 = inlined_call_operand.hbm [shape: f32[8,72], index: 4, kind: input, shape index: {}]   ;;  %s4372_s5 = inlined_call_operand.vmem [shape: f32[8,1], index: 5, kind: input, shape index: {}]   ;;  %s4373_s6 = inlined_call_operand.hbm [shape: f32[9,32], index: 6, kind: input, shape index: {}]   ;;  %s4374_s7 = inlined_call_operand.hbm [shape: f32[32,128], index: 7, kind: input, shape index: {}]   ;;  %s4375_s8 = inlined_call_operand.hbm [shape: f32[8,72], index: 8, kind: input, shape index: {}]   ;;  %s4376_s9 = inlined_call_operand.vmem [shape: f32[8,1], index: 9, kind: input, shape index: {}]   ;;  %s4377_s10 = inlined_call_operand.hbm [shape: f32[8,72], index: 10, kind: input, shape index: {}]   ;;  %s4378_s11 = inlined_call_operand.vmem [shape: f32[8,1], index: 11, kind: input, shape index: {}]   ;;  %s4379_s12 = inlined_call_operand.hbm [shape: f32[9,128], index: 12, kind: input, shape index: {}]   ;;  %s4380_s13 = inlined_call_operand.hbm [shape: f32[128,512], index: 13, kind: input, shape index: {}]   ;;  %s4381_s14 = inlined_call_operand.hbm [shape: f32[8,72], index: 14, kind: input, shape index: {}]   ;;  %s4382_s15 = inlined_call_operand.vmem [shape: f32[8,1], index: 15, kind: input, shape index: {}]   ;;  %s4383_s16 = inlined_call_operand.hbm [shape: f32[8,72], index: 16, kind: input, shape index: {}]   ;;  %s4384_s17 = inlined_call_operand.vmem [shape: f32[8,1], index: 17, kind: input, shape index: {}]   ;;  %s4385_s18 = inlined_call_operand.vmem [shape: f32[9,512], index: 18, kind: input, shape index: {}]   ;;  %s4386_s19 = inlined_call_operand.vmem [shape: f32[3,8], index: 19, kind: input, shape index: {}]   ;;  %s4387_s20 = inlined_call_operand.vmem [shape: f32[3,1], index: 20, kind: input, shape index: {}]   ;;  %s4388_s21 = inlined_call_operand.vmem [shape: f32[3,8], index: 21, kind: input, shape index: {}]   ;;  %s4389_s22 = inlined_call_operand.vmem [shape: f32[3,1], index: 22, kind: input, shape index: {}]   ;;  %s4390_s23 = inlined_call_operand.hbm [shape: f32[3,512], index: 23, kind: output, shape index: {}]  }
   0x1   :  { %4437 = sst [smem:[#allocation64_spill]] %s4367_s0 }
   0x2   :  { %4438 = sst [smem:[#allocation65_spill]] %s4368_s1 }
   0x3   :  { %4439 = sst [smem:[#allocation66_spill]] %s4369_s2 }
   0x4   :  { %4440 = sst [smem:[#allocation67_spill]] %s4370_s3 }
   0x5   :  { %4441 = sst [smem:[#allocation68_spill]] %s4371_s4 }
   0x6   :  { %4442 = sst [smem:[#allocation69_spill]] %s4372_s5 }
   0x7   :  { %4443 = sst [smem:[#allocation70_spill]] %s4373_s6 }
   0x8   :  { %4444 = sst [smem:[#allocation71_spill]] %s4374_s7 }
   0x9   :  { %4445 = sst [smem:[#allocation72_spill]] %s4388_s21 }
   0xa   :  { %4446 = sst [smem:[#allocation73_spill]] %s4390_s23 }
   0xb   :  { %29 = vsyncpa [#allocation6], 0 }
   0xc   :  { %30 = vsyncpa [#allocation4], 0 }
   0xd   :  { %31 = vsyncpa [#allocation9], 0 }
   0xe   :  { %32 = vsyncpa [#allocation12], 0 }
   0xf   :  { %33 = vsyncpa [#allocation15], 0 }
  0x10   :  { %34 = vsyncpa [#allocation18], 0 }
  0x11   :  { %35 = vsyncpa [#allocation5], 0  ;;  %s3089_s4 = smov [#allocation8]   ;;  %s4447_s5 = sld [smem:[#allocation70_spill]] }
  0x12   :  { %s67_s30 = sshll.u32 %s3089_s4, 4  ;;  %s68_s30 = int_to_ptr.vmem [resolvable:$true] %s67_s30 }
  0x17   :  { %s2845_s1 = scalar_lea.hbm %s4447_s5, 256 }
  0x18   :  { %p2846_p0 = scmp.ne.s32.totalorder %s4447_s5, %s2845_s1  ;;  %p2849_p1 = scmp.lt.u32.totalorder %s2845_s1, %s4447_s5 }
  0x1a   :  { %p2851_p2 = pnand %p2849_p1, %p2846_p0 }
  0x1c   :  { %2854 = shalt.err (!%p2851_p2)
}
  0x1d   :  { %s2855_s7 = scalar_lea.vmem %s68_s30, 256  ;;  %p2860_p4 = scmp.lt.s32.totalorder %s68_s30, %s68_s30 }
  0x1e   :  { %p2856_p3 = scmp.ne.s32.totalorder %s68_s30, %s2855_s7  ;;  %p2861_p5 = scmp.lt.s32.totalorder %s2855_s7, %s2855_s7 }
  0x20   :  { %p2862_p6 = por %p2861_p5, %p2860_p4 }
  0x22   :  { %p2863_p7 = pnand %p2862_p6, %p2856_p3 }
  0x24   :  { %2866 = shalt.err (!%p2863_p7)
}
  0x25   :  { %s3090_s28 = smov 128   ;;  %s3091_s29 = smov 8  }
  0x26   :  { %73 = dma.hbm_to_vmem [thread:$0]  %s4447_s5, 256, %s68_s30, [#allocation9], %s3090_s28, %s3090_s28, %s3091_s29  }
  0x27   :  { %s3092_s4 = smov [#allocation11]   ;;  %s3093_s25 = smov [#allocation14]  }
  0x28   :  { %s92_s24 = sshll.u32 %s3092_s4, 4  ;;  %s115_s1 = sshll.u32 %s3093_s25, 4  ;;  %s93_s24 = int_to_ptr.vmem [resolvable:$true] %s92_s24  ;;  %s116_s1 = int_to_ptr.vmem [resolvable:$true] %s115_s1 }
  0x29   :  { %s2867_s6 = scalar_lea.hbm %s4375_s8, 128 }
  0x2a   :  { %p2868_p8 = scmp.ne.s32.totalorder %s4375_s8, %s2867_s6  ;;  %p2871_p9 = scmp.lt.u32.totalorder %s2867_s6, %s4375_s8 }
  0x2c   :  { %p2873_p10 = pnand %p2871_p9, %p2868_p8 }
  0x2e   :  { %2876 = shalt.err (!%p2873_p10)
}
  0x2f   :  { %s2877_s30 = scalar_lea.vmem %s93_s24, 128  ;;  %p2882_p12 = scmp.lt.s32.totalorder %s93_s24, %s93_s24 }
  0x30   :  { %p2878_p11 = scmp.ne.s32.totalorder %s93_s24, %s2877_s30  ;;  %p2883_p13 = scmp.lt.s32.totalorder %s2877_s30, %s2877_s30 }
  0x32   :  { %p2884_p0 = por %p2883_p13, %p2882_p12 }
  0x34   :  { %p2885_p1 = pnand %p2884_p0, %p2878_p11 }
  0x36   :  { %2888 = shalt.err (!%p2885_p1)
}
  0x37   :  { %95 = dma.hbm_to_vmem [thread:$0]  %s4375_s8, 128, %s93_s24, [#allocation12]  }
  0x38   :  { %s2889_s25 = scalar_lea.hbm %s4379_s12, 256 }
  0x39   :  { %p2890_p2 = scmp.ne.s32.totalorder %s4379_s12, %s2889_s25  ;;  %p2893_p3 = scmp.lt.u32.totalorder %s2889_s25, %s4379_s12 }
  0x3b   :  { %p2895_p4 = pnand %p2893_p3, %p2890_p2 }
  0x3d   :  { %2898 = shalt.err (!%p2895_p4)
}
  0x3e   :  { %s2899_s6 = scalar_lea.vmem %s116_s1, 256  ;;  %p2904_p6 = scmp.lt.s32.totalorder %s116_s1, %s116_s1 }
  0x3f   :  { %p2900_p5 = scmp.ne.s32.totalorder %s116_s1, %s2899_s6  ;;  %p2905_p7 = scmp.lt.s32.totalorder %s2899_s6, %s2899_s6 }
  0x41   :  { %p2906_p8 = por %p2905_p7, %p2904_p6 }
  0x43   :  { %p2907_p9 = pnand %p2906_p8, %p2900_p5 }
  0x45   :  { %2910 = shalt.err (!%p2907_p9)
}
  0x46   :  { %121 = dma.hbm_to_vmem [thread:$0]  %s4379_s12, 256, %s116_s1, [#allocation15], %s3090_s28, %s3090_s28, %s3091_s29  }
  0x47   :  { %s3094_s27 = smov [#allocation17]   ;;  %s2911_s3 = scalar_lea.hbm %s4381_s14, 128 }
  0x48   :  { %s140_s7 = sshll.u32 %s3094_s27, 4  ;;  %p2912_p10 = scmp.ne.s32.totalorder %s4381_s14, %s2911_s3  ;;  %s141_s7 = int_to_ptr.vmem [resolvable:$true] %s140_s7 }
  0x49   :  { %p2915_p11 = scmp.lt.u32.totalorder %s2911_s3, %s4381_s14 }
  0x4b   :  { %p2917_p12 = pnand %p2915_p11, %p2912_p10 }
  0x4d   :  { %2920 = shalt.err (!%p2917_p12)
}
  0x4e   :  { %s2921_s23 = scalar_lea.vmem %s141_s7, 128  ;;  %p2926_p0 = scmp.lt.s32.totalorder %s141_s7, %s141_s7 }
  0x4f   :  { %p2922_p13 = scmp.ne.s32.totalorder %s141_s7, %s2921_s23  ;;  %p2927_p1 = scmp.lt.s32.totalorder %s2921_s23, %s2921_s23 }
  0x51   :  { %p2928_p2 = por %p2927_p1, %p2926_p0 }
  0x53   :  { %p2929_p3 = pnand %p2928_p2, %p2922_p13 }
  0x55   :  { %2932 = shalt.err (!%p2929_p3)
}
  0x56   :  { %143 = dma.hbm_to_vmem [thread:$0]  %s4381_s14, 128, %s141_s7, [#allocation18]  }
  0x57   :  { %s4448_s6 = sld [smem:[#allocation64_spill]] }
  0x5d   :  { %s2933_s8 = scalar_lea.hbm %s4448_s6, 32 }
  0x5e   :  { %p2934_p4 = scmp.ne.s32.totalorder %s4448_s6, %s2933_s8  ;;  %p2937_p5 = scmp.lt.u32.totalorder %s2933_s8, %s4448_s6 }
  0x60   :  { %p2939_p6 = pnand %p2937_p5, %p2934_p4 }
  0x62   :  { %2942 = shalt.err (!%p2939_p6)
}
  0x63   :  { %s3095_s3 = smov [#allocation3]   ;;  %s3096_s14 = smov [#allocation7]  }
  0x64   :  { %43 = dma.hbm_to_smem %s4448_s6, 32, %s3095_s3, [#allocation6]  }
  0x65   :  { %s56_s7 = sshll.u32 %s3096_s14, 4  ;;  %s3097_s25 = smov [#allocation10]   ;;  %s57_s7 = int_to_ptr.vmem [resolvable:$true] %s56_s7 }
  0x66   :  { %s79_s21 = sshll.u32 %s3097_s25, 4  ;;  %s4449_s1 = sld [smem:[#allocation68_spill]]  ;;  %s80_s21 = int_to_ptr.vmem [resolvable:$true] %s79_s21 }
  0x6c   :  { %s2943_s26 = scalar_lea.hbm %s4449_s1, 128 }
  0x6d   :  { %p2944_p7 = scmp.ne.s32.totalorder %s4449_s1, %s2943_s26  ;;  %p2947_p8 = scmp.lt.u32.totalorder %s2943_s26, %s4449_s1 }
  0x6f   :  { %p2949_p9 = pnand %p2947_p8, %p2944_p7 }
  0x71   :  { %2952 = shalt.err (!%p2949_p9)
}
  0x72   :  { %s2953_s6 = scalar_lea.vmem %s57_s7, 128  ;;  %p2958_p11 = scmp.lt.s32.totalorder %s57_s7, %s57_s7 }
  0x73   :  { %p2954_p10 = scmp.ne.s32.totalorder %s57_s7, %s2953_s6  ;;  %p2959_p12 = scmp.lt.s32.totalorder %s2953_s6, %s2953_s6 }
  0x75   :  { %p2960_p13 = por %p2959_p12, %p2958_p11 }
  0x77   :  { %p2961_p0 = pnand %p2960_p13, %p2954_p10 }
  0x79   :  { %2964 = shalt.err (!%p2961_p0)
}
  0x7a   :  { %59 = dma.hbm_to_vmem [thread:$0]  %s4449_s1, 128, %s57_s7, [#allocation4]  }
  0x7b   :  { %s4450_s4 = sld [smem:[#allocation71_spill]] }
  0x81   :  { %s2965_s14 = scalar_lea.hbm %s4450_s4, 512 }
  0x82   :  { %p2966_p1 = scmp.ne.s32.totalorder %s4450_s4, %s2965_s14  ;;  %p2969_p2 = scmp.lt.u32.totalorder %s2965_s14, %s4450_s4 }
  0x84   :  { %p2971_p3 = pnand %p2969_p2, %p2966_p1 }
  0x86   :  { %2974 = shalt.err (!%p2971_p3)
}
  0x87   :  { %s2975_s2 = scalar_lea.vmem %s80_s21, 512  ;;  %p2980_p5 = scmp.lt.s32.totalorder %s80_s21, %s80_s21 }
  0x88   :  { %p2976_p4 = scmp.ne.s32.totalorder %s80_s21, %s2975_s2  ;;  %p2981_p6 = scmp.lt.s32.totalorder %s2975_s2, %s2975_s2 }
  0x8a   :  { %p2982_p7 = por %p2981_p6, %p2980_p5 }
  0x8c   :  { %p2983_p8 = pnand %p2982_p7, %p2976_p4 }
  0x8e   :  { %2986 = shalt.err (!%p2983_p8)
}
  0x8f   :  { %85 = dma.hbm_to_vmem [thread:$0]  %s4450_s4, 512, %s80_s21, [#allocation9], %s3090_s28, %s3090_s28, %s3091_s29  }
  0x90   :  { %s3098_s24 = smov [#allocation13]   ;;  %s3099_s27 = smov [#allocation16]  }
  0x91   :  { %s104_s8 = sshll.u32 %s3098_s24, 4  ;;  %s127_s6 = sshll.u32 %s3099_s27, 4  ;;  %s105_s8 = int_to_ptr.vmem [resolvable:$true] %s104_s8  ;;  %s128_s6 = int_to_ptr.vmem [resolvable:$true] %s127_s6 }
  0x92   :  { %s2987_s3 = scalar_lea.hbm %s4377_s10, 128 }
  0x93   :  { %p2988_p9 = scmp.ne.s32.totalorder %s4377_s10, %s2987_s3  ;;  %p2991_p10 = scmp.lt.u32.totalorder %s2987_s3, %s4377_s10 }
  0x95   :  { %p2993_p11 = pnand %p2991_p10, %p2988_p9 }
  0x97   :  { %2996 = shalt.err (!%p2993_p11)
}
  0x98   :  { %s2997_s28 = scalar_lea.vmem %s105_s8, 128  ;;  %p3002_p13 = scmp.lt.s32.totalorder %s105_s8, %s105_s8 }
  0x99   :  { %p2998_p12 = scmp.ne.s32.totalorder %s105_s8, %s2997_s28  ;;  %p3003_p0 = scmp.lt.s32.totalorder %s2997_s28, %s2997_s28 }
  0x9b   :  { %p3004_p1 = por %p3003_p0, %p3002_p13 }
  0x9d   :  { %p3005_p2 = pnand %p3004_p1, %p2998_p12 }
  0x9f   :  { %3008 = shalt.err (!%p3005_p2)
}
  0xa0   :  { %107 = dma.hbm_to_vmem [thread:$0]  %s4377_s10, 128, %s105_s8, [#allocation12]  }
  0xa1   :  { %s3009_s2 = scalar_lea.hbm %s4380_s13, 8192 }
  0xa2   :  { %p3010_p3 = scmp.ne.s32.totalorder %s4380_s13, %s3009_s2  ;;  %p3013_p4 = scmp.lt.u32.totalorder %s3009_s2, %s4380_s13 }
  0xa4   :  { %p3015_p5 = pnand %p3013_p4, %p3010_p3 }
  0xa6   :  { %3018 = shalt.err (!%p3015_p5)
}
  0xa7   :  { %s3019_s30 = scalar_lea.vmem %s128_s6, 8192  ;;  %p3024_p7 = scmp.lt.s32.totalorder %s128_s6, %s128_s6 }
  0xa8   :  { %p3020_p6 = scmp.ne.s32.totalorder %s128_s6, %s3019_s30  ;;  %p3025_p8 = scmp.lt.s32.totalorder %s3019_s30, %s3019_s30 }
  0xaa   :  { %p3026_p9 = por %p3025_p8, %p3024_p7 }
  0xac   :  { %p3027_p10 = pnand %p3026_p9, %p3020_p6 }
  0xae   :  { %3030 = shalt.err (!%p3027_p10)
}
  0xaf   :  { %s3100_s10 = smov 512   ;;  %s3101_s8 = smov 32  }
  0xb0   :  { %133 = dma.hbm_to_vmem [thread:$0]  %s4380_s13, 8192, %s128_s6, [#allocation15], %s3100_s10, %s3100_s10, %s3101_s8  }
  0xb1   :  { %s3102_s0 = smov [#allocation19]   ;;  %s3031_s28 = scalar_lea.hbm %s4383_s16, 128 }
  0xb2   :  { %s152_s14 = sshll.u32 %s3102_s0, 4  ;;  %p3032_p11 = scmp.ne.s32.totalorder %s4383_s16, %s3031_s28  ;;  %s153_s14 = int_to_ptr.vmem [resolvable:$true] %s152_s14 }
  0xb3   :  { %p3035_p12 = scmp.lt.u32.totalorder %s3031_s28, %s4383_s16 }
  0xb5   :  { %p3037_p13 = pnand %p3035_p12, %p3032_p11 }
  0xb7   :  { %3040 = shalt.err (!%p3037_p13)
}
  0xb8   :  { %s3041_s2 = scalar_lea.vmem %s153_s14, 128  ;;  %p3046_p1 = scmp.lt.s32.totalorder %s153_s14, %s153_s14 }
  0xb9   :  { %p3042_p0 = scmp.ne.s32.totalorder %s153_s14, %s3041_s2  ;;  %p3047_p2 = scmp.lt.s32.totalorder %s3041_s2, %s3041_s2 }
  0xbb   :  { %p3048_p3 = por %p3047_p2, %p3046_p1 }
  0xbd   :  { %p3049_p4 = pnand %p3048_p3, %p3042_p0 }
  0xbf   :  { %3052 = shalt.err (!%p3049_p4)
}
  0xc0   :  { %155 = dma.hbm_to_vmem [thread:$0]  %s4383_s16, 128, %s153_s14, [#allocation18]  }
  0xc1   :  { %3075 = dma.done.wait [#allocation6], 32  }
  0xc2   :  { %3076 = vsyncadd [#allocation6], 4294967264 }
  0xc3   :  { %3077 = dma.done.wait [#allocation4], 128  }
  0xc4   :  { %3078 = vsyncadd [#allocation4], 4294967168 }
  0xc5   :  { %3079 = dma.done.wait [#allocation9], 768  }
  0xc6   :  { %3080 = vsyncadd [#allocation9], 4294966528 }
  0xc7   :  { %3081 = dma.done.wait [#allocation12], 256  }
  0xc8   :  { %3082 = vsyncadd [#allocation12], 4294967040 }
  0xc9   :  { %3083 = dma.done.wait [#allocation15], 8448  }
  0xca   :  { %3084 = vsyncadd [#allocation15], 4294958848 }
  0xcb   :  { %3085 = dma.done.wait [#allocation18], 256  }
  0xcc   :  { %3086 = vsyncadd [#allocation18], 4294967040 }
  0xcd   :  { %198 = sfence }
  0xce   :  { %s4451_s24 = sld [smem:[#allocation67_spill]]  ;;  %v3103_v1 = vmov 0   ;;  %s3390_s27 = sld [smem:[#allocation3 + $0x2]]  ;;  %v319_v56 = vlaneseq  ;;  %v3452_v60 = vld [vmem:[#allocation8] sm:$0xff]  ;;  %vm282_vm0 = vcmask 130048   ;;  %vm292_vm1 = vcmask 261120  }
  0xcf   :  { %2799 = vset.pattern.permute.xlu0 %v3103_v1  ;;  %2820 = vset.pattern.permute.xlu1 %v3103_v1  ;;  %s3388_s16 = sld [smem:[#allocation3 + $0x1]]  ;;  %s3392_s30 = sld [smem:[#allocation3 + $0x3]]  ;;  %vm312_vm3 = vcmask 1047808   ;;  %vm3122_vm4 = vmmov 0   ;;  %vm453_vm5 = vcmask 588800  }
  0xd0   :  { %s2378_s10 = sld [smem:[#allocation3 + $0x80]]  ;;  %s2379_s5 = sld [smem:[#allocation3 + $0x81]]  ;;  %v3444_v57 = vshrl.u32 %v319_v56, 7 }
  0xd1   :  { %s2380_s3 = sld [smem:[#allocation3 + $0x82]]  ;;  %s2381_s0 = sld [smem:[#allocation3 + $0x83]] }
  0xd2   :  { %s3394_s14 = sld [smem:[#allocation3 + $0x84]]  ;;  %s3396_s25 = sld [smem:[#allocation3 + $0x85]]  ;;  %v3447_v58 = vsub.s32 1, %v3444_v57  ;;  %v3450_v59 = vsub.s32 3, %v3444_v57  ;;  %v3459_v63 = vsub.s32 6, %v3444_v57 }
  0xd3   :  { %s3398_s23 = sld [smem:[#allocation3 + $0x4]]  ;;  %s4452_s4 = sld [smem:[#allocation66_spill]] }
  0xd4   :  { %v284_v0 = vld [vmem:[%s4451_s24] sm:$0xff]  ;;  %s3406_s2 = sld [smem:[#allocation3 + $0x86]]  ;;  %s199_s13 = sld [smem:[#allocation3]]  ;;  %v213_v13 = vstv %s3390_s27  ;;  %v331_v61 = vrot.slane %v3452_v60, %v3447_v58  ;;  %v349_v62 = vrot.slane %v3452_v60, %v3450_v59 }
  0xd5   :  { %287 = vperm.xlu0 %2799, %v284_v0   ;;  %v207_v5 = vstv %s3388_s16  ;;  %s3415_s28 = sld [smem:[#allocation3 + $0x5]]  ;;  %s3417_s21 = sld [smem:[#allocation3 + $0x87]]  ;;  %v219_v20 = vstv %s3392_s30  ;;  %v372_v0 = vrot.slane %v3452_v60, %v3459_v63 }
  0xd6   :  { %v247_v7 = vstv %s2378_s10  ;;  %v251_v8 = vstv %s2379_s5  ;;  %s3423_s16 = sld [smem:[#allocation3 + $0x6]]  ;;  %s2376_s27 = sld [smem:[#allocation3 + $0x7]] }
  0xd7   :  { %v255_v11 = vstv %s2380_s3  ;;  %v259_v12 = vstv %s2381_s0  ;;  %s3109_s6 = smov 29   ;;  %s3110_s7 = smov 1  }
  0xd8   :  { %v263_v16 = vstv %s3394_s14  ;;  %v267_v22 = vstv %s3396_s25  ;;  %s3104_s25 = smov 16   ;;  %s3112_s1 = smov 27  }
  0xd9   :  { %v200_v2 = vld [vmem:[%s4452_s4] sm:$0xff]  ;;  %v2365_v3 = vld [vmem:[%s4452_s4 + $0x8] sm:$0xff]  ;;  %v2367_v4 = vld [vmem:[%s4452_s4 + $0x10] sm:$0xff]  ;;  %v225_v28 = vstv %s3398_s23  ;;  %s3105_s23 = smov 28   ;;  %s3113_s24 = smov 127  }
  0xda   :  { %v2369_v6 = vld [vmem:[%s4452_s4 + $0x18] sm:$0xff]  ;;  %v248_v9 = vmul.f32 %v247_v7, %v200_v2  ;;  %v252_v10 = vmul.f32 %v2365_v3, %v251_v8  ;;  %v2371_v14 = vld [vmem:[%s4452_s4 + $0x20] sm:$0xff]  ;;  %v256_v15 = vmul.f32 %v2367_v4, %v255_v11  ;;  %v208_v17 = vmul.f32 %v2365_v3, %v207_v5  ;;  %v2373_v21 = vld [vmem:[%s4452_s4 + $0x28] sm:$0xff]  ;;  %s3116_s12 = smov 26   ;;  %s3117_s26 = smov 24  }
  0xdb   :  { %v260_v19 = vmul.f32 %v2369_v6, %v259_v12  ;;  %v201_v23 = vstv %s199_s13  ;;  %v214_v24 = vmul.f32 %v2367_v4, %v213_v13  ;;  %v264_v26 = vmul.f32 %v2371_v14, %v263_v16  ;;  %v2375_v29 = vld [vmem:[%s4452_s4 + $0x30] sm:$0xff]  ;;  %v2377_v36 = vld [vmem:[%s4452_s4 + $0x38] sm:$0xff]  ;;  %s3106_s4 = smov 31   ;;  %s3108_s13 = smov 5  }
  0xdc   :  { %v253_v18 = vadd.f32 %v252_v10, %v248_v9  ;;  %v202_v27 = vmul.f32 %v201_v23, %v200_v2  ;;  %v271_v30 = vstv %s3406_s2  ;;  %v220_v31 = vmul.f32 %v2369_v6, %v219_v20  ;;  %s3107_s2 = smov 3   ;;  %s3119_s10 = smov 22  }
  0xdd   :  { %v268_v33 = vmul.f32 %v2373_v21, %v267_v22  ;;  %v231_v35 = vstv %s3415_s28  ;;  %v275_v37 = vstv %s3417_s21  ;;  %v226_v38 = vmul.f32 %v2371_v14, %v225_v28  ;;  %s3114_s28 = smov 126   ;;  %s3115_s21 = smov 124  }
  0xde   :  { %v257_v25 = vadd.f32 %v256_v15, %v253_v18  ;;  %v209_v34 = vadd.f32 %v208_v17, %v202_v27  ;;  %v272_v40 = vmul.f32 %v2375_v29, %v271_v30  ;;  %v237_v42 = vstv %s3423_s16  ;;  %v2386_v15 = vld [vmem:[#allocation8 + $0x8] ss:$0 sm:$0xff]  ;;  %s3118_s16 = smov 23   ;;  %s3121_s5 = smov 101  }
  0xdf   :  { %v232_v43 = vmul.f32 %v2373_v21, %v231_v35  ;;  %v276_v45 = vmul.f32 %v2377_v36, %v275_v37  ;;  %v243_v47 = vstv %s2376_s27  ;;  %v238_v48 = vmul.f32 %v2375_v29, %v237_v42  ;;  %s4453_s0 = sld [smem:[#allocation69_spill]]  ;;  %s3124_s30 = smov 9  }
  0xe0   :  { %v261_v32 = vadd.f32 %v260_v19, %v257_v25  ;;  %v215_v41 = vadd.f32 %v214_v24, %v209_v34  ;;  %v244_v51 = vmul.f32 %v2377_v36, %v243_v47  ;;  %v3466_v20 = vsub.s32 2, %v3444_v57  ;;  %s3125_s14 = smov 7  }
  0xe1   :  { %v3473_v24 = vsub.s32 5, %v3444_v57  ;;  %v3484_v28 = vsub.s32 0, %v3444_v57 }
  0xe2   :  { %v265_v39 = vadd.f32 %v264_v26, %v261_v32  ;;  %v221_v46 = vadd.f32 %v220_v31, %v215_v41  ;;  %v340_v23 = vrot.slane %v3452_v60, %v3466_v20  ;;  %v3478_v26 = vsub.s32 7, %v3444_v57 }
  0xe3   :  { %v363_v25 = vrot.slane %v3452_v60, %v3473_v24  ;;  %v322_v29 = vrot.slane %v3452_v60, %v3484_v28 }
  0xe4   :  { %v269_v44 = vadd.f32 %v268_v33, %v265_v39  ;;  %v227_v50 = vadd.f32 %v226_v38, %v221_v46  ;;  %v381_v27 = vrot.slane %v3452_v60, %v3478_v26  ;;  %v3490_v33 = vsub.s32 4, %v3444_v57 }
  0xe6   :  { %v273_v49 = vadd.f32 %v272_v40, %v269_v44  ;;  %v233_v53 = vadd.f32 %v232_v43, %v227_v50  ;;  %v358_v38 = vrot.slane %v3452_v60, %v3490_v33 }
  0xe8   :  { %v277_v52 = vadd.f32 %v276_v45, %v273_v49  ;;  %v239_v54 = vadd.f32 %v238_v48, %v233_v53  ;;  %v3120_v49 = vmov 0.0|0.0  }
  0xe9   :  { %2519 = vmatprep.subr.bf16.mxu0 %v3120_v49  ;;  %2531 = vmatprep.subr.bf16.mxu1 %v3120_v49 }
  0xea   :  { %279 = vrot.lane.b32.xlu0 %v277_v52, %s3104_s25  ;;  %v245_v55 = vadd.f32 %v244_v51, %v239_v54 }
  0xee   :  { %333 = vrot.lane.b32.xlu0 %v331_v61, %s3105_s23  ;;  %s3126_s23 = smov 121  }
  0xf2   :  { %351 = vrot.lane.b32.xlu0 %v349_v62, %s3106_s4  ;;  %s3127_s4 = smov 119  }
  0xf6   :  { %374 = vrot.lane.b32.xlu0 %v372_v0, %s3107_s2  ;;  %v4398_v0 = vmov 0.0   ;;  %s3128_s2 = smov 120  }
  0xf7   :  { %2458 = vmatprep.mubr.msk.f32.mxu0 %vm3122_vm4, %v4398_v0  ;;  %2469 = vmatprep.mubr.msk.f32.mxu1 %vm3122_vm4, %v4398_v0 }
  0xfa   :  { %392 = vrot.lane.b32.xlu0 %v2386_v15, %s3108_s13 }
 0x154   :  { %v288_v1 = vpop.permute.xlu0 %287 }
 0x15c   :  { %v280_v2 = vpop.permute.xlu0 %279 }
 0x15d   :  { %v283_v3 = vsel %vm282_vm0, %v245_v55, %v280_v2 }
 0x15e   :  { %v290_v4 = vadd.f32 %v288_v1, %v283_v3 }
 0x160   :  { %v291_v5 = vmul.f32 %v290_v4, %v290_v4  ;;  %v334_v30 = vpop.permute.xlu0 %333 }
 0x162   :  { %v293_v6 = vsel %vm292_vm1, %v291_v5, 0.0  ;;  %v309_v5 = vld [vmem:[%s4453_s0] sm:$0xff] }
 0x163   :  { %v294_v7 = vrot.slane %v293_v6, 4 }
 0x164   :  { %v352_v34 = vpop.permute.xlu0 %351 }
 0x165   :  { %v295_v8 = vadd.f32 %v294_v7, %v293_v6 }
 0x167   :  { %v296_v9 = vrot.slane %v295_v8, 2 }
 0x168   :  { %v375_v40 = vpop.permute.xlu0 %374 }
 0x169   :  { %v297_v10 = vadd.f32 %v296_v9, %v295_v8 }
 0x16b   :  { %v298_v11 = vrot.slane %v297_v10, 1 }
 0x16c   :  { %v393_v47 = vpop.permute.xlu0 %392 }
 0x16d   :  { %v299_v12 = vadd.f32 %v298_v11, %v297_v10 }
 0x16f   :  { %v301_v13 = vmul.f32 0.125, %v299_v12 }
 0x171   :  { %v302_v14 = vadd.f32 1e-08, %v301_v13 }
 0x173   :  { %2821 = vrsqrt.f32 %v302_v14 }
 0x17d   :  { %v2822_v16 = vpop.eup %2821 }
 0x17e   :  { %v304_v17 = vmul.f32 %v2822_v16, %v290_v4 }
 0x180   :  { %vm305_vm2 = vcmp.ge.f32.partialorder %v304_v17, 0.0  ;;  %v306_v18 = vmul.f32 0.01, %v304_v17 }
 0x182   :  { %v307_v19 = vsel %vm305_vm2, %v304_v17, %v306_v18 }
 0x183   :  { %313 = vrot.lane.b32.xlu1 %v307_v19, %s3101_s8  ;;  %v359_v43 = vmul.f32 %v358_v38, %v307_v19 }
 0x1f5   :  { %v314_v21 = vpop.permute.xlu1 %313 }
 0x1f6   :  { %v315_v22 = vsel %vm312_vm3, %v314_v21, %v307_v19 }
 0x1f7   :  { %316 = vrot.lane.b32.xlu1 %v315_v22, %s3101_s8  ;;  %s3111_s8 = smov 4  }
 0x1fb   :  { %342 = vrot.lane.b32.xlu1 %v340_v23, %s3109_s6  ;;  %v308_v23 = vld [vmem:[#allocation7] sm:$0xff] }
 0x1ff   :  { %365 = vrot.lane.b32.xlu1 %v363_v25, %s3110_s7 }
 0x203   :  { %383 = vrot.lane.b32.xlu1 %v381_v27, %s3111_s8  ;;  %v542_v27 = vld [vmem:[#allocation10] sm:$0xff] }
 0x207   :  { %324 = vrot.lane.b32.xlu1 %v322_v29, %s3112_s1  ;;  %v543_v29 = vld [vmem:[#allocation10 + $0x8] sm:$0xff] }
 0x269   :  { %v317_v31 = vpop.permute.xlu1 %316 }
 0x26a   :  { %v318_v32 = vsel %vm312_vm3, %v317_v31, %v307_v19  ;;  %v544_v31 = vld [vmem:[#allocation10 + $0x10] sm:$0xff] }
 0x26b   :  { %v336_v35 = vmul.f32 %v334_v30, %v318_v32  ;;  %v354_v39 = vmul.f32 %v352_v34, %v318_v32  ;;  %v377_v46 = vmul.f32 %v375_v40, %v318_v32  ;;  %v395_v48 = vmul.f32 %v393_v47, %v318_v32 }
 0x26c   :  { %v2532_v30 = vpack.c.bf16 %v543_v29, %v542_v27 }
 0x26d   :  { %397 = vrot.lane.b32.xlu0 %v336_v35, %s3113_s24  ;;  %v343_v36 = vpop.permute.xlu1 %342 }
 0x26e   :  { %v345_v37 = vmul.f32 %v343_v36, %v318_v32  ;;  %2533 = vmatpush3.bf16.msra.mxu1 %v2532_v30  ;;  %v3564_v30 = vld [vmem:[#allocation14 + $0x8] ss:$0 sm:$0xff] }
 0x26f   :  { %2534 = vmatprep.subr.bf16.mxu1 %v3120_v49 }
 0x270   :  { %400 = vrot.lane.b32.xlu1 %v345_v37, %s3114_s28  ;;  %s3132_s28 = smov 15  }
 0x271   :  { %403 = vrot.lane.b32.xlu0 %v354_v39, %s3115_s21  ;;  %v366_v41 = vpop.permute.xlu1 %365  ;;  %s3133_s21 = smov 111  }
 0x272   :  { %v368_v42 = vmul.f32 %v366_v41, %v318_v32 }
 0x274   :  { %406 = vrot.lane.b32.xlu1 %v359_v43, %s3112_s1  ;;  %s3131_s1 = smov 112  }
 0x275   :  { %409 = vrot.lane.b32.xlu0 %v368_v42, %s3116_s12  ;;  %v384_v44 = vpop.permute.xlu1 %383  ;;  %s4529_s12 = sld [smem:[#allocation65_spill]] }
 0x276   :  { %v386_v45 = vmul.f32 %v384_v44, %v318_v32 }
 0x278   :  { %412 = vrot.lane.b32.xlu1 %v377_v46, %s3117_s26 }
 0x279   :  { %415 = vrot.lane.b32.xlu0 %v386_v45, %s3118_s16  ;;  %v325_v50 = vpop.permute.xlu1 %324 }
 0x27a   :  { %v327_v51 = vmul.f32 %v325_v50, %v318_v32  ;;  %v545_v32 = vld [vmem:[#allocation10 + $0x18] sm:$0xff] }
 0x27b   :  { %v2535_v34 = vpack.c.bf16 %v545_v32, %v544_v31  ;;  %s2319_s26 = ssub.f32 1.0, %s4529_s12 }
 0x27c   :  { %418 = vrot.lane.b32.xlu1 %v395_v48, %s3119_s10 }
 0x27d   :  { %2536 = vmatpush3.bf16.msra.mxu1 %v2535_v34  ;;  %v619_v34 = vld [vmem:[#allocation11] sm:$0xff] }
 0x27e   :  { %2537 = vmatprep.subr.bf16.mxu1 %v3120_v49 }
 0x2df   :  { %v398_v52 = vpop.permute.xlu0 %397 }
 0x2e0   :  { %v2800_v53 = vpack.i.bf16 %v398_v52, %v327_v51 }
 0x2e2   :  { %2801 = vrot.lane.b32.xlu0 %v2800_v53, %s3121_s5  ;;  %v401_v54 = vpop.permute.xlu1 %400 }
 0x2e3   :  { %v404_v55 = vpop.permute.xlu0 %403 }
 0x2e4   :  { %v2805_v57 = vpack.i.bf16 %v404_v55, %v401_v54 }
 0x2e6   :  { %2806 = vrot.lane.b32.xlu1 %v2805_v57, %s3121_s5  ;;  %v407_v60 = vpop.permute.xlu1 %406  ;;  %v620_v57 = vld [vmem:[%s4376_s9] sm:$0xff] }
 0x2e7   :  { %v410_v61 = vpop.permute.xlu0 %409 }
 0x2e8   :  { %v2810_v62 = vpack.i.bf16 %v410_v61, %v407_v60  ;;  %v621_v60 = vld [vmem:[#allocation14] sm:$0xff] }
 0x2e9   :  { %v3530_v61 = vrot.slane %v621_v60, %v3447_v58 }
 0x2ea   :  { %2811 = vrot.lane.b32.xlu0 %v2810_v62, %s3121_s5  ;;  %v413_v1 = vpop.permute.xlu1 %412  ;;  %v3533_v62 = vrot.slane %v621_v60, %v3484_v28 }
 0x2eb   :  { %v416_v2 = vpop.permute.xlu0 %415 }
 0x2ec   :  { %v2815_v3 = vpack.i.bf16 %v416_v2, %v413_v1 }
 0x2ee   :  { %2816 = vrot.lane.b32.xlu1 %v2815_v3, %s3121_s5  ;;  %v419_v4 = vpop.permute.xlu1 %418 }
 0x2ef   :  { %442 = vrot.lane.b32.xlu0 %v419_v4, %s3121_s5 }
 0x2f2   :  { %422 = vperm.xlu1 %2820, %v309_v5   ;;  %v3538_v5 = vrot.slane %v621_v60, %v3450_v59 }
 0x354   :  { %v2802_v6 = vpop.permute.xlu0 %2801 }
 0x355   :  { %v2804_v7 = vunpack.i.h.bf16 %v2802_v6  ;;  %v2803_v8 = vunpack.i.l.bf16 %v2802_v6  ;;  %v3541_v6 = vrot.slane %v621_v60, %v3466_v20 }
 0x357   :  { %v2520_v9 = vpack.c.bf16 %v2804_v7, %v2803_v8 }
 0x358   :  { %v2807_v10 = vpop.permute.xlu1 %2806 }
 0x359   :  { %v2809_v11 = vunpack.i.h.bf16 %v2807_v10  ;;  %v2808_v12 = vunpack.i.l.bf16 %v2807_v10  ;;  %2521 = vmatpush3.bf16.msra.mxu0 %v2520_v9 }
 0x35a   :  { %2522 = vmatprep.subr.bf16.mxu0 %v3120_v49 }
 0x35b   :  { %v2523_v13 = vpack.c.bf16 %v2809_v11, %v2808_v12  ;;  %v3546_v12 = vrot.slane %v621_v60, %v3490_v33 }
 0x35c   :  { %v2812_v14 = vpop.permute.xlu0 %2811 }
 0x35d   :  { %v2814_v15 = vunpack.i.h.bf16 %v2812_v14  ;;  %v2813_v16 = vunpack.i.l.bf16 %v2812_v14  ;;  %2524 = vmatpush3.bf16.msra.mxu0 %v2523_v13  ;;  %v3549_v13 = vrot.slane %v621_v60, %v3473_v24 }
 0x35e   :  { %2525 = vmatprep.subr.bf16.mxu0 %v3120_v49 }
 0x35f   :  { %v2526_v17 = vpack.c.bf16 %v2814_v15, %v2813_v16  ;;  %v3553_v16 = vrot.slane %v621_v60, %v3459_v63 }
 0x360   :  { %v2817_v18 = vpop.permute.xlu1 %2816 }
 0x361   :  { %v2819_v19 = vunpack.i.h.bf16 %v2817_v18  ;;  %v2818_v21 = vunpack.i.l.bf16 %v2817_v18  ;;  %2527 = vmatpush3.bf16.msra.mxu0 %v2526_v17  ;;  %v443_v25 = vpop.permute.xlu0 %442 }
 0x362   :  { %2528 = vmatprep.subr.bf16.mxu0 %v3120_v49 }
 0x363   :  { %v2529_v22 = vpack.c.bf16 %v2819_v19, %v2818_v21  ;;  %v3558_v19 = vrot.slane %v621_v60, %v3478_v26 }
 0x365   :  { %2530 = vmatpush3.bf16.msra.mxu0 %v2529_v22 }
 0x366   :  { %2456 = vmatprep.subr.mxu0 %v4398_v0 }
 0x369   :  { %2457 = vmatpush3.msra.mxu0 %v443_v25 }
 0x36a   :  { %2459 = vmatmul.mubr.msk.f32.vlgmr.msra.gmra.mrb[0].mxu0 %vm453_vm5, %v308_v23  ;;  %2549 = vmatprep.subr.bf16.mxu0 %v3120_v49 }
 0x36b   :  { %2511 = vmatprep.mubr.msk.f32.mxu0 %vm3122_vm4, %v4398_v0 }
 0x371   :  { %v423_v35 = vpop.permute.xlu1 %422 }
 0x43d   :  { %v523_v36 = vpop.f32.mrb[0].mxu0 }
 0x43e   :  { %v524_v37 = vadd.f32 %v523_v36, %v423_v35  ;;  %v2460_v38 = vpop.f32.mrb[1].mxu0 }
 0x440   :  { %v527_v39 = vmul.f32 %v524_v37, %v524_v37 }
 0x442   :  { %v528_v40 = vsel %vm292_vm1, %v527_v39, 0.0 }
 0x443   :  { %v529_v41 = vrot.slane %v528_v40, 4 }
 0x445   :  { %v530_v42 = vadd.f32 %v529_v41, %v528_v40 }
 0x447   :  { %v531_v43 = vrot.slane %v530_v42, 2 }
 0x449   :  { %v532_v44 = vadd.f32 %v531_v43, %v530_v42 }
 0x44b   :  { %v533_v45 = vrot.slane %v532_v44, 1 }
 0x44d   :  { %v534_v46 = vadd.f32 %v533_v45, %v532_v44 }
 0x44f   :  { %v535_v47 = vmul.f32 0.125, %v534_v46 }
 0x451   :  { %v536_v48 = vadd.f32 1e-08, %v535_v47 }
 0x453   :  { %2823 = vrsqrt.f32 %v536_v48 }
 0x45d   :  { %v2824_v50 = vpop.eup %2823 }
 0x45e   :  { %v538_v51 = vmul.f32 %v2824_v50, %v524_v37 }
 0x460   :  { %v540_v52 = vmul.f32 0.01, %v538_v51  ;;  %vm539_vm6 = vcmp.ge.f32.partialorder %v538_v51, 0.0 }
 0x462   :  { %v541_v53 = vsel %vm539_vm6, %v538_v51, %v540_v52 }
 0x463   :  { %2470 = vmatmul.mubr.msk.f32.vlgmr.msra.gmra.mrb[0].mxu1 %vm292_vm1, %v541_v53  ;;  %v777_v53 = vld [vmem:[%s4378_s11] sm:$0xff]  ;;  %s3129_s11 = smov 17  }
 0x464   :  { %2490 = vmatprep.mubr.msk.f32.mxu1 %vm3122_vm4, %v4398_v0 }
 0x536   :  { %v615_v54 = vpop.f32.mrb[0].mxu1 }
 0x537   :  { %630 = vrot.lane.b32.xlu1 %v615_v54, %s3091_s29  ;;  %623 = vrot.lane.b32.xlu0 %v615_v54, %s3124_s30  ;;  %v2471_v55 = vpop.f32.mrb[1].mxu1  ;;  %v655_v17 = vmul.f32 %v3546_v12, %v615_v54 }
 0x53b   :  { %644 = vrot.lane.b32.xlu1 %v615_v54, %s3110_s7  ;;  %637 = vrot.lane.b32.xlu0 %v615_v54, %s3125_s14 }
 0x53f   :  { %663 = vrot.lane.b32.xlu1 %v615_v54, %s3126_s23  ;;  %656 = vrot.lane.b32.xlu0 %v615_v54, %s3113_s24 }
 0x543   :  { %677 = vrot.lane.b32.xlu1 %v615_v54, %s3127_s4  ;;  %670 = vrot.lane.b32.xlu0 %v615_v54, %s3128_s2 }
 0x547   :  { %686 = vperm.xlu0 %2799, %v620_v57  }
 0x5a9   :  { %v631_v1 = vpop.permute.xlu1 %630  ;;  %v624_v2 = vpop.permute.xlu0 %623 }
 0x5aa   :  { %v636_v3 = vmul.f32 %v3530_v61, %v631_v1  ;;  %v629_v4 = vmul.f32 %v3533_v62, %v624_v2 }
 0x5ac   :  { %v2538_v7 = vpack.c.bf16 %v636_v3, %v629_v4 }
 0x5ad   :  { %v645_v8 = vpop.permute.xlu1 %644  ;;  %v638_v9 = vpop.permute.xlu0 %637 }
 0x5ae   :  { %v650_v10 = vmul.f32 %v3538_v5, %v645_v8  ;;  %v643_v11 = vmul.f32 %v3541_v6, %v638_v9  ;;  %2539 = vmatpush3.bf16.msra.mxu1 %v2538_v7 }
 0x5af   :  { %2540 = vmatprep.subr.bf16.mxu1 %v3120_v49 }
 0x5b0   :  { %v2541_v14 = vpack.c.bf16 %v650_v10, %v643_v11 }
 0x5b1   :  { %v657_v15 = vpop.permute.xlu0 %656  ;;  %v664_v21 = vpop.permute.xlu1 %663 }
 0x5b2   :  { %v662_v18 = vmul.f32 %v3549_v13, %v657_v15  ;;  %2542 = vmatpush3.bf16.msra.mxu1 %v2541_v14  ;;  %v669_v25 = vmul.f32 %v3553_v16, %v664_v21  ;;  %v898_v21 = vld [vmem:[#allocation16 + $0x18] sm:$0xff] }
 0x5b3   :  { %2543 = vmatprep.subr.bf16.mxu1 %v3120_v49 }
 0x5b4   :  { %v2544_v22 = vpack.c.bf16 %v662_v18, %v655_v17  ;;  %v896_v18 = vld [vmem:[#allocation16 + $0x8] sm:$0xff] }
 0x5b5   :  { %v671_v23 = vpop.permute.xlu0 %670  ;;  %v678_v31 = vpop.permute.xlu1 %677 }
 0x5b6   :  { %v676_v27 = vmul.f32 %v3558_v19, %v671_v23  ;;  %2545 = vmatpush3.bf16.msra.mxu1 %v2544_v22  ;;  %v683_v32 = vmul.f32 %v3564_v30, %v678_v31  ;;  %v902_v22 = vld [vmem:[#allocation16 + $0x38] sm:$0xff]  ;;  %v899_v23 = vld [vmem:[#allocation16 + $0x20] sm:$0xff] }
 0x5b7   :  { %2546 = vmatprep.subr.bf16.mxu1 %v3120_v49 }
 0x5b8   :  { %v2547_v29 = vpack.c.bf16 %v676_v27, %v669_v25  ;;  %v3598_v25 = vpack.c.bf16 %v902_v22, %v898_v21  ;;  %v929_v22 = vld [vmem:[#allocation16 + $0x110] sm:$0xff] }
 0x5ba   :  { %2548 = vmatpush3.bf16.msra.mxu1 %v2547_v29  ;;  %4455 = vst [vmem:[#allocation29_spill] sm:$0xff] %v3598_v25  ;;  %v897_v29 = vld [vmem:[#allocation16 + $0x10] sm:$0xff] }
 0x5bb   :  { %2488 = vmatprep.subr.mxu1 %v4398_v0 }
 0x5be   :  { %2489 = vmatpush3.msra.mxu1 %v683_v32  ;;  %v904_v32 = vld [vmem:[#allocation16 + $0x48] sm:$0xff] }
 0x5bf   :  { %2491 = vmatmul.mubr.msk.f32.vlgmr.msra.gmra.mrb[2].mxu1 %vm453_vm5, %v619_v34  ;;  %v908_v34 = vld [vmem:[#allocation16 + $0x68] sm:$0xff] }
 0x5c0   :  { %1023 = vmatprep.mubr.f32.mxu1 %v4398_v0 }
 0x5c6   :  { %v687_v35 = vpop.permute.xlu0 %686 }
 0x692   :  { %v758_v36 = vpop.f32.mrb[2].mxu1 }
 0x693   :  { %v759_v37 = vadd.f32 %v758_v36, %v687_v35  ;;  %v2492_v38 = vpop.f32.mrb[3].mxu1  ;;  %v906_v35 = vld [vmem:[#allocation16 + $0x58] sm:$0xff]  ;;  %v3608_v36 = vpack.c.bf16 %v908_v34, %v904_v32 }
 0x694   :  { %v903_v38 = vld [vmem:[#allocation16 + $0x40] sm:$0xff]  ;;  %v938_v32 = vld [vmem:[#allocation16 + $0x158] sm:$0xff] }
 0x695   :  { %v762_v39 = vmul.f32 %v759_v37, %v759_v37  ;;  %4458 = vst [vmem:[#allocation32_spill] sm:$0xff] %v3608_v36 }
 0x697   :  { %v763_v40 = vrot.slane %v762_v39, 4 }
 0x699   :  { %v764_v41 = vadd.f32 %v763_v40, %v762_v39  ;;  %v907_v39 = vld [vmem:[#allocation16 + $0x60] sm:$0xff] }
 0x69b   :  { %v765_v42 = vrot.slane %v764_v41, 2 }
 0x69d   :  { %v766_v43 = vadd.f32 %v765_v42, %v764_v41  ;;  %v3612_v41 = vpack.c.bf16 %v907_v39, %v903_v38  ;;  %v905_v42 = vld [vmem:[#allocation16 + $0x50] sm:$0xff]  ;;  %v939_v38 = vld [vmem:[#allocation16 + $0x160] sm:$0xff] }
 0x69f   :  { %v767_v44 = vrot.slane %v766_v43, 1  ;;  %4460 = vst [vmem:[#allocation34_spill] sm:$0xff] %v3612_v41 }
 0x6a1   :  { %v768_v45 = vadd.f32 %v767_v44, %v766_v43  ;;  %v909_v43 = vld [vmem:[#allocation16 + $0x70] sm:$0xff] }
 0x6a2   :  { %v3615_v44 = vpack.c.bf16 %v909_v43, %v905_v42  ;;  %v937_v43 = vld [vmem:[#allocation16 + $0x150] sm:$0xff] }
 0x6a3   :  { %v769_v46 = vmul.f32 0.125, %v768_v45  ;;  %v912_v45 = vld [vmem:[#allocation16 + $0x88] sm:$0xff] }
 0x6a4   :  { %4461 = vst [vmem:[#allocation35_spill] sm:$0xff] %v3615_v44 }
 0x6a5   :  { %v770_v47 = vadd.f32 1e-08, %v769_v46  ;;  %v916_v46 = vld [vmem:[#allocation16 + $0xa8] sm:$0xff] }
 0x6a7   :  { %2825 = vrsqrt.f32 %v770_v47  ;;  %v914_v47 = vld [vmem:[#allocation16 + $0x98] sm:$0xff] }
 0x6b1   :  { %v2826_v48 = vpop.eup %2825 }
 0x6b2   :  { %v772_v50 = vmul.f32 %v2826_v48, %v759_v37  ;;  %v910_v37 = vld [vmem:[#allocation16 + $0x78] sm:$0xff]  ;;  %v3620_v48 = vpack.c.bf16 %v916_v46, %v912_v45  ;;  %v941_v45 = vld [vmem:[#allocation16 + $0x170] sm:$0xff] }
 0x6b3   :  { %v3610_v40 = vpack.c.bf16 %v910_v37, %v906_v35  ;;  %v942_v35 = vld [vmem:[#allocation16 + $0x178] sm:$0xff]  ;;  %v935_v37 = vld [vmem:[#allocation16 + $0x140] sm:$0xff]  ;;  %v3663_v46 = vpack.c.bf16 %v941_v45, %v937_v43 }
 0x6b4   :  { %vm773_vm7 = vcmp.ge.f32.partialorder %v772_v50, 0.0  ;;  %v774_v51 = vmul.f32 0.01, %v772_v50  ;;  %4462 = vst [vmem:[#allocation36_spill] sm:$0xff] %v3620_v48  ;;  %v3658_v39 = vpack.c.bf16 %v942_v35, %v938_v32  ;;  %v3660_v42 = vpack.c.bf16 %v939_v38, %v935_v37 }
 0x6b5   :  { %4459 = vst [vmem:[#allocation33_spill] sm:$0xff] %v3610_v40  ;;  %4477 = vst [vmem:[#allocation51_spill] sm:$0xff] %v3663_v46 }
 0x6b6   :  { %v775_v52 = vsel %vm773_vm7, %v772_v50, %v774_v51  ;;  %v918_v50 = vld [vmem:[#allocation16 + $0xb8] sm:$0xff]  ;;  %v911_v51 = vld [vmem:[#allocation16 + $0x80] sm:$0xff]  ;;  %4475 = vst [vmem:[#allocation49_spill] sm:$0xff] %v3658_v39  ;;  %4476 = vst [vmem:[#allocation50_spill] sm:$0xff] %v3660_v42  ;;  %vm1951_vm7 = vcmask 64512  }
 0x6b7   :  { %781 = vrot.lane.b32.xlu0 %v775_v52, %s3091_s29  ;;  %778 = vrot.lane.b32.xlu1 %v775_v52, %s3124_s30  ;;  %v790_v10 = vmul.f32 %v775_v52, %v3546_v12  ;;  %s3130_s29 = smov 113  }
 0x6bb   :  { %787 = vrot.lane.b32.xlu0 %v775_v52, %s3110_s7  ;;  %784 = vrot.lane.b32.xlu1 %v775_v52, %s3125_s14 }
 0x6bf   :  { %794 = vrot.lane.b32.xlu0 %v775_v52, %s3126_s23  ;;  %791 = vrot.lane.b32.xlu1 %v775_v52, %s3113_s24 }
 0x6c3   :  { %800 = vrot.lane.b32.xlu0 %v775_v52, %s3127_s4  ;;  %797 = vrot.lane.b32.xlu1 %v775_v52, %s3128_s2  ;;  %v915_v52 = vld [vmem:[#allocation16 + $0xa0] sm:$0xff] }
 0x6c7   :  { %805 = vperm.xlu1 %2820, %v777_v53   ;;  %v3622_v53 = vpack.c.bf16 %v918_v50, %v914_v47  ;;  %v944_v47 = vld [vmem:[#allocation16 + $0x188] sm:$0xff] }
 0x6c8   :  { %v948_v50 = vld [vmem:[#allocation16 + $0x1a8] sm:$0xff] }
 0x6c9   :  { %4463 = vst [vmem:[#allocation37_spill] sm:$0xff] %v3622_v53 }
 0x729   :  { %v782_v54 = vpop.permute.xlu0 %781  ;;  %v779_v55 = vpop.permute.xlu1 %778 }
 0x72a   :  { %v783_v57 = vmul.f32 %v782_v54, %v3530_v61  ;;  %v780_v60 = vmul.f32 %v779_v55, %v3533_v62  ;;  %v3624_v54 = vpack.c.bf16 %v915_v52, %v911_v51  ;;  %v913_v55 = vld [vmem:[#allocation16 + $0x90] sm:$0xff]  ;;  %v946_v51 = vld [vmem:[#allocation16 + $0x198] sm:$0xff]  ;;  %v3668_v52 = vpack.c.bf16 %v948_v50, %v944_v47 }
 0x72c   :  { %v2550_v1 = vpack.c.bf16 %v783_v57, %v780_v60  ;;  %4464 = vst [vmem:[#allocation38_spill] sm:$0xff] %v3624_v54  ;;  %v917_v57 = vld [vmem:[#allocation16 + $0xb0] sm:$0xff]  ;;  %4478 = vst [vmem:[#allocation52_spill] sm:$0xff] %v3668_v52 }
 0x72d   :  { %v788_v2 = vpop.permute.xlu0 %787  ;;  %v785_v3 = vpop.permute.xlu1 %784  ;;  %v3627_v60 = vpack.c.bf16 %v917_v57, %v913_v55  ;;  %v950_v55 = vld [vmem:[#allocation16 + $0x1b8] sm:$0xff]  ;;  %v943_v57 = vld [vmem:[#allocation16 + $0x180] sm:$0xff] }
 0x72e   :  { %v789_v4 = vmul.f32 %v788_v2, %v3538_v5  ;;  %v786_v7 = vmul.f32 %v785_v3, %v3541_v6  ;;  %2551 = vmatpush3.bf16.msra.mxu0 %v2550_v1  ;;  %v920_v1 = vld [vmem:[#allocation16 + $0xc8] sm:$0xff]  ;;  %v922_v3 = vld [vmem:[#allocation16 + $0xd8] sm:$0xff] }
 0x72f   :  { %2552 = vmatprep.subr.bf16.mxu0 %v3120_v49  ;;  %4465 = vst [vmem:[#allocation39_spill] sm:$0xff] %v3627_v60  ;;  %v924_v2 = vld [vmem:[#allocation16 + $0xe8] sm:$0xff] }
 0x730   :  { %v2553_v8 = vpack.c.bf16 %v789_v4, %v786_v7  ;;  %v3632_v4 = vpack.c.bf16 %v924_v2, %v920_v1  ;;  %v926_v7 = vld [vmem:[#allocation16 + $0xf8] sm:$0xff]  ;;  %v947_v1 = vld [vmem:[#allocation16 + $0x1a0] sm:$0xff]  ;;  %v3670_v2 = vpack.c.bf16 %v950_v55, %v946_v51 }
 0x731   :  { %v792_v9 = vpop.permute.xlu1 %791  ;;  %v795_v61 = vpop.permute.xlu0 %794 }
 0x732   :  { %v793_v11 = vmul.f32 %v792_v9, %v3549_v13  ;;  %2554 = vmatpush3.bf16.msra.mxu0 %v2553_v8  ;;  %v796_v15 = vmul.f32 %v795_v61, %v3553_v16  ;;  %v776_v13 = vld [vmem:[#allocation13] sm:$0xff]  ;;  %4466 = vst [vmem:[#allocation40_spill] sm:$0xff] %v3632_v4  ;;  %v919_v8 = vld [vmem:[#allocation16 + $0xc0] sm:$0xff]  ;;  %v921_v61 = vld [vmem:[#allocation16 + $0xd0] sm:$0xff] }
 0x733   :  { %2555 = vmatprep.subr.bf16.mxu0 %v3120_v49  ;;  %v900_v16 = vld [vmem:[#allocation16 + $0x28] sm:$0xff]  ;;  %v923_v9 = vld [vmem:[#allocation16 + $0xe0] sm:$0xff]  ;;  %4479 = vst [vmem:[#allocation53_spill] sm:$0xff] %v3670_v2 }
 0x734   :  { %v2556_v62 = vpack.c.bf16 %v793_v11, %v790_v10  ;;  %v3634_v10 = vpack.c.bf16 %v926_v7, %v922_v3  ;;  %v3636_v11 = vpack.c.bf16 %v923_v9, %v919_v8  ;;  %v3672_v3 = vpack.c.bf16 %v947_v1, %v943_v57  ;;  %v945_v7 = vld [vmem:[#allocation16 + $0x190] sm:$0xff] }
 0x735   :  { %v798_v14 = vpop.permute.xlu1 %797  ;;  %v801_v17 = vpop.permute.xlu0 %800  ;;  %v949_v8 = vld [vmem:[#allocation16 + $0x1b0] sm:$0xff] }
 0x736   :  { %v799_v5 = vmul.f32 %v798_v14, %v3558_v19  ;;  %2557 = vmatpush3.bf16.msra.mxu0 %v2556_v62  ;;  %v802_v12 = vmul.f32 %v3564_v30, %v801_v17  ;;  %v3596_v19 = vpack.c.bf16 %v900_v16, %v896_v18  ;;  %v901_v30 = vld [vmem:[#allocation16 + $0x30] sm:$0xff]  ;;  %4467 = vst [vmem:[#allocation41_spill] sm:$0xff] %v3634_v10  ;;  %4468 = vst [vmem:[#allocation42_spill] sm:$0xff] %v3636_v11  ;;  %v931_v18 = vld [vmem:[#allocation16 + $0x120] sm:$0xff] }
 0x737   :  { %2558 = vmatprep.subr.bf16.mxu0 %v3120_v49  ;;  %v895_v49 = vld [vmem:[#allocation16] sm:$0xff]  ;;  %v3603_v31 = vpack.c.bf16 %v901_v30, %v897_v29  ;;  %v925_v62 = vld [vmem:[#allocation16 + $0xf0] sm:$0xff]  ;;  %v936_v29 = vld [vmem:[#allocation16 + $0x148] sm:$0xff]  ;;  %4480 = vst [vmem:[#allocation54_spill] sm:$0xff] %v3672_v3  ;;  %v3675_v9 = vpack.c.bf16 %v949_v8, %v945_v7 }
 0x738   :  { %v2559_v6 = vpack.c.bf16 %v799_v5, %v796_v15  ;;  %4454 = vst [vmem:[#allocation28_spill] sm:$0xff] %v3596_v19  ;;  %v3600_v27 = vpack.c.bf16 %v899_v23, %v895_v49  ;;  %2562 = vmatprep.subr.bf16.mxu1 %v3596_v19  ;;  %v3639_v14 = vpack.c.bf16 %v925_v62, %v921_v61  ;;  %v928_v15 = vld [vmem:[#allocation16 + $0x108] sm:$0xff]  ;;  %v933_v49 = vld [vmem:[#allocation16 + $0x130] sm:$0xff] }
 0x739   :  { %4457 = vst [vmem:[#allocation31_spill] sm:$0xff] %v3603_v31  ;;  %v932_v5 = vld [vmem:[#allocation16 + $0x128] sm:$0xff]  ;;  %v3651_v23 = vpack.c.bf16 %v933_v49, %v929_v22  ;;  %4481 = vst [vmem:[#allocation55_spill] sm:$0xff] %v3675_v9  ;;  %v953_v49 = vld [vmem:[#allocation16 + $0x1d0] sm:$0xff] }
 0x73a   :  { %2560 = vmatpush3.bf16.msra.mxu0 %v2559_v6  ;;  %4456 = vst [vmem:[#allocation30_spill] sm:$0xff] %v3600_v27  ;;  %2564 = vmatpush1.bf16.msra.mxu1 %v3600_v27  ;;  %4469 = vst [vmem:[#allocation43_spill] sm:$0xff] %v3639_v14  ;;  %v930_v6 = vld [vmem:[#allocation16 + $0x118] sm:$0xff]  ;;  %v3644_v17 = vpack.c.bf16 %v932_v5, %v928_v15  ;;  %v940_v30 = vld [vmem:[#allocation16 + $0x168] sm:$0xff] }
 0x73b   :  { %2509 = vmatprep.subr.mxu0 %v4398_v0  ;;  %2566 = vmatprep.subr.bf16.mxu1 %v3608_v36  ;;  %4473 = vst [vmem:[#allocation47_spill] sm:$0xff] %v3651_v23  ;;  %v3656_v34 = vpack.c.bf16 %v940_v30, %v936_v29  ;;  %v952_v61 = vld [vmem:[#allocation16 + $0x1c8] sm:$0xff]  ;;  %v954_v15 = vld [vmem:[#allocation16 + $0x1d8] sm:$0xff]  ;;  %v957_v29 = vld [vmem:[#allocation16 + $0x1f0] sm:$0xff] }
 0x73c   :  { %4470 = vst [vmem:[#allocation44_spill] sm:$0xff] %v3644_v17  ;;  %v956_v62 = vld [vmem:[#allocation16 + $0x1e8] sm:$0xff]  ;;  %v3687_v30 = vpack.c.bf16 %v957_v29, %v953_v49 }
 0x73d   :  { %4474 = vst [vmem:[#allocation48_spill] sm:$0xff] %v3656_v34  ;;  %v3680_v5 = vpack.c.bf16 %v956_v62, %v952_v61  ;;  %v1102_v29 = vld [vmem:[%s4382_s15] sm:$0xff]  ;;  %s3134_s15 = smov [#allocation20]  }
 0x73e   :  { %2510 = vmatpush3.msra.mxu0 %v802_v12  ;;  %2568 = vmatpush1.bf16.msra.mxu1 %v3612_v41  ;;  %v934_v12 = vld [vmem:[#allocation16 + $0x138] sm:$0xff]  ;;  %4485 = vst [vmem:[#allocation59_spill] sm:$0xff] %v3687_v30  ;;  %s2350_s5 = sshll.u32 %s3134_s15, 4  ;;  %s2351_s5 = int_to_ptr.vmem [resolvable:$true] %s2350_s5 }
 0x73f   :  { %2512 = vmatmul.mubr.msk.f32.vlgmr.msra.gmra.mrb[2].mxu0 %vm453_vm5, %v776_v13  ;;  %2594 = vmatprep.subr.bf16.mxu0 %v3598_v25  ;;  %v927_v13 = vld [vmem:[#allocation16 + $0x100] sm:$0xff]  ;;  %v3646_v16 = vpack.c.bf16 %v934_v12, %v930_v6  ;;  %4482 = vst [vmem:[#allocation56_spill] sm:$0xff] %v3680_v5  ;;  %v958_v6 = vld [vmem:[#allocation16 + $0x1f8] sm:$0xff]  ;;  %s3053_s27 = scalar_lea.vmem %s2351_s5, 256  ;;  %p3058_p6 = scmp.lt.s32.totalorder %s2351_s5, %s2351_s5 }
 0x740   :  { %1094 = vmatprep.mubr.f32.mxu0 %v4398_v0  ;;  %2596 = vmatpush1.bf16.msra.mxu0 %v3603_v31  ;;  %v3648_v21 = vpack.c.bf16 %v931_v18, %v927_v13  ;;  %v951_v12 = vld [vmem:[#allocation16 + $0x1c0] sm:$0xff]  ;;  %v3682_v18 = vpack.c.bf16 %v958_v6, %v954_v15  ;;  %p3054_p5 = scmp.ne.s32.totalorder %s2351_s5, %s3053_s27  ;;  %p3059_p7 = scmp.lt.s32.totalorder %s3053_s27, %s3053_s27 }
 0x741   :  { %2598 = vmatprep.subr.bf16.mxu0 %v3610_v40  ;;  %2570 = vmatprep.subr.bf16.mxu1 %v3620_v48  ;;  %4471 = vst [vmem:[#allocation45_spill] sm:$0xff] %v3646_v16  ;;  %v955_v13 = vld [vmem:[#allocation16 + $0x1e0] sm:$0xff] }
 0x742   :  { %2572 = vmatpush1.bf16.msra.mxu1 %v3624_v54  ;;  %4472 = vst [vmem:[#allocation46_spill] sm:$0xff] %v3648_v21  ;;  %4483 = vst [vmem:[#allocation57_spill] sm:$0xff] %v3682_v18  ;;  %v3684_v22 = vpack.c.bf16 %v955_v13, %v951_v12  ;;  %p3060_p8 = por %p3059_p7, %p3058_p6 }
 0x743   :  { %2574 = vmatprep.subr.bf16.mxu1 %v3632_v4 }
 0x744   :  { %2600 = vmatpush1.bf16.msra.mxu0 %v3615_v44  ;;  %4484 = vst [vmem:[#allocation58_spill] sm:$0xff] %v3684_v22  ;;  %p3061_p9 = pnand %p3060_p8, %p3054_p5 }
 0x745   :  { %2602 = vmatprep.subr.bf16.mxu0 %v3622_v53 }
 0x746   :  { %2576 = vmatpush1.bf16.msra.mxu1 %v3636_v11  ;;  %v806_v32 = vpop.permute.xlu1 %805 }
 0x747   :  { %2578 = vmatprep.subr.bf16.mxu1 %v3644_v17 }
 0x748   :  { %2604 = vmatpush1.bf16.msra.mxu0 %v3627_v60 }
 0x749   :  { %2606 = vmatprep.subr.bf16.mxu0 %v3634_v10 }
 0x74a   :  { %2580 = vmatpush1.bf16.msra.mxu1 %v3648_v21 }
 0x74b   :  { %2582 = vmatprep.subr.bf16.mxu1 %v3656_v34 }
 0x74c   :  { %2608 = vmatpush1.bf16.msra.mxu0 %v3639_v14 }
 0x74d   :  { %2610 = vmatprep.subr.bf16.mxu0 %v3646_v16 }
 0x74e   :  { %2584 = vmatpush1.bf16.msra.mxu1 %v3660_v42 }
 0x74f   :  { %2586 = vmatprep.subr.bf16.mxu1 %v3668_v52 }
 0x750   :  { %2612 = vmatpush1.bf16.msra.mxu0 %v3651_v23 }
 0x751   :  { %2614 = vmatprep.subr.bf16.mxu0 %v3658_v39 }
 0x752   :  { %2588 = vmatpush1.bf16.msra.mxu1 %v3672_v3 }
 0x753   :  { %2590 = vmatprep.subr.bf16.mxu1 %v3680_v5 }
 0x754   :  { %2616 = vmatpush1.bf16.msra.mxu0 %v3663_v46 }
 0x755   :  { %2618 = vmatprep.subr.bf16.mxu0 %v3670_v2 }
 0x756   :  { %2592 = vmatpush1.bf16.msra.mxu1 %v3684_v22  ;;  %v3815_v22 = vld [vmem:[%s4385_s18] sm:$0xff] }
 0x757   :  { %v3922_v11 = vrot.slane %v3815_v22, %v3450_v59 }
 0x758   :  { %2620 = vmatpush1.bf16.msra.mxu0 %v3675_v9 }
 0x759   :  { %2622 = vmatprep.subr.bf16.mxu0 %v3682_v18 }
 0x75c   :  { %2624 = vmatpush1.bf16.msra.mxu0 %v3687_v30 }
 0x812   :  { %v877_v35 = vpop.f32.mrb[2].mxu0 }
 0x813   :  { %v878_v37 = vadd.f32 %v877_v35, %v806_v32  ;;  %v2513_v38 = vpop.f32.mrb[3].mxu0 }
 0x815   :  { %v881_v43 = vmul.f32 %v878_v37, %v878_v37 }
 0x817   :  { %v882_v45 = vrot.slane %v881_v43, 4 }
 0x819   :  { %v883_v47 = vadd.f32 %v882_v45, %v881_v43 }
 0x81b   :  { %v884_v50 = vrot.slane %v883_v47, 2 }
 0x81d   :  { %v885_v51 = vadd.f32 %v884_v50, %v883_v47  ;;  %v3780_v47 = vand.u32 127, %v319_v56 }
 0x81f   :  { %v886_v55 = vrot.slane %v885_v51, 1  ;;  %vm1121_vm9 = vcmp.lt.s32.totalorder %v3780_v47, 17  ;;  %vm1154_vm10 = vcmp.lt.s32.totalorder %v3780_v47, 16  ;;  %vm1187_vm11 = vcmp.lt.s32.totalorder %v3780_v47, 15 }
 0x820   :  { %vm1220_vm12 = vcmp.lt.s32.totalorder %v3780_v47, 1  ;;  %vm1273_vm13 = vcmp.lt.s32.totalorder %v3780_v47, 127  ;;  %vm1306_vm14 = vcmp.lt.s32.totalorder %v3780_v47, 113  ;;  %vm1339_vm15 = vcmp.lt.s32.totalorder %v3780_v47, 112 }
 0x821   :  { %v887_v57 = vadd.f32 %v886_v55, %v885_v51  ;;  %v3786_v55 = vld [vmem:[%s4385_s18 + $0x8] sm:$0xff]  ;;  %vm1372_vm0 = vcmp.lt.s32.totalorder %v3780_v47, 111  ;;  %v4496_v47 = vld [vmem:[#allocation28_spill] sm:$0xff] }
 0x823   :  { %v888_v1 = vmul.f32 0.125, %v887_v57  ;;  %v3790_v57 = vrot.slane %v3786_v55, %v3484_v28 }
 0x825   :  { %v889_v7 = vadd.f32 1e-08, %v888_v1  ;;  %v3795_v1 = vrot.slane %v3786_v55, %v3447_v58 }
 0x827   :  { %2827 = vrsqrt.f32 %v889_v7 }
 0x831   :  { %v2828_v8 = vpop.eup %2827 }
 0x832   :  { %v891_v61 = vmul.f32 %v2828_v8, %v878_v37 }
 0x834   :  { %v893_v62 = vmul.f32 0.01, %v891_v61  ;;  %vm892_vm8 = vcmp.ge.f32.partialorder %v891_v61, 0.0 }
 0x836   :  { %v3692_v15 = vsel %vm892_vm8, %v891_v61, %v893_v62 }
 0x837   :  { %4486 = vst [vmem:[#allocation60_spill] sm:$0xff] %v3692_v15  ;;  %1024 = vmatmul.mubr.f32.vlgmr.msra.gmra.mrb[4].mxu1 %v3692_v15  ;;  %1095 = vmatmul.mubr.f32.vlgmr.msra.gmra.mrb[4].mxu0 %v3692_v15 }
 0x838   :  { %1469 = vmatprep.mubr.f32.mxu1 %v4398_v0  ;;  %1540 = vmatprep.mubr.f32.mxu0 %v4398_v0  ;;  %v3808_v0 = vld [vmem:[%s4385_s18 + $0x10] sm:$0xff] }
 0x839   :  { %v3819_v9 = vrot.slane %v3808_v0, %v3447_v58  ;;  %v3846_v52 = vrot.slane %v3808_v0, %v3484_v28 }
 0x90a   :  { %v3698_v6 = vpop.f32.mrb[4].mxu1  ;;  %v3700_v12 = vpop.f32.mrb[4].mxu0 }
 0x90b   :  { %1111 = vrot.lane.b32.xlu0 %v3698_v6, %s3129_s11  ;;  %v3704_v13 = vpop.f32.mrb[5].mxu1  ;;  %1269 = vrot.lane.b32.xlu1 %v3700_v12, %s3113_s24  ;;  %v3708_v49 = vpop.f32.mrb[5].mxu0 }
 0x90f   :  { %1146 = vrot.lane.b32.xlu0 %v3698_v6, %s3104_s25  ;;  %1302 = vrot.lane.b32.xlu1 %v3700_v12, %s3130_s29 }
 0x913   :  { %1335 = vrot.lane.b32.xlu1 %v3700_v12, %s3131_s1  ;;  %1115 = vrot.lane.b32.xlu0 %v3700_v12, %s3129_s11 }
 0x917   :  { %1113 = vrot.lane.b32.xlu1 %v3704_v13, %s3129_s11  ;;  %1150 = vrot.lane.b32.xlu0 %v3700_v12, %s3104_s25 }
 0x91b   :  { %1148 = vrot.lane.b32.xlu1 %v3704_v13, %s3104_s25  ;;  %1179 = vrot.lane.b32.xlu0 %v3698_v6, %s3132_s28 }
 0x91f   :  { %1212 = vrot.lane.b32.xlu0 %v3698_v6, %s3110_s7  ;;  %1117 = vrot.lane.b32.xlu1 %v3708_v49, %s3129_s11 }
 0x923   :  { %1183 = vrot.lane.b32.xlu0 %v3700_v12, %s3132_s28  ;;  %1152 = vrot.lane.b32.xlu1 %v3708_v49, %s3104_s25 }
 0x927   :  { %1216 = vrot.lane.b32.xlu0 %v3700_v12, %s3110_s7  ;;  %1181 = vrot.lane.b32.xlu1 %v3704_v13, %s3132_s28 }
 0x92b   :  { %1265 = vrot.lane.b32.xlu0 %v3698_v6, %s3113_s24  ;;  %1214 = vrot.lane.b32.xlu1 %v3704_v13, %s3110_s7 }
 0x92f   :  { %1298 = vrot.lane.b32.xlu0 %v3698_v6, %s3130_s29  ;;  %1185 = vrot.lane.b32.xlu1 %v3708_v49, %s3132_s28 }
 0x933   :  { %1331 = vrot.lane.b32.xlu0 %v3698_v6, %s3131_s1  ;;  %1218 = vrot.lane.b32.xlu1 %v3708_v49, %s3110_s7 }
 0x937   :  { %1267 = vrot.lane.b32.xlu0 %v3704_v13, %s3113_s24  ;;  %1271 = vrot.lane.b32.xlu1 %v3708_v49, %s3113_s24 }
 0x93b   :  { %1300 = vrot.lane.b32.xlu0 %v3704_v13, %s3130_s29  ;;  %1304 = vrot.lane.b32.xlu1 %v3708_v49, %s3130_s29 }
 0x93f   :  { %1333 = vrot.lane.b32.xlu0 %v3704_v13, %s3131_s1  ;;  %1337 = vrot.lane.b32.xlu1 %v3708_v49, %s3131_s1 }
 0x943   :  { %1366 = vrot.lane.b32.xlu0 %v3704_v13, %s3133_s21  ;;  %1368 = vrot.lane.b32.xlu1 %v3700_v12, %s3133_s21 }
 0x947   :  { %1364 = vrot.lane.b32.xlu0 %v3698_v6, %s3133_s21  ;;  %1370 = vrot.lane.b32.xlu1 %v3708_v49, %s3133_s21 }
 0x94b   :  { %1399 = vperm.xlu0 %2799, %v1102_v29  }
 0x97d   :  { %v1112_v32 = vpop.permute.xlu0 %1111  ;;  %v3773_v35 = vpop.permute.xlu1 %1269 }
 0x981   :  { %v1147_v37 = vpop.permute.xlu0 %1146  ;;  %v3775_v38 = vpop.permute.xlu1 %1302 }
 0x985   :  { %v3777_v43 = vpop.permute.xlu1 %1335  ;;  %v1116_v45 = vpop.permute.xlu0 %1115 }
 0x989   :  { %v1114_v50 = vpop.permute.xlu1 %1113  ;;  %v1151_v51 = vpop.permute.xlu0 %1150 }
 0x98a   :  { %v1124_v56 = vsel %vm1121_vm9, %v1112_v32, %v1114_v50 }
 0x98b   :  { %v1143_v62 = vmul.f32 %v3790_v57, %v1124_v56  ;;  %v3824_v56 = vld [vmem:[%s4385_s18 + $0x18] sm:$0xff] }
 0x98c   :  { %v3834_v2 = vrot.slane %v3824_v56, %v3484_v28  ;;  %v3918_v14 = vrot.slane %v3824_v56, %v3466_v20  ;;  %v3959_v60 = vrot.slane %v3824_v56, %v3473_v24 }
 0x98d   :  { %v1149_v7 = vpop.permute.xlu1 %1148  ;;  %v3799_v8 = vpop.permute.xlu0 %1179 }
 0x98e   :  { %v1157_v61 = vsel %vm1154_vm10, %v1147_v37, %v1149_v7  ;;  %v1156_v3 = vsel %vm1154_vm10, %v1149_v7, %v1151_v51 }
 0x98f   :  { %v1176_v29 = vmul.f32 %v3795_v1, %v1157_v61  ;;  %v3828_v61 = vrot.slane %v3815_v22, %v3484_v28  ;;  %v1177_v34 = vmul.f32 %v3819_v9, %v1156_v3 }
 0x991   :  { %v3810_v30 = vpop.permute.xlu0 %1212  ;;  %v1118_v18 = vpop.permute.xlu1 %1117  ;;  %v2625_v5 = vpack.c.bf16 %v1176_v29, %v1143_v62  ;;  %v3838_v62 = vrot.slane %v3815_v22, %v3447_v58  ;;  %v3842_v29 = vrot.slane %v3824_v56, %v3447_v58 }
 0x992   :  { %v1122_v7 = vsel %vm1121_vm9, %v1116_v45, %v1118_v18  ;;  %v1125_v46 = vsel %vm1121_vm9, %v1118_v18, %v1112_v32 }
 0x993   :  { %2626 = vmatprep.subr.bf16.mxu1 %v2625_v5  ;;  %v1123_v5 = vsel %vm1121_vm9, %v1114_v50, %v1116_v45  ;;  %v1142_v23 = vmul.f32 %v3828_v61, %v1125_v46  ;;  %v1145_v21 = vmul.f32 %v3834_v2, %v1122_v7  ;;  %v3872_v46 = vrot.slane %v3786_v55, %v3450_v59 }
 0x994   :  { %v1144_v32 = vmul.f32 %v3846_v52, %v1123_v5  ;;  %v3884_v7 = vrot.slane %v3815_v22, %v3490_v33  ;;  %v3888_v5 = vrot.slane %v3808_v0, %v3450_v59 }
 0x995   :  { %v1184_v42 = vpop.permute.xlu0 %1183  ;;  %v1153_v39 = vpop.permute.xlu1 %1152 }
 0x996   :  { %v1155_v58 = vsel %vm1154_vm10, %v1151_v51, %v1153_v39  ;;  %v1158_v28 = vsel %vm1154_vm10, %v1153_v39, %v1147_v37  ;;  %v2643_v51 = vpack.c.bf16 %v1177_v34, %v1144_v32  ;;  %v3867_v39 = vrot.slane %v3786_v55, %v3466_v20 }
 0x997   :  { %v1175_v16 = vmul.f32 %v3838_v62, %v1158_v28  ;;  %v1178_v18 = vmul.f32 %v3842_v29, %v1155_v58  ;;  %v3894_v32 = vrot.slane %v3808_v0, %v3490_v33 }
 0x999   :  { %v2627_v45 = vpack.c.bf16 %v1175_v16, %v1142_v23  ;;  %v1217_v50 = vpop.permute.xlu0 %1216  ;;  %v1182_v3 = vpop.permute.xlu1 %1181  ;;  %v2641_v17 = vpack.c.bf16 %v1178_v18, %v1145_v21 }
 0x99a   :  { %v1190_v16 = vsel %vm1187_vm11, %v3799_v8, %v1182_v3 }
 0x99b   :  { %2628 = vmatpush1.bf16.msra.mxu1 %v2627_v45  ;;  %2642 = vmatprep.subr.bf16.mxu0 %v2641_v17  ;;  %v1209_v37 = vmul.f32 %v3867_v39, %v1190_v16  ;;  %v3898_v45 = vrot.slane %v3786_v55, %v3490_v33 }
 0x99c   :  { %2644 = vmatpush1.bf16.msra.mxu0 %v2643_v51  ;;  %v3902_v51 = vrot.slane %v3808_v0, %v3466_v20 }
 0x99d   :  { %v1266_v23 = vpop.permute.xlu0 %1265  ;;  %v1215_v21 = vpop.permute.xlu1 %1214 }
 0x99e   :  { %v1223_v34 = vsel %vm1220_vm12, %v3810_v30, %v1215_v21  ;;  %v1222_v16 = vsel %vm1220_vm12, %v1215_v21, %v1217_v50  ;;  %v3926_v21 = vrot.slane %v3824_v56, %v3450_v59  ;;  %v3941_v59 = vrot.slane %v3815_v22, %v3473_v24 }
 0x99f   :  { %v1242_v17 = vmul.f32 %v3872_v46, %v1223_v34  ;;  %v3908_v34 = vrot.slane %v3815_v22, %v3466_v20  ;;  %v1261_v20 = vmul.f32 %v3884_v7, %v3698_v6 }
 0x9a1   :  { %v3890_v58 = vpop.permute.xlu0 %1298  ;;  %v1186_v28 = vpop.permute.xlu1 %1185  ;;  %v2629_v18 = vpack.c.bf16 %v1242_v17, %v1209_v37  ;;  %v3912_v37 = vrot.slane %v3824_v56, %v3490_v33  ;;  %v1189_v17 = vsel %vm1187_vm11, %v1182_v3, %v1184_v42 }
 0x9a2   :  { %v1188_v33 = vsel %vm1187_vm11, %v1184_v42, %v1186_v28  ;;  %v1191_v3 = vsel %vm1187_vm11, %v1186_v28, %v3799_v8  ;;  %v3945_v42 = vrot.slane %v3786_v55, %v3473_v24  ;;  %v3949_v8 = vrot.slane %v3808_v0, %v3473_v24 }
 0x9a3   :  { %2630 = vmatprep.subr.bf16.mxu1 %v2629_v18  ;;  %v1243_v18 = vmul.f32 %v3888_v5, %v1222_v16  ;;  %v1210_v6 = vmul.f32 %v3902_v51, %v1189_v17  ;;  %v1208_v54 = vmul.f32 %v3908_v34, %v1191_v3  ;;  %v1211_v53 = vmul.f32 %v3918_v14, %v1188_v33 }
 0x9a4   :  { %v1263_v17 = vmul.f32 %v3894_v32, %v3700_v12  ;;  %v1264_v24 = vmul.f32 %v3912_v37, %v3708_v49 }
 0x9a5   :  { %v3937_v10 = vpop.permute.xlu0 %1331  ;;  %v1219_v4 = vpop.permute.xlu1 %1218 }
 0x9a6   :  { %v1221_v28 = vsel %vm1220_vm12, %v1217_v50, %v1219_v4  ;;  %v1224_v16 = vsel %vm1220_vm12, %v1219_v4, %v3810_v30  ;;  %v1262_v4 = vmul.f32 %v3898_v45, %v3704_v13  ;;  %v2647_v30 = vpack.c.bf16 %v1243_v18, %v1210_v6 }
 0x9a7   :  { %v1241_v48 = vmul.f32 %v3922_v11, %v1224_v16  ;;  %v1244_v44 = vmul.f32 %v3926_v21, %v1221_v28  ;;  %v3974_v16 = vrot.slane %v3815_v22, %v3459_v63  ;;  %v3992_v18 = vrot.slane %v3786_v55, %v3459_v63 }
 0x9a9   :  { %v2631_v50 = vpack.c.bf16 %v1241_v48, %v1208_v54  ;;  %v1268_v3 = vpop.permute.xlu0 %1267  ;;  %v1272_v41 = vpop.permute.xlu1 %1271  ;;  %v2645_v33 = vpack.c.bf16 %v1244_v44, %v1211_v53 }
 0x9aa   :  { %v1275_v12 = vsel %vm1273_vm13, %v1268_v3, %v3773_v35  ;;  %v1276_v28 = vsel %vm1273_vm13, %v1266_v23, %v1268_v3  ;;  %v1274_v13 = vsel %vm1273_vm13, %v3773_v35, %v1272_v41  ;;  %v1277_v48 = vsel %vm1273_vm13, %v1272_v41, %v1266_v23 }
 0x9ab   :  { %v1294_v44 = vmul.f32 %v3941_v59, %v1276_v28  ;;  %v1295_v53 = vmul.f32 %v3945_v42, %v1275_v12  ;;  %v1296_v54 = vmul.f32 %v3949_v8, %v1274_v13  ;;  %v1297_v49 = vmul.f32 %v3959_v60, %v1277_v48  ;;  %2632 = vmatpush1.bf16.msra.mxu1 %v2631_v50 }
 0x9ac   :  { %2646 = vmatprep.subr.bf16.mxu0 %v2645_v33  ;;  %v3996_v35 = vrot.slane %v3808_v0, %v3459_v63  ;;  %v4000_v41 = vrot.slane %v3824_v56, %v3459_v63 }
 0x9ad   :  { %v2635_v23 = vpack.c.bf16 %v1294_v44, %v1261_v20  ;;  %v2651_v6 = vpack.c.bf16 %v1296_v54, %v1263_v17  ;;  %2648 = vmatpush1.bf16.msra.mxu0 %v2647_v30  ;;  %v1301_v3 = vpop.permute.xlu0 %1300  ;;  %v1305_v50 = vpop.permute.xlu1 %1304  ;;  %v2633_v33 = vpack.c.bf16 %v1295_v53, %v1262_v4  ;;  %v2649_v12 = vpack.c.bf16 %v1297_v49, %v1264_v24 }
 0x9ae   :  { %v1308_v28 = vsel %vm1306_vm14, %v1301_v3, %v3775_v38  ;;  %v1309_v13 = vsel %vm1306_vm14, %v3890_v58, %v1301_v3  ;;  %v1307_v63 = vsel %vm1306_vm14, %v3775_v38, %v1305_v50  ;;  %v1310_v20 = vsel %vm1306_vm14, %v1305_v50, %v3890_v58  ;;  %v4055_v3 = vld [vmem:[%s4385_s18 + $0x28] ss:$0 sm:$0xff] }
 0x9af   :  { %2634 = vmatprep.subr.bf16.mxu1 %v2633_v33  ;;  %v4017_v17 = vrot.slane %v3815_v22, %v3478_v26  ;;  %v4021_v4 = vrot.slane %v3786_v55, %v3478_v26  ;;  %v4025_v24 = vrot.slane %v3808_v0, %v3478_v26  ;;  %v4029_v38 = vrot.slane %v3824_v56, %v3478_v26 }
 0x9b0   :  { %2650 = vmatprep.subr.bf16.mxu0 %v2649_v12  ;;  %2636 = vmatpush1.bf16.msra.mxu1 %v2635_v23  ;;  %v1327_v58 = vmul.f32 %v3974_v16, %v1309_v13  ;;  %v1328_v22 = vmul.f32 %v3992_v18, %v1308_v28  ;;  %v1329_v30 = vmul.f32 %v3996_v35, %v1307_v63 }
 0x9b1   :  { %v1330_v55 = vmul.f32 %v4000_v41, %v1310_v20  ;;  %2652 = vmatpush1.bf16.msra.mxu0 %v2651_v6  ;;  %v1334_v48 = vpop.permute.xlu0 %1333  ;;  %v1338_v0 = vpop.permute.xlu1 %1337  ;;  %v4063_v20 = vld [vmem:[%s4385_s18 + $0x20] ss:$0 sm:$0xff] }
 0x9b2   :  { %v1341_v26 = vsel %vm1339_vm15, %v1334_v48, %v3777_v43  ;;  %v1342_v56 = vsel %vm1339_vm15, %v3937_v10, %v1334_v48  ;;  %v1340_v44 = vsel %vm1339_vm15, %v3777_v43, %v1338_v0  ;;  %v1343_v53 = vsel %vm1339_vm15, %v1338_v0, %v3937_v10  ;;  %4487 = vst [vmem:[#allocation61_spill] sm:$0xff] %v4063_v20 }
 0x9b3   :  { %v1360_v54 = vmul.f32 %v4017_v17, %v1342_v56  ;;  %v1361_v49 = vmul.f32 %v4021_v4, %v1341_v26  ;;  %v1362_v23 = vmul.f32 %v4025_v24, %v1340_v44  ;;  %v1363_v6 = vmul.f32 %v4029_v38, %v1343_v53 }
 0x9b5   :  { %v2639_v50 = vpack.c.bf16 %v1360_v54, %v1327_v58  ;;  %v2655_v33 = vpack.c.bf16 %v1362_v23, %v1329_v30  ;;  %v1367_v43 = vpop.permute.xlu0 %1366  ;;  %v1369_v12 = vpop.permute.xlu1 %1368  ;;  %v2637_v28 = vpack.c.bf16 %v1361_v49, %v1328_v22  ;;  %v2653_v13 = vpack.c.bf16 %v1363_v6, %v1330_v55  ;;  %v4068_v58 = vld [vmem:[%s4385_s18 + $0x30] ss:$0 sm:$0xff]  ;;  %v4073_v22 = vld [vmem:[%s4385_s18 + $0x38] ss:$0 sm:$0xff] }
 0x9b6   :  { %v1374_v10 = vsel %vm1372_vm0, %v1367_v43, %v1369_v12  ;;  %4488 = vst [vmem:[#allocation62_spill] sm:$0xff] %v4068_v58  ;;  %4489 = vst [vmem:[#allocation63_spill] sm:$0xff] %v4073_v22  ;;  %v1101_v54 = vld [vmem:[#allocation17] sm:$0xff]  ;;  %v4490_v49 = vmov 0.0  }
 0x9b7   :  { %v1394_v63 = vmul.f32 %v4055_v3, %v1374_v10  ;;  %2638 = vmatprep.subr.bf16.mxu1 %v2637_v28  ;;  %2654 = vmatprep.subr.bf16.mxu0 %v2653_v13 }
 0x9b8   :  { %2640 = vmatpush1.bf16.msra.mxu1 %v2639_v50  ;;  %2656 = vmatpush1.bf16.msra.mxu0 %v2655_v33 }
 0x9b9   :  { %v1365_v30 = vpop.permute.xlu0 %1364  ;;  %1421 = vmatprep.subr.mxu1 %v1394_v63  ;;  %v1371_v55 = vpop.permute.xlu1 %1370 }
 0x9ba   :  { %v1375_v48 = vsel %vm1372_vm0, %v1365_v30, %v1367_v43  ;;  %v1373_v0 = vsel %vm1372_vm0, %v1369_v12, %v1371_v55  ;;  %v1376_v26 = vsel %vm1372_vm0, %v1371_v55, %v1365_v30 }
 0x9bb   :  { %v1393_v56 = vmul.f32 %v4063_v20, %v1375_v48  ;;  %v1395_v44 = vmul.f32 %v4068_v58, %v1373_v0  ;;  %v1396_v53 = vmul.f32 %v4073_v22, %v1376_v26 }
 0x9bd   :  { %1422 = vmatpush1.msra.mxu1 %v1393_v56  ;;  %1492 = vmatprep.subr.mxu0 %v1396_v53 }
 0x9be   :  { %2396 = vmatmul.mubr.msk.f32.vlgmr.msra.gmra.mrb[6].mxu1 %vm453_vm5, %v1101_v54  ;;  %1493 = vmatpush1.msra.mxu0 %v1395_v44 }
 0x9bf   :  { %2397 = vmatmul.mubr.msk.f32.vlgmr.msra.gmra.mrb[6].mxu0 %vm453_vm5, %v1101_v54  ;;  %1809 = vmatprep.mubr.f32.mxu1 %v4490_v49 }
 0x9c0   :  { %1880 = vmatprep.mubr.f32.mxu0 %v4490_v49 }
 0x9ca   :  { %v1400_v23 = vpop.permute.xlu0 %1399 }
 0xa91   :  { %v1471_v6 = vpop.f32.mrb[6].mxu1 }
 0xa92   :  { %v1472_v50 = vadd.f32 %v1471_v6, %v1400_v23  ;;  %v1473_v33 = vpop.f32.mrb[7].mxu1  ;;  %v1542_v43 = vpop.f32.mrb[6].mxu0 }
 0xa93   :  { %v1474_v12 = vadd.f32 %v1473_v33, %v1400_v23  ;;  %v1543_v28 = vadd.f32 %v1542_v43, %v1400_v23  ;;  %v1544_v13 = vpop.f32.mrb[7].mxu0 }
 0xa94   :  { %v1547_v10 = vmul.f32 %v1472_v50, %v1472_v50  ;;  %v4088_v48 = vadd.f32 %v1544_v13, %v1400_v23 }
 0xa95   :  { %v1548_v63 = vmul.f32 %v1474_v12, %v1474_v12  ;;  %v1549_v30 = vmul.f32 %v1543_v28, %v1543_v28 }
 0xa96   :  { %v1551_v55 = vrot.slane %v1547_v10, 4  ;;  %v1550_v6 = vmul.f32 %v4088_v48, %v4088_v48 }
 0xa97   :  { %v1557_v0 = vrot.slane %v1548_v63, 4  ;;  %v1563_v26 = vrot.slane %v1549_v30, 4 }
 0xa98   :  { %v1552_v56 = vadd.f32 %v1551_v55, %v1547_v10  ;;  %v1569_v27 = vrot.slane %v1550_v6, 4 }
 0xa99   :  { %v1564_v44 = vadd.f32 %v1563_v26, %v1549_v30  ;;  %v1558_v54 = vadd.f32 %v1557_v0, %v1548_v63 }
 0xa9a   :  { %v1553_v53 = vrot.slane %v1552_v56, 2  ;;  %v1570_v49 = vadd.f32 %v1569_v27, %v1550_v6 }
 0xa9b   :  { %v1565_v40 = vrot.slane %v1564_v44, 2  ;;  %v1559_v31 = vrot.slane %v1558_v54, 2 }
 0xa9c   :  { %v1554_v36 = vadd.f32 %v1553_v53, %v1552_v56  ;;  %v1571_v55 = vrot.slane %v1570_v49, 2 }
 0xa9d   :  { %v1566_v33 = vadd.f32 %v1565_v40, %v1564_v44  ;;  %v1560_v13 = vadd.f32 %v1559_v31, %v1558_v54 }
 0xa9e   :  { %v1555_v43 = vrot.slane %v1554_v36, 1  ;;  %v1572_v26 = vadd.f32 %v1571_v55, %v1570_v49 }
 0xa9f   :  { %v1567_v25 = vrot.slane %v1566_v33, 1  ;;  %v1561_v63 = vrot.slane %v1560_v13, 1 }
 0xaa0   :  { %v1556_v19 = vadd.f32 %v1555_v43, %v1554_v36  ;;  %v1573_v40 = vrot.slane %v1572_v26, 1  ;;  %v1945_v43 = vld [vmem:[%s4387_s20] sm:$0x7] }
 0xaa1   :  { %v1568_v15 = vadd.f32 %v1567_v25, %v1566_v33  ;;  %v1562_v0 = vadd.f32 %v1561_v63, %v1560_v13 }
 0xaa2   :  { %v1575_v23 = vmul.f32 0.125, %v1556_v19  ;;  %v1574_v36 = vadd.f32 %v1573_v40, %v1572_v26 }
 0xaa3   :  { %v1577_v22 = vmul.f32 0.125, %v1568_v15  ;;  %v1576_v56 = vmul.f32 0.125, %v1562_v0 }
 0xaa4   :  { %v1579_v10 = vadd.f32 1e-08, %v1575_v23  ;;  %v1578_v15 = vmul.f32 0.125, %v1574_v36  ;;  %v2168_v23 = vld [vmem:[%s4389_s22] sm:$0x7] }
 0xaa5   :  { %v1581_v30 = vadd.f32 1e-08, %v1577_v22  ;;  %v1580_v20 = vadd.f32 1e-08, %v1576_v56 }
 0xaa6   :  { %2829 = vrsqrt.f32 %v1579_v10  ;;  %v1582_v49 = vadd.f32 1e-08, %v1578_v15 }
 0xaa7   :  { %2831 = vrsqrt.f32 %v1581_v30 }
 0xaa8   :  { %2833 = vrsqrt.f32 %v1580_v20 }
 0xaa9   :  { %2835 = vrsqrt.f32 %v1582_v49 }
 0xab0   :  { %v2830_v44 = vpop.eup %2829 }
 0xab1   :  { %v1587_v53 = vmul.f32 %v2830_v44, %v1472_v50  ;;  %v2832_v58 = vpop.eup %2831 }
 0xab2   :  { %v1589_v25 = vmul.f32 %v2832_v58, %v1543_v28  ;;  %v2834_v20 = vpop.eup %2833 }
 0xab3   :  { %vm1591_vm1 = vcmp.ge.f32.partialorder %v1587_v53, 0.0  ;;  %v1595_v19 = vmul.f32 0.01, %v1587_v53  ;;  %v1588_v58 = vmul.f32 %v2834_v20, %v1474_v12  ;;  %v2836_v28 = vpop.eup %2835 }
 0xab4   :  { %vm1593_vm2 = vcmp.ge.f32.partialorder %v1589_v25, 0.0  ;;  %v1597_v31 = vmul.f32 0.01, %v1589_v25  ;;  %v1590_v6 = vmul.f32 %v2836_v28, %v4088_v48  ;;  %v1604_v48 = vld [vmem:[%s4384_s17] sm:$0xff] }
 0xab5   :  { %v4092_v27 = vsel %vm1591_vm1, %v1587_v53, %v1595_v19  ;;  %v1596_v50 = vmul.f32 0.01, %v1588_v58  ;;  %vm1592_vm3 = vcmp.ge.f32.partialorder %v1588_v58, 0.0 }
 0xab6   :  { %1605 = vrot.lane.b32.xlu1 %v4092_v27, %s3129_s11  ;;  %v4096_v22 = vsel %vm1593_vm2, %v1589_v25, %v1597_v31  ;;  %v1598_v12 = vmul.f32 0.01, %v1590_v6  ;;  %vm1594_vm6 = vcmp.ge.f32.partialorder %v1590_v6, 0.0 }
 0xab7   :  { %1625 = vrot.lane.b32.xlu0 %v4096_v22, %s3104_s25  ;;  %v4118_v54 = vsel %vm1592_vm3, %v1588_v58, %v1596_v50 }
 0xab8   :  { %v4129_v33 = vsel %vm1594_vm6, %v1590_v6, %v1598_v12 }
 0xaba   :  { %1621 = vrot.lane.b32.xlu1 %v4092_v27, %s3104_s25 }
 0xabb   :  { %1657 = vrot.lane.b32.xlu0 %v4096_v22, %s3110_s7 }
 0xabe   :  { %1609 = vrot.lane.b32.xlu1 %v4096_v22, %s3129_s11 }
 0xabf   :  { %1677 = vrot.lane.b32.xlu0 %v4096_v22, %s3113_s24 }
 0xac2   :  { %1637 = vrot.lane.b32.xlu1 %v4092_v27, %s3132_s28 }
 0xac3   :  { %1693 = vrot.lane.b32.xlu0 %v4096_v22, %s3130_s29 }
 0xac6   :  { %1653 = vrot.lane.b32.xlu1 %v4092_v27, %s3110_s7 }
 0xac7   :  { %1709 = vrot.lane.b32.xlu0 %v4096_v22, %s3131_s1 }
 0xaca   :  { %1641 = vrot.lane.b32.xlu1 %v4096_v22, %s3132_s28 }
 0xacb   :  { %1607 = vrot.lane.b32.xlu0 %v4118_v54, %s3129_s11 }
 0xace   :  { %1673 = vrot.lane.b32.xlu1 %v4092_v27, %s3113_s24 }
 0xacf   :  { %1623 = vrot.lane.b32.xlu0 %v4118_v54, %s3104_s25 }
 0xad2   :  { %1689 = vrot.lane.b32.xlu1 %v4092_v27, %s3130_s29 }
 0xad3   :  { %1627 = vrot.lane.b32.xlu0 %v4129_v33, %s3104_s25 }
 0xad6   :  { %1611 = vrot.lane.b32.xlu1 %v4129_v33, %s3129_s11 }
 0xad7   :  { %1639 = vrot.lane.b32.xlu0 %v4118_v54, %s3132_s28 }
 0xada   :  { %1643 = vrot.lane.b32.xlu1 %v4129_v33, %s3132_s28 }
 0xadb   :  { %1655 = vrot.lane.b32.xlu0 %v4118_v54, %s3110_s7 }
 0xade   :  { %1675 = vrot.lane.b32.xlu1 %v4118_v54, %s3113_s24 }
 0xadf   :  { %1659 = vrot.lane.b32.xlu0 %v4129_v33, %s3110_s7 }
 0xae2   :  { %1691 = vrot.lane.b32.xlu1 %v4118_v54, %s3130_s29 }
 0xae3   :  { %1705 = vrot.lane.b32.xlu0 %v4092_v27, %s3131_s1 }
 0xae6   :  { %1707 = vrot.lane.b32.xlu1 %v4118_v54, %s3131_s1 }
 0xae7   :  { %1679 = vrot.lane.b32.xlu0 %v4129_v33, %s3113_s24 }
 0xaea   :  { %1695 = vrot.lane.b32.xlu1 %v4129_v33, %s3130_s29 }
 0xaeb   :  { %1711 = vrot.lane.b32.xlu0 %v4129_v33, %s3131_s1  ;;  %s4528_s1 = sld [smem:[#allocation72_spill]] }
 0xaee   :  { %1723 = vrot.lane.b32.xlu1 %v4118_v54, %s3133_s21 }
 0xaef   :  { %1725 = vrot.lane.b32.xlu0 %v4096_v22, %s3133_s21 }
 0xaf2   :  { %1721 = vrot.lane.b32.xlu1 %v4092_v27, %s3133_s21 }
 0xaf3   :  { %1727 = vrot.lane.b32.xlu0 %v4129_v33, %s3133_s21 }
 0xaf6   :  { %1739 = vperm.xlu1 %2820, %v1604_v48  }
 0xaf7   :  { %1948 = vperm.xlu0 %2799, %v1945_v43  }
 0xafa   :  { %2171 = vperm.xlu1 %2820, %v2168_v23  }
 0xb28   :  { %v1606_v13 = vpop.permute.xlu1 %1605 }
 0xb29   :  { %v1626_v10 = vpop.permute.xlu0 %1625 }
 0xb2c   :  { %v1622_v30 = vpop.permute.xlu1 %1621 }
 0xb2d   :  { %v1658_v63 = vpop.permute.xlu0 %1657 }
 0xb30   :  { %v1610_v55 = vpop.permute.xlu1 %1609 }
 0xb31   :  { %v4174_v0 = vpop.permute.xlu0 %1677 }
 0xb34   :  { %v1638_v26 = vpop.permute.xlu1 %1637 }
 0xb35   :  { %v4176_v56 = vpop.permute.xlu0 %1693 }
 0xb38   :  { %v1654_v40 = vpop.permute.xlu1 %1653 }
 0xb39   :  { %v4178_v44 = vpop.permute.xlu0 %1709 }
 0xb3c   :  { %v1642_v53 = vpop.permute.xlu1 %1641 }
 0xb3d   :  { %v1608_v36 = vpop.permute.xlu0 %1607 }
 0xb3e   :  { %v1615_v25 = vsel %vm1121_vm9, %v1606_v13, %v1608_v36  ;;  %v1614_v43 = vsel %vm1121_vm9, %v1608_v36, %v1610_v55 }
 0xb3f   :  { %v1618_v49 = vmul.f32 %v1615_v25, %v3790_v57  ;;  %v1619_v36 = vmul.f32 %v1614_v43, %v3846_v52 }
 0xb40   :  { %v4180_v19 = vpop.permute.xlu1 %1673 }
 0xb41   :  { %v1624_v31 = vpop.permute.xlu0 %1623 }
 0xb42   :  { %v1631_v15 = vsel %vm1154_vm10, %v1622_v30, %v1624_v31  ;;  %v1630_v50 = vsel %vm1154_vm10, %v1624_v31, %v1626_v10 }
 0xb43   :  { %v1634_v20 = vmul.f32 %v1631_v15, %v3795_v1  ;;  %v1635_v1 = vmul.f32 %v1630_v50, %v3819_v9 }
 0xb44   :  { %v4188_v58 = vpop.permute.xlu1 %1689 }
 0xb45   :  { %v1628_v28 = vpop.permute.xlu0 %1627  ;;  %v2657_v6 = vpack.c.bf16 %v1634_v20, %v1618_v49  ;;  %v2675_v50 = vpack.c.bf16 %v1635_v1, %v1619_v36 }
 0xb46   :  { %v1629_v12 = vsel %vm1154_vm10, %v1626_v10, %v1628_v28  ;;  %v1632_v48 = vsel %vm1154_vm10, %v1628_v28, %v1622_v30 }
 0xb47   :  { %2658 = vmatprep.subr.bf16.mxu1 %v2657_v6  ;;  %v1633_v31 = vmul.f32 %v1632_v48, %v3838_v62  ;;  %v1636_v10 = vmul.f32 %v1629_v12, %v3842_v29 }
 0xb48   :  { %v1612_v57 = vpop.permute.xlu1 %1611 }
 0xb49   :  { %v1613_v23 = vsel %vm1121_vm9, %v1610_v55, %v1612_v57  ;;  %v1616_v25 = vsel %vm1121_vm9, %v1612_v57, %v1606_v13  ;;  %v1640_v49 = vpop.permute.xlu0 %1639 }
 0xb4a   :  { %v1617_v15 = vmul.f32 %v1616_v25, %v3828_v61  ;;  %v1620_v30 = vmul.f32 %v1613_v23, %v3834_v2  ;;  %v1647_v55 = vsel %vm1187_vm11, %v1638_v26, %v1640_v49  ;;  %v1646_v43 = vsel %vm1187_vm11, %v1640_v49, %v1642_v53 }
 0xb4b   :  { %v1650_v61 = vmul.f32 %v1647_v55, %v3867_v39  ;;  %v1671_v55 = vmul.f32 %v4096_v22, %v3894_v32 }
 0xb4c   :  { %v2659_v20 = vpack.c.bf16 %v1633_v31, %v1617_v15  ;;  %v1644_v28 = vpop.permute.xlu1 %1643  ;;  %v2673_v9 = vpack.c.bf16 %v1636_v10, %v1620_v30 }
 0xb4d   :  { %v1656_v6 = vpop.permute.xlu0 %1655  ;;  %v1645_v13 = vsel %vm1187_vm11, %v1642_v53, %v1644_v28  ;;  %v1648_v12 = vsel %vm1187_vm11, %v1644_v28, %v1638_v26 }
 0xb4e   :  { %2660 = vmatpush1.bf16.msra.mxu1 %v2659_v20  ;;  %2674 = vmatprep.subr.bf16.mxu0 %v2673_v9  ;;  %v1663_v62 = vsel %vm1220_vm12, %v1654_v40, %v1656_v6  ;;  %v1662_v2 = vsel %vm1220_vm12, %v1656_v6, %v1658_v63  ;;  %v1649_v31 = vmul.f32 %v1648_v12, %v3908_v34 }
 0xb4f   :  { %2676 = vmatpush1.bf16.msra.mxu0 %v2675_v50  ;;  %v1666_v52 = vmul.f32 %v1663_v62, %v3872_v46  ;;  %v1667_v1 = vmul.f32 %v1662_v2, %v3888_v5  ;;  %v1652_v53 = vmul.f32 %v1645_v13, %v3918_v14  ;;  %v1651_v5 = vmul.f32 %v1646_v43, %v3902_v51 }
 0xb50   :  { %v1676_v29 = vpop.permute.xlu1 %1675 }
 0xb51   :  { %v1682_v48 = vsel %vm1273_vm13, %v1676_v29, %v4174_v0  ;;  %v1683_v39 = vsel %vm1273_vm13, %v4180_v19, %v1676_v29  ;;  %v1660_v57 = vpop.permute.xlu0 %1659  ;;  %v2661_v46 = vpack.c.bf16 %v1666_v52, %v1650_v61  ;;  %v2679_v14 = vpack.c.bf16 %v1667_v1, %v1651_v5  ;;  %v4499_v5 = vld [vmem:[#allocation31_spill] sm:$0xff] }
 0xb52   :  { %v1686_v23 = vmul.f32 %v1682_v48, %v3945_v42  ;;  %v1661_v26 = vsel %vm1220_vm12, %v1658_v63, %v1660_v57  ;;  %v1664_v25 = vsel %vm1220_vm12, %v1660_v57, %v1654_v40  ;;  %v1685_v42 = vmul.f32 %v1683_v39, %v3941_v59  ;;  %v1603_v57 = vld [vmem:[#allocation19] sm:$0xff] }
 0xb53   :  { %v1665_v10 = vmul.f32 %v1664_v25, %v3922_v11  ;;  %v1668_v15 = vmul.f32 %v1661_v26, %v3926_v21  ;;  %2662 = vmatprep.subr.bf16.mxu1 %v2661_v46  ;;  %v1670_v63 = vmul.f32 %v4118_v54, %v3898_v45  ;;  %v1669_v40 = vmul.f32 %v4092_v27, %v3884_v7 }
 0xb54   :  { %v1692_v30 = vpop.permute.xlu1 %1691 }
 0xb55   :  { %v2663_v49 = vpack.c.bf16 %v1665_v10, %v1649_v31  ;;  %v1706_v34 = vpop.permute.xlu0 %1705  ;;  %v2677_v36 = vpack.c.bf16 %v1668_v15, %v1652_v53  ;;  %v1698_v11 = vsel %vm1306_vm14, %v1692_v30, %v4176_v56  ;;  %v1699_v51 = vsel %vm1306_vm14, %v4188_v58, %v1692_v30  ;;  %v4495_v53 = vld [vmem:[#allocation60_spill] sm:$0xff]  ;;  %v1944_v10 = vld [vmem:[%s4386_s19] sm:$0x7]  ;;  %v4498_v30 = vld [vmem:[#allocation30_spill] sm:$0xff] }
 0xb56   :  { %v2665_v21 = vpack.c.bf16 %v1686_v23, %v1670_v63  ;;  %v2667_v45 = vpack.c.bf16 %v1685_v42, %v1669_v40  ;;  %v1701_v54 = vmul.f32 %v1699_v51, %v3974_v16  ;;  %v1702_v20 = vmul.f32 %v1698_v11, %v3992_v18  ;;  %v4492_v23 = vld [vmem:[#allocation62_spill] sm:$0xff]  ;;  %v4497_v15 = vld [vmem:[#allocation29_spill] sm:$0xff]  ;;  %v4500_v42 = vld [vmem:[#allocation32_spill] sm:$0xff] }
 0xb57   :  { %2664 = vmatpush1.bf16.msra.mxu1 %v2663_v49  ;;  %2678 = vmatprep.subr.bf16.mxu0 %v2677_v36  ;;  %v1672_v16 = vmul.f32 %v4129_v33, %v3912_v37  ;;  %v4494_v31 = vmov 0.0   ;;  %v4501_v63 = vld [vmem:[#allocation33_spill] sm:$0xff]  ;;  %v4502_v40 = vld [vmem:[#allocation34_spill] sm:$0xff]  ;;  %v4503_v49 = vld [vmem:[#allocation35_spill] sm:$0xff] }
 0xb58   :  { %v1708_v59 = vpop.permute.xlu1 %1707  ;;  %2666 = vmatprep.subr.bf16.mxu1 %v2665_v21  ;;  %2680 = vmatpush1.bf16.msra.mxu0 %v2679_v14  ;;  %v4505_v36 = vld [vmem:[#allocation37_spill] sm:$0xff]  ;;  %v4506_v14 = vld [vmem:[#allocation38_spill] sm:$0xff]  ;;  %v4507_v11 = vld [vmem:[#allocation39_spill] sm:$0xff] }
 0xb59   :  { %v1714_v7 = vsel %vm1339_vm15, %v1708_v59, %v4178_v44  ;;  %v1715_v27 = vsel %vm1339_vm15, %v1706_v34, %v1708_v59  ;;  %v1680_v50 = vpop.permute.xlu0 %1679  ;;  %v4508_v51 = vld [vmem:[#allocation40_spill] sm:$0xff]  ;;  %v4509_v21 = vld [vmem:[#allocation41_spill] sm:$0xff]  ;;  %v4510_v59 = vld [vmem:[#allocation42_spill] sm:$0xff] }
 0xb5a   :  { %v1717_v28 = vmul.f32 %v1715_v27, %v4017_v17  ;;  %v1718_v9 = vmul.f32 %v1714_v7, %v4021_v4  ;;  %v1681_v6 = vsel %vm1273_vm13, %v4174_v0, %v1680_v50  ;;  %v1684_v62 = vsel %vm1273_vm13, %v1680_v50, %v4180_v19  ;;  %v4512_v7 = vld [vmem:[#allocation44_spill] sm:$0xff]  ;;  %v4513_v27 = vld [vmem:[#allocation45_spill] sm:$0xff]  ;;  %v4518_v50 = vld [vmem:[#allocation50_spill] sm:$0xff] }
 0xb5b   :  { %v1687_v17 = vmul.f32 %v1681_v6, %v3949_v8  ;;  %v1688_v4 = vmul.f32 %v1684_v62, %v3959_v60  ;;  %2668 = vmatpush1.bf16.msra.mxu1 %v2667_v45  ;;  %v4511_v45 = vld [vmem:[#allocation43_spill] sm:$0xff]  ;;  %v4520_v6 = vld [vmem:[#allocation52_spill] sm:$0xff]  ;;  %v4521_v62 = vld [vmem:[#allocation53_spill] sm:$0xff] }
 0xb5c   :  { %v2671_v18 = vpack.c.bf16 %v1717_v28, %v1701_v54  ;;  %v1696_v61 = vpop.permute.xlu1 %1695  ;;  %v2669_v2 = vpack.c.bf16 %v1718_v9, %v1702_v20  ;;  %v4514_v54 = vld [vmem:[#allocation46_spill] sm:$0xff]  ;;  %v4515_v20 = vld [vmem:[#allocation47_spill] sm:$0xff]  ;;  %v4516_v28 = vld [vmem:[#allocation48_spill] sm:$0xff] }
 0xb5d   :  { %v1697_v32 = vsel %vm1306_vm14, %v4176_v56, %v1696_v61  ;;  %v1700_v22 = vsel %vm1306_vm14, %v1696_v61, %v4188_v58  ;;  %v2683_v0 = vpack.c.bf16 %v1687_v17, %v1671_v55  ;;  %v1712_v33 = vpop.permute.xlu0 %1711  ;;  %v2681_v8 = vpack.c.bf16 %v1688_v4, %v1672_v16  ;;  %v4517_v9 = vld [vmem:[#allocation49_spill] sm:$0xff]  ;;  %v4519_v55 = vld [vmem:[#allocation51_spill] sm:$0xff]  ;;  %v4522_v16 = vld [vmem:[#allocation54_spill] sm:$0xff] }
 0xb5e   :  { %v1703_v19 = vmul.f32 %v1697_v32, %v3996_v35  ;;  %v1704_v37 = vmul.f32 %v1700_v22, %v4000_v41  ;;  %2670 = vmatprep.subr.bf16.mxu1 %v2669_v2  ;;  %v1713_v60 = vsel %vm1339_vm15, %v4178_v44, %v1712_v33  ;;  %v1716_v52 = vsel %vm1339_vm15, %v1712_v33, %v1706_v34  ;;  %v4504_v34 = vld [vmem:[#allocation36_spill] sm:$0xff]  ;;  %v4525_v4 = vld [vmem:[#allocation57_spill] sm:$0xff]  ;;  %v4526_v61 = vld [vmem:[#allocation58_spill] sm:$0xff] }
 0xb5f   :  { %v1719_v56 = vmul.f32 %v1713_v60, %v4025_v24  ;;  %v1720_v29 = vmul.f32 %v1716_v52, %v4029_v38  ;;  %2672 = vmatpush1.bf16.msra.mxu1 %v2671_v18  ;;  %2682 = vmatprep.subr.bf16.mxu0 %v2681_v8  ;;  %v4491_v24 = vld [vmem:[#allocation61_spill] sm:$0xff]  ;;  %v4523_v18 = vld [vmem:[#allocation55_spill] sm:$0xff]  ;;  %v4524_v17 = vld [vmem:[#allocation56_spill] sm:$0xff] }
 0xb60   :  { %v1724_v58 = vpop.permute.xlu1 %1723  ;;  %2684 = vmatpush1.bf16.msra.mxu0 %v2683_v0  ;;  %v4527_v2 = vld [vmem:[#allocation59_spill] sm:$0xff] }
 0xb61   :  { %v2687_v35 = vpack.c.bf16 %v1719_v56, %v1703_v19  ;;  %v1726_v41 = vpop.permute.xlu0 %1725  ;;  %v2685_v13 = vpack.c.bf16 %v1720_v29, %v1704_v37 }
 0xb62   :  { %v1730_v12 = vsel %vm1372_vm0, %v1724_v58, %v1726_v41 }
 0xb63   :  { %v1734_v48 = vmul.f32 %v4055_v3, %v1730_v12  ;;  %2686 = vmatprep.subr.bf16.mxu0 %v2685_v13  ;;  %v4493_v3 = vld [vmem:[#allocation63_spill] sm:$0xff] }
 0xb64   :  { %v1722_v44 = vpop.permute.xlu1 %1721  ;;  %2688 = vmatpush1.bf16.msra.mxu0 %v2687_v35 }
 0xb65   :  { %v1731_v43 = vsel %vm1372_vm0, %v1722_v44, %v1724_v58  ;;  %v1728_v39 = vpop.permute.xlu0 %1727  ;;  %1761 = vmatprep.subr.mxu1 %v1734_v48 }
 0xb66   :  { %v1733_v38 = vmul.f32 %v4491_v24, %v1731_v43  ;;  %v1729_v46 = vsel %vm1372_vm0, %v1726_v41, %v1728_v39  ;;  %v1732_v1 = vsel %vm1372_vm0, %v1728_v39, %v1722_v44 }
 0xb67   :  { %v1735_v26 = vmul.f32 %v4492_v23, %v1729_v46  ;;  %v1736_v25 = vmul.f32 %v4493_v3, %v1732_v1 }
 0xb68   :  { %1762 = vmatpush1.msra.mxu1 %v1733_v38 }
 0xb69   :  { %2398 = vmatmul.mubr.msk.f32.vlgmr.msra.gmra.mrb[8].mxu1 %vm453_vm5, %v1603_v57  ;;  %2514 = vmatprep.subr.mxu1 %v4494_v31 }
 0xb6a   :  { %1832 = vmatprep.subr.mxu0 %v1736_v25  ;;  %2515 = vmatpush3.msra.mxu1 %v4495_v53 }
 0xb6b   :  { %1833 = vmatpush1.msra.mxu0 %v1735_v26  ;;  %2516 = vmatprep.mubr.msk.f32.mxu1 %vm3122_vm4, %v4494_v31 }
 0xb6c   :  { %2399 = vmatmul.mubr.msk.f32.vlgmr.msra.gmra.mrb[8].mxu0 %vm453_vm5, %v1603_v57  ;;  %2690 = vmatprep.subr.bf16.mxu1 %v4496_v47 }
 0xb6d   :  { %2517 = vmatmul.mubr.msk.f32.vlgmr.msra.gmra.mrb[10].mxu1 %vm1951_vm7, %v1944_v10  ;;  %2722 = vmatprep.subr.bf16.mxu0 %v4497_v15 }
 0xb6e   :  { %2692 = vmatpush1.bf16.msra.mxu1 %v4498_v30  ;;  %2724 = vmatpush1.bf16.msra.mxu0 %v4499_v5 }
 0xb6f   :  { %2694 = vmatprep.subr.bf16.mxu1 %v4500_v42  ;;  %2726 = vmatprep.subr.bf16.mxu0 %v4501_v63 }
 0xb70   :  { %2089 = vmatprep.mubr.f32.mxu1 %v4494_v31  ;;  %2160 = vmatprep.mubr.f32.mxu0 %v4494_v31 }
 0xb72   :  { %2696 = vmatpush1.bf16.msra.mxu1 %v4502_v40  ;;  %2728 = vmatpush1.bf16.msra.mxu0 %v4503_v49 }
 0xb73   :  { %2698 = vmatprep.subr.bf16.mxu1 %v4504_v34  ;;  %2730 = vmatprep.subr.bf16.mxu0 %v4505_v36 }
 0xb75   :  { %v1740_v32 = vpop.permute.xlu1 %1739 }
 0xb76   :  { %2700 = vmatpush1.bf16.msra.mxu1 %v4506_v14  ;;  %2732 = vmatpush1.bf16.msra.mxu0 %v4507_v11  ;;  %v1949_v33 = vpop.permute.xlu0 %1948 }
 0xb77   :  { %2702 = vmatprep.subr.bf16.mxu1 %v4508_v51  ;;  %2734 = vmatprep.subr.bf16.mxu0 %v4509_v21 }
 0xb7a   :  { %2704 = vmatpush1.bf16.msra.mxu1 %v4510_v59  ;;  %2736 = vmatpush1.bf16.msra.mxu0 %v4511_v45 }
 0xb7b   :  { %2706 = vmatprep.subr.bf16.mxu1 %v4512_v7  ;;  %2738 = vmatprep.subr.bf16.mxu0 %v4513_v27 }
 0xb7e   :  { %2708 = vmatpush1.bf16.msra.mxu1 %v4514_v54  ;;  %2740 = vmatpush1.bf16.msra.mxu0 %v4515_v20 }
 0xb7f   :  { %2710 = vmatprep.subr.bf16.mxu1 %v4516_v28  ;;  %2742 = vmatprep.subr.bf16.mxu0 %v4517_v9 }
 0xb82   :  { %2712 = vmatpush1.bf16.msra.mxu1 %v4518_v50  ;;  %2744 = vmatpush1.bf16.msra.mxu0 %v4519_v55 }
 0xb83   :  { %2714 = vmatprep.subr.bf16.mxu1 %v4520_v6  ;;  %2746 = vmatprep.subr.bf16.mxu0 %v4521_v62 }
 0xb86   :  { %2716 = vmatpush1.bf16.msra.mxu1 %v4522_v16  ;;  %2748 = vmatpush1.bf16.msra.mxu0 %v4523_v18 }
 0xb87   :  { %2718 = vmatprep.subr.bf16.mxu1 %v4524_v17  ;;  %2750 = vmatprep.subr.bf16.mxu0 %v4525_v4 }
 0xb8a   :  { %2720 = vmatpush1.bf16.msra.mxu1 %v4526_v61  ;;  %2752 = vmatpush1.bf16.msra.mxu0 %v4527_v2  ;;  %v2167_v61 = vld [vmem:[%s4528_s1] sm:$0x7] }
 0xc3c   :  { %v1811_v22 = vpop.f32.mrb[8].mxu1 }
 0xc3d   :  { %v1812_v0 = vadd.f32 %v1811_v22, %v1740_v32  ;;  %v1813_v19 = vpop.f32.mrb[9].mxu1 }
 0xc3e   :  { %v1814_v37 = vadd.f32 %v1813_v19, %v1740_v32 }
 0xc3f   :  { %v1887_v8 = vmul.f32 %v1812_v0, %v1812_v0  ;;  %v1882_v60 = vpop.f32.mrb[8].mxu0 }
 0xc40   :  { %v1888_v52 = vmul.f32 %v1814_v37, %v1814_v37  ;;  %v1883_v56 = vadd.f32 %v1882_v60, %v1740_v32  ;;  %v1884_v29 = vpop.f32.mrb[9].mxu0  ;;  %v2021_v58 = vpop.f32.mrb[10].mxu1 }
 0xc41   :  { %v1891_v35 = vrot.slane %v1887_v8, 4  ;;  %v1885_v41 = vadd.f32 %v1884_v29, %v1740_v32  ;;  %v2022_v13 = vadd.f32 %v2021_v58, %v1949_v33  ;;  %v2518_v12 = vpop.f32.mrb[11].mxu1  ;;  %v2172_v60 = vpop.permute.xlu1 %2171  ;;  %v2325_v29 = vstv %s4529_s12 }
 0xc42   :  { %v1897_v48 = vrot.slane %v1888_v52, 4  ;;  %v1889_v44 = vmul.f32 %v1883_v56, %v1883_v56 }
 0xc43   :  { %v1892_v43 = vadd.f32 %v1891_v35, %v1887_v8  ;;  %v1890_v24 = vmul.f32 %v1885_v41, %v1885_v41  ;;  %2090 = vmatmul.mubr.f32.vlgmr.msra.gmra.mrb[12].mxu1 %v2022_v13  ;;  %2161 = vmatmul.mubr.f32.vlgmr.msra.gmra.mrb[10].mxu0 %v2022_v13 }
 0xc44   :  { %v1898_v38 = vadd.f32 %v1897_v48, %v1888_v52  ;;  %v1903_v39 = vrot.slane %v1889_v44, 4  ;;  %2241 = vmatprep.mubr.f32.mxu1 %v4494_v31  ;;  %v2320_v52 = vstv %s2319_s26 }
 0xc45   :  { %v1893_v57 = vrot.slane %v1892_v43, 2  ;;  %v1909_v46 = vrot.slane %v1890_v24, 4 }
 0xc46   :  { %v1899_v1 = vrot.slane %v1898_v38, 2  ;;  %v1904_v23 = vadd.f32 %v1903_v39, %v1889_v44 }
 0xc47   :  { %v1894_v26 = vadd.f32 %v1893_v57, %v1892_v43  ;;  %v1910_v3 = vadd.f32 %v1909_v46, %v1890_v24 }
 0xc48   :  { %v1900_v25 = vadd.f32 %v1899_v1, %v1898_v38  ;;  %v1905_v53 = vrot.slane %v1904_v23, 2 }
 0xc49   :  { %v1895_v10 = vrot.slane %v1894_v26, 1  ;;  %v1911_v47 = vrot.slane %v1910_v3, 2 }
 0xc4a   :  { %v1901_v15 = vrot.slane %v1900_v25, 1  ;;  %v1906_v30 = vadd.f32 %v1905_v53, %v1904_v23 }
 0xc4b   :  { %v1896_v5 = vadd.f32 %v1895_v10, %v1894_v26  ;;  %v1912_v42 = vadd.f32 %v1911_v47, %v1910_v3 }
 0xc4c   :  { %v1902_v63 = vadd.f32 %v1901_v15, %v1900_v25  ;;  %v1907_v40 = vrot.slane %v1906_v30, 1 }
 0xc4d   :  { %v1915_v49 = vmul.f32 0.125, %v1896_v5  ;;  %v1913_v34 = vrot.slane %v1912_v42, 1 }
 0xc4e   :  { %v1916_v36 = vmul.f32 0.125, %v1902_v63  ;;  %v1908_v14 = vadd.f32 %v1907_v40, %v1906_v30 }
 0xc4f   :  { %v1919_v11 = vadd.f32 1e-08, %v1915_v49  ;;  %v1914_v51 = vadd.f32 %v1913_v34, %v1912_v42 }
 0xc50   :  { %v1920_v21 = vadd.f32 1e-08, %v1916_v36  ;;  %v1917_v59 = vmul.f32 0.125, %v1908_v14 }
 0xc51   :  { %2837 = vrsqrt.f32 %v1919_v11  ;;  %v1918_v45 = vmul.f32 0.125, %v1914_v51 }
 0xc52   :  { %2839 = vrsqrt.f32 %v1920_v21  ;;  %v1921_v7 = vadd.f32 1e-08, %v1917_v59 }
 0xc53   :  { %v1922_v27 = vadd.f32 1e-08, %v1918_v45 }
 0xc54   :  { %2841 = vrsqrt.f32 %v1921_v7 }
 0xc55   :  { %2843 = vrsqrt.f32 %v1922_v27 }
 0xc5b   :  { %v2838_v54 = vpop.eup %2837 }
 0xc5c   :  { %v2840_v20 = vpop.eup %2839  ;;  %v1927_v28 = vmul.f32 %v2838_v54, %v1812_v0 }
 0xc5d   :  { %v1928_v9 = vmul.f32 %v2840_v20, %v1814_v37 }
 0xc5e   :  { %v2842_v50 = vpop.eup %2841  ;;  %v1935_v55 = vmul.f32 0.01, %v1927_v28  ;;  %vm1931_vm5 = vcmp.ge.f32.partialorder %v1927_v28, 0.0 }
 0xc5f   :  { %v2844_v6 = vpop.eup %2843  ;;  %v1929_v62 = vmul.f32 %v2842_v50, %v1883_v56  ;;  %vm1932_vm4 = vcmp.ge.f32.partialorder %v1928_v9, 0.0  ;;  %v1936_v16 = vmul.f32 0.01, %v1928_v9 }
 0xc60   :  { %v1930_v18 = vmul.f32 %v2844_v6, %v1885_v41  ;;  %v1939_v2 = vsel %vm1931_vm5, %v1927_v28, %v1935_v55 }
 0xc61   :  { %v1937_v17 = vmul.f32 0.01, %v1929_v62  ;;  %v1940_v4 = vsel %vm1932_vm4, %v1928_v9, %v1936_v16  ;;  %vm1933_vm9 = vcmp.ge.f32.partialorder %v1929_v62, 0.0 }
 0xc62   :  { %2177 = vmatprep.subr.mxu1 %v1940_v4  ;;  %vm1934_vm8 = vcmp.ge.f32.partialorder %v1930_v18, 0.0  ;;  %v1938_v32 = vmul.f32 0.01, %v1930_v18 }
 0xc63   :  { %2178 = vmatpush1.msra.mxu1 %v1939_v2  ;;  %v1941_v0 = vsel %vm1933_vm9, %v1929_v62, %v1937_v17 }
 0xc64   :  { %2401 = vmatmul.mubr.msk.f32.vlgmr.msra.gmra.mrb[14].mxu1 %vm1951_vm7, %v2167_v61  ;;  %v1942_v22 = vsel %vm1934_vm8, %v1930_v18, %v1938_v32 }
 0xc65   :  { %2248 = vmatprep.subr.mxu1 %v1942_v22  ;;  %2312 = vmatprep.mubr.f32.mxu1 %v4494_v31 }
 0xc66   :  { %2249 = vmatpush1.msra.mxu1 %v1941_v0 }
 0xc68   :  { %2402 = vmatmul.mubr.msk.f32.vlgmr.msra.gmra.mrb[16].mxu1 %vm1951_vm7, %v2167_v61 }
 0xd16   :  { %v2091_v19 = vpop.f32.mrb[12].mxu1  ;;  %v2162_v37 = vpop.f32.mrb[10].mxu0 }
 0xd17   :  { %v2093_v33 = vpop.f32.mrb[13].mxu1  ;;  %v2164_v8 = vpop.f32.mrb[11].mxu0  ;;  %v2321_v41 = vmul.f32 %v2320_v52, %v2091_v19  ;;  %v2323_v46 = vmul.f32 %v2320_v52, %v2162_v37 }
 0xd18   :  { %v2322_v12 = vmul.f32 %v2320_v52, %v2093_v33  ;;  %v2324_v23 = vmul.f32 %v2320_v52, %v2164_v8 }
 0xd37   :  { %v2243_v56 = vpop.f32.mrb[14].mxu1 }
 0xd38   :  { %v2244_v58 = vadd.f32 %v2243_v56, %v2172_v60  ;;  %v2245_v31 = vpop.f32.mrb[15].mxu1 }
 0xd39   :  { %v2246_v35 = vadd.f32 %v2245_v31, %v2172_v60 }
 0xd3a   :  { %v2326_v13 = vmul.f32 %v2325_v29, %v2244_v58 }
 0xd3b   :  { %v2327_v48 = vmul.f32 %v2325_v29, %v2246_v35  ;;  %v2314_v44 = vpop.f32.mrb[16].mxu1 }
 0xd3c   :  { %v2315_v43 = vadd.f32 %v2314_v44, %v2172_v60  ;;  %v2316_v24 = vpop.f32.mrb[17].mxu1  ;;  %v2330_v38 = vadd.f32 %v2326_v13, %v2321_v41 }
 0xd3d   :  { %v2317_v39 = vadd.f32 %v2316_v24, %v2172_v60  ;;  %v2331_v57 = vadd.f32 %v2327_v48, %v2322_v12 }
 0xd3e   :  { %v2328_v1 = vmul.f32 %v2325_v29, %v2315_v43 }
 0xd3f   :  { %v2329_v26 = vmul.f32 %v2325_v29, %v2317_v39  ;;  %v2338_v3 = vcombine.low %v2330_v38, %v2331_v57 }
 0xd40   :  { %v2332_v25 = vadd.f32 %v2328_v1, %v2323_v46 }
 0xd41   :  { %v2333_v53 = vadd.f32 %v2329_v26, %v2324_v23  ;;  %2342 = vst [vmem:[#allocation20] sm:$0x77] %v2338_v3 }
 0xd43   :  { %v2339_v10 = vcombine.low %v2332_v25, %v2333_v53 }
 0xd45   :  { %2343 = vst [vmem:[#allocation20 + $0x8] sm:$0x77] %v2339_v10 }
 0xd46   :  { %3064 = shalt.err (!%p3061_p9)
}
 0xd47   :  { %s4530_s30 = sld [smem:[#allocation73_spill]] }
 0xd4d   :  { %s3065_s14 = scalar_lea.hbm %s4530_s30, 256 }
 0xd4e   :  { %p3066_p10 = scmp.ne.s32.totalorder %s4530_s30, %s3065_s14  ;;  %p3069_p11 = scmp.lt.u32.totalorder %s3065_s14, %s4530_s30 }
 0xd50   :  { %p3071_p12 = pnand %p3069_p11, %p3066_p10 }
 0xd52   :  { %3074 = shalt.err (!%p3071_p12)
}
 0xd53   :  { %2353 = dma.vmem_to_hbm [thread:$0]  %s2351_s5, 256, %s4530_s30, [#allocation5]  }
 0xd54   :  { %3087 = dma.done.wait [#allocation5], 256  }
 0xd55   :  { %3088 = vsyncadd [#allocation5], 4294967040 }
 0xd56   :  { %2357 = vsyncpa [#allocation4], 1 }
 0xd57   :  { %2358 = vsyncpa [#allocation9], 1 }
 0xd58   :  { %2359 = vsyncpa [#allocation12], 1 }
 0xd59   :  { %2360 = vsyncpa [#allocation15], 1 }
 0xd5a   :  { %2361 = vsyncpa [#allocation18], 1 }
 0xd5b   :  { %2362 = vsyncpa [#allocation5], 1 }
 0xd5c   :  { %2363 = vsyncpa [#allocation6], 1 }

</bundles_post_ra>
